<compile_context>
chip_gen: v7x
topology: tpu7x:2x2x1
jax: 0.10.0
libtpu: 0.0.40
codegen_flags: <defaults>
</compile_context>

<pallas_src>
import functools
import math

import jax
import jax.numpy as jnp
from jax.experimental import pallas as pl
from jax.experimental.pallas import tpu as pltpu


# ----------------------------------------------------------------------------
# Fused conv kernel: one im2col MXU matmul + (optional 2x2 max-pool) + bias + ReLU.
#   x_ref : (1, Rb, 9*Cin)           bf16 im2col rows for this (image, chunk)
#   w_ref : (9*Cin, Cout)            bf16
#   b_ref : (1, Cout)                f32
#   o_ref : (1, Rb or Rb//4, Cout)   f32
# With pool=True the wrapper lays the Rb rows out as 4 contiguous groups of Rb//4
# rows (one group per pool member), so pooling is 3 maxes of contiguous slices.
# Pooling before (+bias, ReLU) is valid because both are monotonic.
# ----------------------------------------------------------------------------
def _conv_im2col_kernel(x_ref, w_ref, b_ref, o_ref, *, pool):
    y = jnp.dot(x_ref[0], w_ref[...], preferred_element_type=jnp.float32)
    if pool:
        q = y.shape[0] // 4
        y = jnp.maximum(jnp.maximum(y[:q], y[q:2 * q]),
                        jnp.maximum(y[2 * q:3 * q], y[3 * q:]))
    o_ref[0] = jnp.maximum(y + b_ref[...], 0.0)


def _im2col_3x3(x_nhwc):
    """(N,H,W,C) -> (N,H,W,9*C): 3x3 SAME-padded patches, tap order (ky, kx, c)."""
    N, H, W, C = x_nhwc.shape
    xp = jnp.pad(x_nhwc, ((0, 0), (1, 1), (1, 1), (0, 0)))
    taps = [xp[:, ky:ky + H, kx:kx + W, :] for ky in range(3) for kx in range(3)]
    return jnp.concatenate(taps, axis=-1)


def _pick_rows(total, target):
    """Largest divisor of `total` <= target reachable by halving (pow-2 friendly)."""
    rb = min(total, target)
    while total % rb:
        rb //= 2
    return max(rb, 1)


# ----------------------------------------------------------------------------
# conv 3x3 (padding=1) + bias + ReLU  (no pool) -- used for conv1 (Cin=3, K=27).
# ----------------------------------------------------------------------------
def conv3x3_relu(x_nhwc, w, b, *, rows_target=1024):
    N, H, W, Cin = x_nhwc.shape
    Cout = w.shape[-1]
    K = 9 * Cin
    cols = _im2col_3x3(x_nhwc.astype(jnp.bfloat16)).reshape(N, H * W, K)
    rb = _pick_rows(H * W, rows_target)
    assert rb == H * W or rb % 8 == 0
    w2 = w.reshape(K, Cout).astype(jnp.bfloat16)
    out = pl.pallas_call(
        functools.partial(_conv_im2col_kernel, pool=False),
        out_shape=jax.ShapeDtypeStruct((N, H * W, Cout), jnp.float32),
        grid=(N, (H * W) // rb),
        in_specs=[
            pl.BlockSpec((1, rb, K), lambda n, c: (n, c, 0)),
            pl.BlockSpec((K, Cout), lambda n, c: (0, 0)),
            pl.BlockSpec((1, Cout), lambda n, c: (0, 0)),
        ],
        out_specs=pl.BlockSpec((1, rb, Cout), lambda n, c: (n, c, 0)),
        compiler_params=pltpu.CompilerParams(
            dimension_semantics=("parallel", "parallel")),
    )(cols, w2, b.reshape(1, Cout))
    return out.reshape(N, H, W, Cout)


# ----------------------------------------------------------------------------
# conv 3x3 (padding=1) + bias + ReLU + fused 2x2 max-pool -- conv2 / conv3.
# The im2col rows of a chunk are ordered (pool-member, cell), so the kernel's pool
# is a max over 4 contiguous row groups; the output rows come out in (h2, w2)
# raster order, i.e. directly the pooled NHWC feature map.
# ----------------------------------------------------------------------------
def conv3x3_relu_pool(x_nhwc, w, b, *, rows_target=512):
    N, H, W, Cin = x_nhwc.shape
    Cout = w.shape[-1]
    assert H % 2 == 0 and W % 2 == 0
    K = 9 * Cin
    Ho, Wo = H // 2, W // 2
    ncell = Ho * Wo
    cols = _im2col_3x3(x_nhwc.astype(jnp.bfloat16))                 # (N, H, W, K)
    # (N, Ho, 2, Wo, 2, K) -> (N, Ho, Wo, dh, dw, K): group the 2x2 pool windows.
    cols = cols.reshape(N, Ho, 2, Wo, 2, K).transpose(0, 1, 3, 2, 4, 5)
    rb = _pick_rows(4 * ncell, rows_target)       # im2col rows per grid chunk
    q = rb // 4                                   # pooling cells per chunk
    nch = (4 * ncell) // rb
    assert rb % 4 == 0 and (nch == 1 or q % 8 == 0)
    # chunk c holds cells [c*q, (c+1)*q); within a chunk, row = group*q + local_cell.
    cols = (cols.reshape(N, nch, q, 4, K)
                .transpose(0, 1, 3, 2, 4)
                .reshape(N, nch * rb, K))
    w2 = w.reshape(K, Cout).astype(jnp.bfloat16)
    out = pl.pallas_call(
        functools.partial(_conv_im2col_kernel, pool=True),
        out_shape=jax.ShapeDtypeStruct((N, ncell, Cout), jnp.float32),
        grid=(N, nch),
        in_specs=[
            pl.BlockSpec((1, rb, K), lambda n, c: (n, c, 0)),
            pl.BlockSpec((K, Cout), lambda n, c: (0, 0)),
            pl.BlockSpec((1, Cout), lambda n, c: (0, 0)),
        ],
        out_specs=pl.BlockSpec((1, q, Cout), lambda n, c: (n, c, 0)),
        compiler_params=pltpu.CompilerParams(
            dimension_semantics=("parallel", "parallel")),
    )(cols, w2, b.reshape(1, Cout))
    return out.reshape(N, Ho, Wo, Cout)


# ----------------------------------------------------------------------------
# Linear layer (x @ W + b, optional ReLU).  Grid = (D tiles [parallel], K tiles
# [arbitrary]); the output block itself is the accumulator.  Used for fc1 only.
# ----------------------------------------------------------------------------
def _linear_kernel(x_ref, w_ref, b_ref, o_ref, *, relu):
    k = pl.program_id(1)

    @pl.when(k == 0)
    def _():
        o_ref[...] = jnp.zeros_like(o_ref)

    o_ref[...] += jnp.dot(x_ref[...], w_ref[...],
                          preferred_element_type=jnp.float32)

    @pl.when(k == pl.num_programs(1) - 1)
    def _():
        y = o_ref[...] + b_ref[...]
        if relu:
            y = jnp.maximum(y, 0.0)
        o_ref[...] = y


def linear(x, w, b, *, relu, tk=16384, tn=256):
    B, K = x.shape
    Kw, D = w.shape
    assert K == Kw
    x = x.astype(w.dtype)                    # cast once here, not per grid step
    tk = min(tk, K)
    while K % tk:
        tk //= 2
    tn = min(tn, D)
    assert D % tn == 0
    # Request only the VMEM actually needed (weight double-buffer dominates, ~16 MB at
    # tk=16384/tn=256/bf16); never reserve all 64 MiB of a v7x core.  Setting it
    # explicitly also lifts v5e's 16 MiB default scoped limit when needed.
    need = (2 * tk * tn * w.dtype.itemsize
            + 2 * max(B, 8) * tk * x.dtype.itemsize
            + 2 * max(B, 8) * tn * 4
            + 2 * tn * 4)
    return pl.pallas_call(
        functools.partial(_linear_kernel, relu=relu),
        out_shape=jax.ShapeDtypeStruct((B, D), jnp.float32),
        grid=(D // tn, K // tk),
        in_specs=[
            pl.BlockSpec((B, tk), lambda j, k: (0, k)),
            pl.BlockSpec((tk, tn), lambda j, k: (k, j)),
            pl.BlockSpec((1, tn), lambda j, k: (0, j)),
        ],
        out_specs=pl.BlockSpec((B, tn), lambda j, k: (0, j)),
        compiler_params=pltpu.CompilerParams(
            dimension_semantics=("parallel", "arbitrary"),
            vmem_limit_bytes=int(need) + (6 << 20)),
    )(x, w, b.reshape(1, D))


# ----------------------------------------------------------------------------
# Parameter init (deterministic, PyTorch-like uniform(-1/sqrt(fan_in), +)).
# fc1 weight rows follow the NHWC flatten order (fixed permutation of a fresh
# random init -> semantically equivalent) and are stored in bf16 because the
# fc1 GEMV is purely HBM-bandwidth bound.
# ----------------------------------------------------------------------------
def _init_conv(key, cin, cout):
    k1, k2 = jax.random.split(key)
    bound = 1.0 / math.sqrt(cin * 9)
    w = jax.random.uniform(k1, (3, 3, cin, cout), jnp.float32, -bound, bound)
    b = jax.random.uniform(k2, (cout,), jnp.float32, -bound, bound)
    return w, b


def _init_linear(key, din, dout):
    k1, k2 = jax.random.split(key)
    bound = 1.0 / math.sqrt(din)
    w = jax.random.uniform(k1, (din, dout), jnp.float32, -bound, bound)
    b = jax.random.uniform(k2, (dout,), jnp.float32, -bound, bound)
    return w, b


def init_params(key, spatial):
    ks = jax.random.split(key, 8)
    d_flat = 128 * (spatial // 4) * (spatial // 4) * 2
    params = {"rgb": {}, "fft": {}}
    for bi, branch in enumerate(("rgb", "fft")):
        w1, b1 = _init_conv(ks[bi * 3 + 0], 3, 32)
        w2, b2 = _init_conv(ks[bi * 3 + 1], 32, 64)
        w3, b3 = _init_conv(ks[bi * 3 + 2], 64, 128)
        params[branch] = {"w1": w1, "b1": b1, "w2": w2, "b2": b2,
                          "w3": w3, "b3": b3}
    fc1_w, fc1_b = _init_linear(ks[6], d_flat, 512)
    params["fc1_w"] = fc1_w.astype(jnp.bfloat16)      # HBM-bound GEMV: stream bf16
    params["fc1_b"] = fc1_b
    params["fc2_w"], params["fc2_b"] = _init_linear(ks[7], 512, 2)
    return params


# ----------------------------------------------------------------------------
# Forward pass (matches the PyTorch module's forward).
# ----------------------------------------------------------------------------
def cdcn_features(params, x_rgb_nchw, x_fft_nchw):
    def branch(x_nchw, p):
        x = jnp.transpose(x_nchw, (0, 2, 3, 1))          # NCHW -> NHWC
        x = conv3x3_relu(x, p["w1"], p["b1"])             # conv1 + relu
        x = conv3x3_relu_pool(x, p["w2"], p["b2"])        # conv2 + relu + pool2 (fused)
        x = conv3x3_relu_pool(x, p["w3"], p["b3"])        # conv3 + relu + pool2 (fused)
        return x.reshape(x.shape[0], -1)                  # NHWC flatten (fc1 rows match)

    return jnp.concatenate([branch(x_rgb_nchw, params["rgb"]),
                            branch(x_fft_nchw, params["fft"])], axis=1)


def cdcn_forward(params, x_rgb_nchw, x_fft_nchw):
    feat = cdcn_features(params, x_rgb_nchw, x_fft_nchw)
    h = linear(feat.astype(params["fc1_w"].dtype),        # pre-cast feat to bf16 once
               params["fc1_w"], params["fc1_b"], relu=True)
    # fc2 (512 -> 2) is tiny: a dedicated pallas_call is pure launch overhead.
    return jnp.dot(h, params["fc2_w"],
                   preferred_element_type=jnp.float32) + params["fc2_b"]


# ----------------------------------------------------------------------------
# Pure-JAX reference (identical numerics scheme: bf16 operands, f32 accumulation,
# NHWC flatten), so the kernel/reference comparison can be tight.
# ----------------------------------------------------------------------------
def _ref_features(params, x_rgb_nchw, x_fft_nchw):
    def conv(x, w, b):
        y = jax.lax.conv_general_dilated(
            x.astype(jnp.bfloat16), w.astype(jnp.bfloat16), (1, 1), "SAME",
            dimension_numbers=("NHWC", "HWIO", "NHWC"),
            preferred_element_type=jnp.float32)
        return jnp.maximum(y + b, 0.0)

    def pool(x):
        n, h, w, c = x.shape
        return jnp.max(x.reshape(n, h // 2, 2, w // 2, 2, c), axis=(2, 4))

    def branch(x_nchw, p):
        x = jnp.transpose(x_nchw, (0, 2, 3, 1))
        x = conv(x, p["w1"], p["b1"])
        x = pool(conv(x, p["w2"], p["b2"]))
        x = pool(conv(x, p["w3"], p["b3"]))
        return x.reshape(x.shape[0], -1)

    return jnp.concatenate([branch(x_rgb_nchw, params["rgb"]),
                            branch(x_fft_nchw, params["fft"])], axis=1)


def _ref_forward(params, x_rgb_nchw, x_fft_nchw):
    feat = _ref_features(params, x_rgb_nchw, x_fft_nchw)
    h = jnp.maximum(
        jnp.dot(feat.astype(params["fc1_w"].dtype), params["fc1_w"],
                preferred_element_type=jnp.float32) + params["fc1_b"], 0.0)
    return jnp.dot(h, params["fc2_w"],
                   preferred_element_type=jnp.float32) + params["fc2_b"]


if __name__ == "__main__":
    N, S = 2, 16                                          # small test: 16x16 inputs
    key = jax.random.PRNGKey(0)
    k_rgb, k_fft = jax.random.split(key)
    x_rgb = jax.random.normal(k_rgb, (N, 3, S, S), jnp.float32)
    x_fft = jax.random.normal(k_fft, (N, 3, S, S), jnp.float32)

    params = init_params(jax.random.PRNGKey(42), spatial=S)

    out = jax.block_until_ready(jax.jit(cdcn_forward)(params, x_rgb, x_fft))
    assert out.shape == (N, 2) and out.dtype == jnp.float32

    # Tight checks (the kernel and reference share the exact same bf16/f32 scheme):
    # 1) conv/pool features (f32) against the XLA conv reference,
    # 2) final logits against the full reference.
    feat = jax.block_until_ready(jax.jit(cdcn_features)(params, x_rgb, x_fft))
    ref_feat = jax.block_until_ready(jax.jit(_ref_features)(params, x_rgb, x_fft))
    feat_err = float(jnp.max(jnp.abs(feat - ref_feat)))
    assert feat_err < 3e-3, f"conv/pool feature mismatch: max |diff| = {feat_err}"

    ref_out = jax.block_until_ready(jax.jit(_ref_forward)(params, x_rgb, x_fft))
    out_err = float(jnp.max(jnp.abs(out - ref_out)))
    assert bool(jnp.allclose(out, ref_out, rtol=3e-3, atol=3e-3)), (
        f"kernel/reference output mismatch: max |diff| = {out_err}")

    print("KERNEL_OK")
</pallas_src>

<mosaic_0001>
module attributes {stable_mosaic.version = 11 : i64} {
  func.func @_conv_im2col_kernel(%arg0: i32, %arg1: i32, %arg2: memref<1x256x27xbf16, #tpu.memory_space<vmem>>, %arg3: memref<27x32xbf16, #tpu.memory_space<vmem>>, %arg4: memref<1x32xf32, #tpu.memory_space<vmem>>, %arg5: memref<1x256x32xf32, #tpu.memory_space<vmem>>) attributes {dimension_semantics = [#tpu.dimension_semantics<parallel>, #tpu.dimension_semantics<parallel>], iteration_bounds = array<i64: 2, 1>, scalar_prefetch = 0 : i64, scratch_operands = 0 : i64, tpu.core_type = #tpu.core_type<tc>, window_params = [{transform_indices = @transform_0, window_bounds = array<i64: 1, 256, 27>}, {pipeline_mode = #tpu.pipeline_mode<synchronous>, transform_indices = @transform_1, window_bounds = array<i64: 27, 32>}, {pipeline_mode = #tpu.pipeline_mode<synchronous>, transform_indices = @transform_2, window_bounds = array<i64: 1, 32>}, {transform_indices = @transform_3, window_bounds = array<i64: 1, 256, 32>}]} {
    %c0 = arith.constant 0 : index
    %c0_0 = arith.constant 0 : index
    %c0_1 = arith.constant 0 : index
    %0 = vector.load %arg2[%c0, %c0_0, %c0_1] : memref<1x256x27xbf16, #tpu.memory_space<vmem>>, vector<1x256x27xbf16>
    %1 = vector.shape_cast %0 : vector<1x256x27xbf16> to vector<256x27xbf16>
    %c0_2 = arith.constant 0 : index
    %c0_3 = arith.constant 0 : index
    %2 = vector.load %arg3[%c0_2, %c0_3] : memref<27x32xbf16, #tpu.memory_space<vmem>>, vector<27x32xbf16>
    %cst = arith.constant dense<0.000000e+00> : vector<256x32xf32>
    %3 = tpu.matmul %1, %2, %cst {dimension_numbers = #tpu.dot_dimension_numbers<[1], [0], [0], [1], [0, 0, 1, 1], [], []>} : vector<256x27xbf16>, vector<27x32xbf16>, vector<256x32xf32> -> vector<256x32xf32>
    %c0_4 = arith.constant 0 : index
    %c0_5 = arith.constant 0 : index
    %4 = vector.load %arg4[%c0_4, %c0_5] : memref<1x32xf32, #tpu.memory_space<vmem>>, vector<1x32xf32>
    %5 = vector.broadcast %4 : vector<1x32xf32> to vector<256x32xf32>
    %6 = arith.addf %3, %5 : vector<256x32xf32>
    %cst_6 = arith.constant 0.000000e+00 : f32
    %7 = vector.broadcast %cst_6 : f32 to vector<256x32xf32>
    %8 = arith.maximumf %6, %7 : vector<256x32xf32>
    %c0_7 = arith.constant 0 : index
    %c0_8 = arith.constant 0 : index
    %c0_9 = arith.constant 0 : index
    %9 = vector.load %arg5[%c0_7, %c0_8, %c0_9] : memref<1x256x32xf32, #tpu.memory_space<vmem>>, vector<1x256x32xf32>
    %10 = vector.shape_cast %9 : vector<1x256x32xf32> to vector<256x32xf32>
    %11 = vector.shape_cast %8 : vector<256x32xf32> to vector<1x256x32xf32>
    tpu.vector_store %arg5[%c0_7, %c0_8, %c0_9], %11 {strides = array<i32>} : memref<1x256x32xf32, #tpu.memory_space<vmem>>, vector<1x256x32xf32>,
    return
  }
  func.func @transform_0(%arg0: i32, %arg1: i32) -> (i32, i32, i32) {
    %c0_i32 = arith.constant 0 : i32
    %c0_i32_0 = arith.constant 0 : i32
    return %arg0, %arg1, %c0_i32 : i32, i32, i32
  }
  func.func @transform_1(%arg0: i32, %arg1: i32) -> (i32, i32) {
    %c0_i32 = arith.constant 0 : i32
    %c0_i32_0 = arith.constant 0 : i32
    %c0_i32_1 = arith.constant 0 : i32
    return %c0_i32, %c0_i32_0 : i32, i32
  }
  func.func @transform_2(%arg0: i32, %arg1: i32) -> (i32, i32) {
    %c0_i32 = arith.constant 0 : i32
    %c0_i32_0 = arith.constant 0 : i32
    %c0_i32_1 = arith.constant 0 : i32
    return %c0_i32, %c0_i32_0 : i32, i32
  }
  func.func @transform_3(%arg0: i32, %arg1: i32) -> (i32, i32, i32) {
    %c0_i32 = arith.constant 0 : i32
    %c0_i32_0 = arith.constant 0 : i32
    return %arg0, %arg1, %c0_i32 : i32, i32, i32
  }
}

module attributes {stable_mosaic.version = 11 : i64} {
  func.func @_conv_im2col_kernel(%arg0: i32, %arg1: i32, %arg2: memref<1x256x288xbf16, #tpu.memory_space<vmem>>, %arg3: memref<288x64xbf16, #tpu.memory_space<vmem>>, %arg4: memref<1x64xf32, #tpu.memory_space<vmem>>, %arg5: memref<1x64x64xf32, #tpu.memory_space<vmem>>) attributes {dimension_semantics = [#tpu.dimension_semantics<parallel>, #tpu.dimension_semantics<parallel>], iteration_bounds = array<i64: 2, 1>, scalar_prefetch = 0 : i64, scratch_operands = 0 : i64, tpu.core_type = #tpu.core_type<tc>, window_params = [{transform_indices = @transform_0, window_bounds = array<i64: 1, 256, 288>}, {pipeline_mode = #tpu.pipeline_mode<synchronous>, transform_indices = @transform_1, window_bounds = array<i64: 288, 64>}, {pipeline_mode = #tpu.pipeline_mode<synchronous>, transform_indices = @transform_2, window_bounds = array<i64: 1, 64>}, {transform_indices = @transform_3, window_bounds = array<i64: 1, 64, 64>}]} {
    %c0 = arith.constant 0 : index
    %c0_0 = arith.constant 0 : index
    %c0_1 = arith.constant 0 : index
    %0 = vector.load %arg2[%c0, %c0_0, %c0_1] : memref<1x256x288xbf16, #tpu.memory_space<vmem>>, vector<1x256x288xbf16>
    %1 = vector.shape_cast %0 : vector<1x256x288xbf16> to vector<256x288xbf16>
    %c0_2 = arith.constant 0 : index
    %c0_3 = arith.constant 0 : index
    %2 = vector.load %arg3[%c0_2, %c0_3] : memref<288x64xbf16, #tpu.memory_space<vmem>>, vector<288x64xbf16>
    %cst = arith.constant dense<0.000000e+00> : vector<256x64xf32>
    %3 = tpu.matmul %1, %2, %cst {dimension_numbers = #tpu.dot_dimension_numbers<[1], [0], [0], [1], [0, 0, 1, 1], [], []>} : vector<256x288xbf16>, vector<288x64xbf16>, vector<256x64xf32> -> vector<256x64xf32>
    %4 = vector.extract_strided_slice %3 {offsets = [0, 0], sizes = [64, 64], strides = [1, 1]} : vector<256x64xf32> to vector<64x64xf32>
    %5 = vector.extract_strided_slice %3 {offsets = [64, 0], sizes = [64, 64], strides = [1, 1]} : vector<256x64xf32> to vector<64x64xf32>
    %6 = arith.maximumf %4, %5 : vector<64x64xf32>
    %7 = vector.extract_strided_slice %3 {offsets = [128, 0], sizes = [64, 64], strides = [1, 1]} : vector<256x64xf32> to vector<64x64xf32>
    %8 = vector.extract_strided_slice %3 {offsets = [192, 0], sizes = [64, 64], strides = [1, 1]} : vector<256x64xf32> to vector<64x64xf32>
    %9 = arith.maximumf %7, %8 : vector<64x64xf32>
    %10 = arith.maximumf %6, %9 : vector<64x64xf32>
    %c0_4 = arith.constant 0 : index
    %c0_5 = arith.constant 0 : index
    %11 = vector.load %arg4[%c0_4, %c0_5] : memref<1x64xf32, #tpu.memory_space<vmem>>, vector<1x64xf32>
    %12 = vector.broadcast %11 : vector<1x64xf32> to vector<64x64xf32>
    %13 = arith.addf %10, %12 : vector<64x64xf32>
    %cst_6 = arith.constant 0.000000e+00 : f32
    %14 = vector.broadcast %cst_6 : f32 to vector<64x64xf32>
    %15 = arith.maximumf %13, %14 : vector<64x64xf32>
    %c0_7 = arith.constant 0 : index
    %c0_8 = arith.constant 0 : index
    %c0_9 = arith.constant 0 : index
    %16 = vector.load %arg5[%c0_7, %c0_8, %c0_9] : memref<1x64x64xf32, #tpu.memory_space<vmem>>, vector<1x64x64xf32>
    %17 = vector.shape_cast %16 : vector<1x64x64xf32> to vector<64x64xf32>
    %18 = vector.shape_cast %15 : vector<64x64xf32> to vector<1x64x64xf32>
    tpu.vector_store %arg5[%c0_7, %c0_8, %c0_9], %18 {strides = array<i32>} : memref<1x64x64xf32, #tpu.memory_space<vmem>>, vector<1x64x64xf32>,
    return
  }
  func.func @transform_0(%arg0: i32, %arg1: i32) -> (i32, i32, i32) {
    %c0_i32 = arith.constant 0 : i32
    %c0_i32_0 = arith.constant 0 : i32
    return %arg0, %arg1, %c0_i32 : i32, i32, i32
  }
  func.func @transform_1(%arg0: i32, %arg1: i32) -> (i32, i32) {
    %c0_i32 = arith.constant 0 : i32
    %c0_i32_0 = arith.constant 0 : i32
    %c0_i32_1 = arith.constant 0 : i32
    return %c0_i32, %c0_i32_0 : i32, i32
  }
  func.func @transform_2(%arg0: i32, %arg1: i32) -> (i32, i32) {
    %c0_i32 = arith.constant 0 : i32
    %c0_i32_0 = arith.constant 0 : i32
    %c0_i32_1 = arith.constant 0 : i32
    return %c0_i32, %c0_i32_0 : i32, i32
  }
  func.func @transform_3(%arg0: i32, %arg1: i32) -> (i32, i32, i32) {
    %c0_i32 = arith.constant 0 : i32
    %c0_i32_0 = arith.constant 0 : i32
    return %arg0, %arg1, %c0_i32 : i32, i32, i32
  }
}

module attributes {stable_mosaic.version = 11 : i64} {
  func.func @_conv_im2col_kernel(%arg0: i32, %arg1: i32, %arg2: memref<1x64x576xbf16, #tpu.memory_space<vmem>>, %arg3: memref<576x128xbf16, #tpu.memory_space<vmem>>, %arg4: memref<1x128xf32, #tpu.memory_space<vmem>>, %arg5: memref<1x16x128xf32, #tpu.memory_space<vmem>>) attributes {dimension_semantics = [#tpu.dimension_semantics<parallel>, #tpu.dimension_semantics<parallel>], iteration_bounds = array<i64: 2, 1>, scalar_prefetch = 0 : i64, scratch_operands = 0 : i64, tpu.core_type = #tpu.core_type<tc>, window_params = [{transform_indices = @transform_0, window_bounds = array<i64: 1, 64, 576>}, {pipeline_mode = #tpu.pipeline_mode<synchronous>, transform_indices = @transform_1, window_bounds = array<i64: 576, 128>}, {pipeline_mode = #tpu.pipeline_mode<synchronous>, transform_indices = @transform_2, window_bounds = array<i64: 1, 128>}, {transform_indices = @transform_3, window_bounds = array<i64: 1, 16, 128>}]} {
    %c0 = arith.constant 0 : index
    %c0_0 = arith.constant 0 : index
    %c0_1 = arith.constant 0 : index
    %0 = vector.load %arg2[%c0, %c0_0, %c0_1] : memref<1x64x576xbf16, #tpu.memory_space<vmem>>, vector<1x64x576xbf16>
    %1 = vector.shape_cast %0 : vector<1x64x576xbf16> to vector<64x576xbf16>
    %c0_2 = arith.constant 0 : index
    %c0_3 = arith.constant 0 : index
    %2 = vector.load %arg3[%c0_2, %c0_3] : memref<576x128xbf16, #tpu.memory_space<vmem>>, vector<576x128xbf16>
    %cst = arith.constant dense<0.000000e+00> : vector<64x128xf32>
    %3 = tpu.matmul %1, %2, %cst {dimension_numbers = #tpu.dot_dimension_numbers<[1], [0], [0], [1], [0, 0, 1, 1], [], []>} : vector<64x576xbf16>, vector<576x128xbf16>, vector<64x128xf32> -> vector<64x128xf32>
    %4 = vector.extract_strided_slice %3 {offsets = [0, 0], sizes = [16, 128], strides = [1, 1]} : vector<64x128xf32> to vector<16x128xf32>
    %5 = vector.extract_strided_slice %3 {offsets = [16, 0], sizes = [16, 128], strides = [1, 1]} : vector<64x128xf32> to vector<16x128xf32>
    %6 = arith.maximumf %4, %5 : vector<16x128xf32>
    %7 = vector.extract_strided_slice %3 {offsets = [32, 0], sizes = [16, 128], strides = [1, 1]} : vector<64x128xf32> to vector<16x128xf32>
    %8 = vector.extract_strided_slice %3 {offsets = [48, 0], sizes = [16, 128], strides = [1, 1]} : vector<64x128xf32> to vector<16x128xf32>
    %9 = arith.maximumf %7, %8 : vector<16x128xf32>
    %10 = arith.maximumf %6, %9 : vector<16x128xf32>
    %c0_4 = arith.constant 0 : index
    %c0_5 = arith.constant 0 : index
    %11 = vector.load %arg4[%c0_4, %c0_5] : memref<1x128xf32, #tpu.memory_space<vmem>>, vector<1x128xf32>
    %12 = vector.broadcast %11 : vector<1x128xf32> to vector<16x128xf32>
    %13 = arith.addf %10, %12 : vector<16x128xf32>
    %cst_6 = arith.constant 0.000000e+00 : f32
    %14 = vector.broadcast %cst_6 : f32 to vector<16x128xf32>
    %15 = arith.maximumf %13, %14 : vector<16x128xf32>
    %c0_7 = arith.constant 0 : index
    %c0_8 = arith.constant 0 : index
    %c0_9 = arith.constant 0 : index
    %16 = vector.load %arg5[%c0_7, %c0_8, %c0_9] : memref<1x16x128xf32, #tpu.memory_space<vmem>>, vector<1x16x128xf32>
    %17 = vector.shape_cast %16 : vector<1x16x128xf32> to vector<16x128xf32>
    %18 = vector.shape_cast %15 : vector<16x128xf32> to vector<1x16x128xf32>
    tpu.vector_store %arg5[%c0_7, %c0_8, %c0_9], %18 {strides = array<i32>} : memref<1x16x128xf32, #tpu.memory_space<vmem>>, vector<1x16x128xf32>,
    return
  }
  func.func @transform_0(%arg0: i32, %arg1: i32) -> (i32, i32, i32) {
    %c0_i32 = arith.constant 0 : i32
    %c0_i32_0 = arith.constant 0 : i32
    return %arg0, %arg1, %c0_i32 : i32, i32, i32
  }
  func.func @transform_1(%arg0: i32, %arg1: i32) -> (i32, i32) {
    %c0_i32 = arith.constant 0 : i32
    %c0_i32_0 = arith.constant 0 : i32
    %c0_i32_1 = arith.constant 0 : i32
    return %c0_i32, %c0_i32_0 : i32, i32
  }
  func.func @transform_2(%arg0: i32, %arg1: i32) -> (i32, i32) {
    %c0_i32 = arith.constant 0 : i32
    %c0_i32_0 = arith.constant 0 : i32
    %c0_i32_1 = arith.constant 0 : i32
    return %c0_i32, %c0_i32_0 : i32, i32
  }
  func.func @transform_3(%arg0: i32, %arg1: i32) -> (i32, i32, i32) {
    %c0_i32 = arith.constant 0 : i32
    %c0_i32_0 = arith.constant 0 : i32
    return %arg0, %arg1, %c0_i32 : i32, i32, i32
  }
}

module attributes {stable_mosaic.version = 11 : i64} {
  func.func @_conv_im2col_kernel(%arg0: i32, %arg1: i32, %arg2: memref<1x256x27xbf16, #tpu.memory_space<vmem>>, %arg3: memref<27x32xbf16, #tpu.memory_space<vmem>>, %arg4: memref<1x32xf32, #tpu.memory_space<vmem>>, %arg5: memref<1x256x32xf32, #tpu.memory_space<vmem>>) attributes {dimension_semantics = [#tpu.dimension_semantics<parallel>, #tpu.dimension_semantics<parallel>], iteration_bounds = array<i64: 2, 1>, scalar_prefetch = 0 : i64, scratch_operands = 0 : i64, tpu.core_type = #tpu.core_type<tc>, window_params = [{transform_indices = @transform_0, window_bounds = array<i64: 1, 256, 27>}, {pipeline_mode = #tpu.pipeline_mode<synchronous>, transform_indices = @transform_1, window_bounds = array<i64: 27, 32>}, {pipeline_mode = #tpu.pipeline_mode<synchronous>, transform_indices = @transform_2, window_bounds = array<i64: 1, 32>}, {transform_indices = @transform_3, window_bounds = array<i64: 1, 256, 32>}]} {
    %c0 = arith.constant 0 : index
    %c0_0 = arith.constant 0 : index
    %c0_1 = arith.constant 0 : index
    %0 = vector.load %arg2[%c0, %c0_0, %c0_1] : memref<1x256x27xbf16, #tpu.memory_space<vmem>>, vector<1x256x27xbf16>
    %1 = vector.shape_cast %0 : vector<1x256x27xbf16> to vector<256x27xbf16>
    %c0_2 = arith.constant 0 : index
    %c0_3 = arith.constant 0 : index
    %2 = vector.load %arg3[%c0_2, %c0_3] : memref<27x32xbf16, #tpu.memory_space<vmem>>, vector<27x32xbf16>
    %cst = arith.constant dense<0.000000e+00> : vector<256x32xf32>
    %3 = tpu.matmul %1, %2, %cst {dimension_numbers = #tpu.dot_dimension_numbers<[1], [0], [0], [1], [0, 0, 1, 1], [], []>} : vector<256x27xbf16>, vector<27x32xbf16>, vector<256x32xf32> -> vector<256x32xf32>
    %c0_4 = arith.constant 0 : index
    %c0_5 = arith.constant 0 : index
    %4 = vector.load %arg4[%c0_4, %c0_5] : memref<1x32xf32, #tpu.memory_space<vmem>>, vector<1x32xf32>
    %5 = vector.broadcast %4 : vector<1x32xf32> to vector<256x32xf32>
    %6 = arith.addf %3, %5 : vector<256x32xf32>
    %cst_6 = arith.constant 0.000000e+00 : f32
    %7 = vector.broadcast %cst_6 : f32 to vector<256x32xf32>
    %8 = arith.maximumf %6, %7 : vector<256x32xf32>
    %c0_7 = arith.constant 0 : index
    %c0_8 = arith.constant 0 : index
    %c0_9 = arith.constant 0 : index
    %9 = vector.load %arg5[%c0_7, %c0_8, %c0_9] : memref<1x256x32xf32, #tpu.memory_space<vmem>>, vector<1x256x32xf32>
    %10 = vector.shape_cast %9 : vector<1x256x32xf32> to vector<256x32xf32>
    %11 = vector.shape_cast %8 : vector<256x32xf32> to vector<1x256x32xf32>
    tpu.vector_store %arg5[%c0_7, %c0_8, %c0_9], %11 {strides = array<i32>} : memref<1x256x32xf32, #tpu.memory_space<vmem>>, vector<1x256x32xf32>,
    return
  }
  func.func @transform_0(%arg0: i32, %arg1: i32) -> (i32, i32, i32) {
    %c0_i32 = arith.constant 0 : i32
    %c0_i32_0 = arith.constant 0 : i32
    return %arg0, %arg1, %c0_i32 : i32, i32, i32
  }
  func.func @transform_1(%arg0: i32, %arg1: i32) -> (i32, i32) {
    %c0_i32 = arith.constant 0 : i32
    %c0_i32_0 = arith.constant 0 : i32
    %c0_i32_1 = arith.constant 0 : i32
    return %c0_i32, %c0_i32_0 : i32, i32
  }
  func.func @transform_2(%arg0: i32, %arg1: i32) -> (i32, i32) {
    %c0_i32 = arith.constant 0 : i32
    %c0_i32_0 = arith.constant 0 : i32
    %c0_i32_1 = arith.constant 0 : i32
    return %c0_i32, %c0_i32_0 : i32, i32
  }
  func.func @transform_3(%arg0: i32, %arg1: i32) -> (i32, i32, i32) {
    %c0_i32 = arith.constant 0 : i32
    %c0_i32_0 = arith.constant 0 : i32
    return %arg0, %arg1, %c0_i32 : i32, i32, i32
  }
}

module attributes {stable_mosaic.version = 11 : i64} {
  func.func @_linear_kernel(%arg0: i32, %arg1: i32, %arg2: memref<2x4096xbf16, #tpu.memory_space<vmem>>, %arg3: memref<4096x256xbf16, #tpu.memory_space<vmem>>, %arg4: memref<1x256xf32, #tpu.memory_space<vmem>>, %arg5: memref<2x256xf32, #tpu.memory_space<vmem>>) attributes {dimension_semantics = [#tpu.dimension_semantics<parallel>, #tpu.dimension_semantics<arbitrary>], iteration_bounds = array<i64: 2, 1>, scalar_prefetch = 0 : i64, scratch_operands = 0 : i64, tpu.core_type = #tpu.core_type<tc>, window_params = [{transform_indices = @transform_0, window_bounds = array<i64: 2, 4096>}, {transform_indices = @transform_1, window_bounds = array<i64: 4096, 256>}, {transform_indices = @transform_2, window_bounds = array<i64: 1, 256>}, {transform_indices = @transform_3, window_bounds = array<i64: 2, 256>}]} {
    %c0_i32 = arith.constant 0 : i32
    %0 = arith.cmpi eq, %arg1, %c0_i32 : i32
    %1 = arith.extui %0 : i1 to i32
    %c0_i32_0 = arith.constant 0 : i32
    %2 = arith.cmpi ne, %1, %c0_i32_0 : i32
    scf.if %2 {
      %cst_10 = arith.constant 0.000000e+00 : f32
      %12 = vector.broadcast %cst_10 : f32 to vector<2x256xf32>
      %c0_11 = arith.constant 0 : index
      %c0_12 = arith.constant 0 : index
      %13 = vector.load %arg5[%c0_11, %c0_12] : memref<2x256xf32, #tpu.memory_space<vmem>>, vector<2x256xf32>
      tpu.vector_store %arg5[%c0_11, %c0_12], %12 {strides = array<i32>} : memref<2x256xf32, #tpu.memory_space<vmem>>, vector<2x256xf32>,
    } else {
    }
    %c0 = arith.constant 0 : index
    %c0_1 = arith.constant 0 : index
    %3 = vector.load %arg5[%c0, %c0_1] : memref<2x256xf32, #tpu.memory_space<vmem>>, vector<2x256xf32>
    %c0_2 = arith.constant 0 : index
    %c0_3 = arith.constant 0 : index
    %4 = vector.load %arg2[%c0_2, %c0_3] : memref<2x4096xbf16, #tpu.memory_space<vmem>>, vector<2x4096xbf16>
    %c0_4 = arith.constant 0 : index
    %c0_5 = arith.constant 0 : index
    %5 = vector.load %arg3[%c0_4, %c0_5] : memref<4096x256xbf16, #tpu.memory_space<vmem>>, vector<4096x256xbf16>
    %cst = arith.constant dense<0.000000e+00> : vector<2x256xf32>
    %6 = tpu.matmul %4, %5, %cst {dimension_numbers = #tpu.dot_dimension_numbers<[1], [0], [0], [1], [0, 0, 1, 1], [], []>} : vector<2x4096xbf16>, vector<4096x256xbf16>, vector<2x256xf32> -> vector<2x256xf32>
    %7 = arith.addf %3, %6 : vector<2x256xf32>
    %c0_6 = arith.constant 0 : index
    %c0_7 = arith.constant 0 : index
    %8 = vector.load %arg5[%c0_6, %c0_7] : memref<2x256xf32, #tpu.memory_space<vmem>>, vector<2x256xf32>
    tpu.vector_store %arg5[%c0_6, %c0_7], %7 {strides = array<i32>} : memref<2x256xf32, #tpu.memory_space<vmem>>, vector<2x256xf32>,
    %c0_i32_8 = arith.constant 0 : i32
    %9 = arith.cmpi eq, %arg1, %c0_i32_8 : i32
    %10 = arith.extui %9 : i1 to i32
    %c0_i32_9 = arith.constant 0 : i32
    %11 = arith.cmpi ne, %10, %c0_i32_9 : i32
    scf.if %11 {
      %c0_10 = arith.constant 0 : index
      %c0_11 = arith.constant 0 : index
      %12 = vector.load %arg5[%c0_10, %c0_11] : memref<2x256xf32, #tpu.memory_space<vmem>>, vector<2x256xf32>
      %c0_12 = arith.constant 0 : index
      %c0_13 = arith.constant 0 : index
      %13 = vector.load %arg4[%c0_12, %c0_13] : memref<1x256xf32, #tpu.memory_space<vmem>>, vector<1x256xf32>
      %14 = vector.broadcast %13 : vector<1x256xf32> to vector<2x256xf32>
      %15 = arith.addf %12, %14 : vector<2x256xf32>
      %cst_14 = arith.constant 0.000000e+00 : f32
      %16 = vector.broadcast %cst_14 : f32 to vector<2x256xf32>
      %17 = arith.maximumf %15, %16 : vector<2x256xf32>
      %c0_15 = arith.constant 0 : index
      %c0_16 = arith.constant 0 : index
      %18 = vector.load %arg5[%c0_15, %c0_16] : memref<2x256xf32, #tpu.memory_space<vmem>>, vector<2x256xf32>
      tpu.vector_store %arg5[%c0_15, %c0_16], %17 {strides = array<i32>} : memref<2x256xf32, #tpu.memory_space<vmem>>, vector<2x256xf32>,
    } else {
    }
    return
  }
  func.func @transform_0(%arg0: i32, %arg1: i32) -> (i32, i32) {
    %c0_i32 = arith.constant 0 : i32
    %c0_i32_0 = arith.constant 0 : i32
    return %c0_i32, %arg1 : i32, i32
  }
  func.func @transform_1(%arg0: i32, %arg1: i32) -> (i32, i32) {
    %c0_i32 = arith.constant 0 : i32
    return %arg1, %arg0 : i32, i32
  }
  func.func @transform_2(%arg0: i32, %arg1: i32) -> (i32, i32) {
    %c0_i32 = arith.constant 0 : i32
    %c0_i32_0 = arith.constant 0 : i32
    return %c0_i32, %arg0 : i32, i32
  }
  func.func @transform_3(%arg0: i32, %arg1: i32) -> (i32, i32) {
    %c0_i32 = arith.constant 0 : i32
    %c0_i32_0 = arith.constant 0 : i32
    return %c0_i32, %arg0 : i32, i32
  }
}

</mosaic_0001>

<bundles_post_ra>
// kernel: cdcn_forward.7
= control target key start
LH: loop header
LB: loop body
LE: loop exit
PB: predicated region body
PF: predicated region fallthrough
CT: control target
= control target key end

     0   :  { %8 = vsyncpa [#allocation3], 0  ;;  %s979_s12 = smov 0   ;;  %s981_s13 = smov 0   ;;  %s1199_s0 = inlined_call_operand.vmem [shape: bf16[2,256,27], index: 0, kind: input, shape index: {}]   ;;  %s1200_s1 = inlined_call_operand.vmem [shape: bf16[27,32], index: 1, kind: input, shape index: {}]   ;;  %s1201_s2 = inlined_call_operand.hbm [shape: f32[1,32], index: 2, kind: input, shape index: {}]   ;;  %s1202_s3 = inlined_call_operand.vmem [shape: f32[2,256,32], index: 3, kind: output, shape index: {}]  }
   0x1   :  { %s983_s14 = smov 0  }
   0x2 LB: > { %s739_s15 = sadd.s32 4294967295, %s955_s14   ;;  %s26_s16 = sadd.s32 1, %s951_s13  ;;  %s955_s14 = sphi %s983_s14, %s14_s14   ;;  %s951_s13 = sphi %s981_s13, %s1212_s13   ;;  %s947_s12 = sphi %s979_s12, %s1211_s12  }
   0x3   : > { %p28_p0 = scmp.ge.s32.totalorder %s26_s16, 2  ;;  %p741_p1 = scmp.ge.s32.totalorder %s955_s14, 1 }
   0x4   : > { %p129_p2 = scmp.lt.s32.totalorder %s955_s14, 3  ;;  %p1004_p4 = scmp.eq.s32.totalorder %s739_s15, 0 }
   0x5   : > { %s1214_s16 = smov (%p28_p0, %s26_s16), 0  ;;  %s957_s19 = smov [#allocation2]  }
   0x6   : > { %p1000_p3 = pnand %p741_p1, %p129_p2  ;;  %s145_s20 = sshll.u32 %s957_s19, 4  ;;  %s146_s20 = int_to_ptr.vmem [resolvable:$true] %s145_s20 }
   0x7   : > { %s1207_s18 = scalar_select %p1004_p4, 1, 0 }
   0x8   : > { %s1206_s17 = scalar_select %p1000_p3, 1, 0 }
   0x9   : > { %p851_p5 = pneg %p1000_p3  ;;  %s901_s24 = scalar_lea.hbm %s1201_s2, 16 }
   0xa   : > { %p902_p7 = scmp.ne.s32.totalorder %s1201_s2, %s901_s24  ;;  %p908_p11 = scmp.lt.u32.totalorder %s901_s24, %s1201_s2 }
   0xb   : > { %p1012_p6 = pnand %p1004_p4, %p851_p5 }
   0xd   : > { %p903_p8 = pneg %p1012_p6 }
   0xf   : > { %p904_p9 = pnand %p903_p8, %p902_p7 }
  0x11   : > { %p905_p10 = pneg %p904_p9 }
  0x13   : > { %p910_p12 = pnand %p908_p11, %p905_p10 }
  0x15   : > { %913 = shalt.err (!%p910_p12)
}
  0x16   : > { %s914_s29 = scalar_lea.vmem %s146_s20, 16  ;;  %s921_s30 = scalar_lea.vmem %s146_s20, 32 }
  0x17   : > { %p915_p13 = scmp.ne.s32.totalorder %s146_s20, %s914_s29  ;;  %p922_p2 = scmp.lt.s32.totalorder %s146_s20, %s146_s20 }
  0x18   : > { %p923_p5 = scmp.lt.s32.totalorder %s921_s30, %s914_s29 }
  0x19   : > { %p917_p0 = pnand %p915_p13, %p903_p8 }
  0x1a   : > { %p924_p4 = por %p923_p5, %p922_p2 }
  0x1b   : > { %p918_p1 = pneg %p917_p0 }
  0x1d   : > { %p925_p3 = pnand %p924_p4, %p918_p1 }
  0x1f   : > { %928 = shalt.err (!%p925_p3)
}
  0x20   : > { %854 = dma.hbm_to_vmem [thread:$0]  (!%p1012_p6), %s1201_s2, 16, %s146_s20, [#allocation3]  }
  0x21   : > { %p1209_p7 = scmp.ne.s32.totalorder %s1206_s17, 0 }
  0x22   : > { %p1210_p9 = scmp.ne.s32.totalorder (!%p1209_p7), %s1207_s18, 0 }
  0x23   : > { %171 = sbr.rel (%p1209_p7) target bundleno = 298 (0x12a), region = 32 }
  0x2a   : > { %942 = dma.done.wait (%p1210_p9), [#allocation3], 16  }
  0x2b   : > { %944 = vsyncadd (%p1210_p9), [#allocation3], 4294967280  ;;  %p204_p8 = scmp.lt.s32.totalorder %s947_s12, 1  ;;  %vm407_vm0 = vcmask 1044480   ;;  %vm408_vm1 = vcmask 1045504   ;;  %v958_v0 = vmov 65535  }
  0x2c   : > { %v409_v1 = vsel %vm407_vm0, 4294967295, %v958_v0  ;;  %vm358_vm2 = vcmask 220160   ;;  %v883_v2 = vld [vmem:[%s1200_s1] sm:$0xff]   ;;  %v884_v4 = vld [vmem:[%s1200_s1 + $0x8] sm:$0x3f]   ;;  %vm607_vm3 = vcmask 261120  }
  0x2d   : > { %s1216_s12 = smov (!%p204_p8, %s947_s12), 1  ;;  %v410_v3 = vsel %vm408_vm1, %v409_v1, 0  ;;  %807 = vmatprep.subr.bf16.mxu0 %v883_v2  ;;  %843 = vmatprep.subr.bf16.mxu1 %v883_v2  ;;  %v1086_v22 = vld [vmem:[#allocation2] ss:$0 sm:$0xff] }
  0x2e   : > { %s787_s6 = sshll.u32 %s1216_s12, 7  ;;  %808 = vmatpush3.bf16.msra.mxu0 %v883_v2  ;;  %845 = vmatpush3.bf16.msra.mxu1 %v883_v2  ;;  %v412_v6 = vand.u32 %v884_v4, %v410_v3  ;;  %s788_s18 = sshll.u32 %s1216_s12, 8 }
  0x2f   : > { %s1046_s9 = scalar_lea.vmem %s1199_s0, %s787_s6  ;;  %s1094_s21 = scalar_lea.vmem %s1202_s3, %s788_s18 }
  0x30   : > { %v885_v5 = vld [vmem:[%s1046_s9] sm:$0xff]   ;;  %v887_v8 = vld [vmem:[%s1046_s9 + $0x8] sm:$0xff]   ;;  %809 = vmatprep.subr.bf16.mxu0 %v412_v6  ;;  %844 = vmatprep.subr.bf16.mxu1 %v412_v6  ;;  %v889_v10 = vld [vmem:[%s1046_s9 + $0x10] sm:$0xff]  }
  0x31   : > { %v886_v7 = vld [vmem:[%s1046_s9 + $0x40] sm:$0xff]   ;;  %811 = vmatprep.mubr.msk.bf16.mxu0 %vm358_vm2, %v885_v5  ;;  %v888_v9 = vld [vmem:[%s1046_s9 + $0x48] sm:$0xff]   ;;  %v890_v11 = vld [vmem:[%s1046_s9 + $0x50] sm:$0xff]  }
  0x32   : > { %827 = vmatprep.mubr.msk.bf16.mxu1 %vm358_vm2, %v886_v7  ;;  %810 = vmatpush3.bf16.msra.mxu0 %v412_v6  ;;  %v891_v12 = vld [vmem:[%s1046_s9 + $0x18] sm:$0xff]   ;;  %v893_v14 = vld [vmem:[%s1046_s9 + $0x20] sm:$0xff]   ;;  %v895_v16 = vld [vmem:[%s1046_s9 + $0x28] sm:$0xff]  }
  0x33   : > { %846 = vmatpush3.bf16.msra.mxu1 %v412_v6  ;;  %v892_v13 = vld [vmem:[%s1046_s9 + $0x58] sm:$0xff]   ;;  %v894_v15 = vld [vmem:[%s1046_s9 + $0x60] sm:$0xff]   ;;  %v896_v17 = vld [vmem:[%s1046_s9 + $0x68] sm:$0xff]  }
  0x34   : > { %v897_v18 = vld [vmem:[%s1046_s9 + $0x30] sm:$0xff]   ;;  %v899_v20 = vld [vmem:[%s1046_s9 + $0x38] sm:$0xff]  }
  0x35   : > { %812 = vmatmul.mubr.msk.bf16.vlgmr.msra.gmra.mrb[0].mxu0 %vm358_vm2, %v887_v8  ;;  %v898_v19 = vld [vmem:[%s1046_s9 + $0x70] sm:$0xff]   ;;  %v900_v21 = vld [vmem:[%s1046_s9 + $0x78] sm:$0xff]  }
  0x36   : > { %828 = vmatmul.mubr.msk.bf16.vlgmr.msra.gmra.mrb[0].mxu1 %vm358_vm2, %v888_v9  ;;  %815 = vmatprep.mubr.msk.bf16.mxu0 %vm358_vm2, %v889_v10 }
  0x37   : > { %831 = vmatprep.mubr.msk.bf16.mxu1 %vm358_vm2, %v890_v11 }
  0x3d   : > { %816 = vmatmul.mubr.msk.bf16.gmra.mrb[4].mxu0 %vm358_vm2, %v891_v12 }
  0x3e   : > { %832 = vmatmul.mubr.msk.bf16.gmra.mrb[4].mxu1 %vm358_vm2, %v892_v13  ;;  %819 = vmatprep.mubr.msk.bf16.mxu0 %vm358_vm2, %v893_v14 }
  0x3f   : > { %835 = vmatprep.mubr.msk.bf16.mxu1 %vm358_vm2, %v894_v15 }
  0x45   : > { %820 = vmatmul.mubr.msk.bf16.gmra.mrb[8].mxu0 %vm358_vm2, %v895_v16 }
  0x46   : > { %836 = vmatmul.mubr.msk.bf16.gmra.mrb[8].mxu1 %vm358_vm2, %v896_v17  ;;  %823 = vmatprep.mubr.msk.bf16.mxu0 %vm358_vm2, %v897_v18 }
  0x47   : > { %839 = vmatprep.mubr.msk.bf16.mxu1 %vm358_vm2, %v898_v19 }
  0x4d   : > { %824 = vmatmul.mubr.msk.bf16.gmra.mrb[12].mxu0 %vm358_vm2, %v899_v20 }
  0x4e   : > { %840 = vmatmul.mubr.msk.bf16.gmra.mrb[12].mxu1 %vm358_vm2, %v900_v21 }
 0x108   : > { %v813_v23 = vpop.f32.mrb[0].mxu0 }
 0x109   : > { %v829_v24 = vpop.f32.mrb[0].mxu1  ;;  %v457_v25 = vadd.f32 %v813_v23, %v1086_v22  ;;  %v448_v27 = vpop.f32.mrb[1].mxu0 }
 0x10a   : > { %v521_v26 = vadd.f32 %v829_v24, %v1086_v22  ;;  %v512_v28 = vpop.f32.mrb[1].mxu1  ;;  %v449_v29 = vadd.f32 %v1086_v22, %v448_v27  ;;  %v814_v31 = vpop.f32.mrb[2].mxu0 }
 0x10b   : > { %v513_v30 = vadd.f32 %v1086_v22, %v512_v28  ;;  %v830_v32 = vpop.f32.mrb[2].mxu1  ;;  %v577_v33 = vmax.f32 %v457_v25, 0.0  ;;  %v460_v35 = vadd.f32 %v814_v31, %v1086_v22  ;;  %v451_v37 = vpop.f32.mrb[3].mxu0 }
 0x10c   : > { %v593_v34 = vmax.f32 %v521_v26, 0.0  ;;  %v524_v36 = vadd.f32 %v830_v32, %v1086_v22  ;;  %v515_v38 = vpop.f32.mrb[3].mxu1  ;;  %v575_v39 = vmax.f32 %v449_v29, 0.0  ;;  %v452_v41 = vadd.f32 %v1086_v22, %v451_v37 }
 0x10d   : > { %v591_v40 = vmax.f32 %v513_v30, 0.0  ;;  %v516_v42 = vadd.f32 %v1086_v22, %v515_v38  ;;  %610 = vst.msk [vmem:[%s1094_s21 + $0x10] sm:$0xff] %vm607_vm3, %v577_v33  ;;  %v578_v43 = vmax.f32 %v460_v35, 0.0 }
 0x10e   : > { %626 = vst.msk [vmem:[%s1094_s21 + $0x90] sm:$0xff] %vm607_vm3, %v593_v34  ;;  %v594_v44 = vmax.f32 %v524_v36, 0.0  ;;  %608 = vst.msk [vmem:[%s1094_s21] sm:$0xff] %vm607_vm3, %v575_v39  ;;  %v576_v45 = vmax.f32 %v452_v41, 0.0 }
 0x10f   : > { %624 = vst.msk [vmem:[%s1094_s21 + $0x80] sm:$0xff] %vm607_vm3, %v591_v40  ;;  %v592_v46 = vmax.f32 %v516_v42, 0.0  ;;  %611 = vst.msk [vmem:[%s1094_s21 + $0x18] sm:$0xff] %vm607_vm3, %v578_v43 }
 0x110   : > { %627 = vst.msk [vmem:[%s1094_s21 + $0x98] sm:$0xff] %vm607_vm3, %v594_v44  ;;  %609 = vst.msk [vmem:[%s1094_s21 + $0x8] sm:$0xff] %vm607_vm3, %v576_v45  ;;  %v817_v47 = vpop.f32.mrb[4].mxu0 }
 0x111   : > { %625 = vst.msk [vmem:[%s1094_s21 + $0x88] sm:$0xff] %vm607_vm3, %v592_v46  ;;  %v833_v48 = vpop.f32.mrb[4].mxu1  ;;  %v473_v49 = vadd.f32 %v817_v47, %v1086_v22  ;;  %v464_v51 = vpop.f32.mrb[5].mxu0 }
 0x112   : > { %v537_v50 = vadd.f32 %v833_v48, %v1086_v22  ;;  %v528_v52 = vpop.f32.mrb[5].mxu1  ;;  %v465_v53 = vadd.f32 %v1086_v22, %v464_v51  ;;  %v818_v55 = vpop.f32.mrb[6].mxu0 }
 0x113   : > { %v529_v54 = vadd.f32 %v1086_v22, %v528_v52  ;;  %v834_v56 = vpop.f32.mrb[6].mxu1  ;;  %v581_v57 = vmax.f32 %v473_v49, 0.0  ;;  %v476_v59 = vadd.f32 %v818_v55, %v1086_v22  ;;  %v467_v61 = vpop.f32.mrb[7].mxu0 }
 0x114   : > { %v597_v58 = vmax.f32 %v537_v50, 0.0  ;;  %v540_v60 = vadd.f32 %v834_v56, %v1086_v22  ;;  %v531_v62 = vpop.f32.mrb[7].mxu1  ;;  %v579_v63 = vmax.f32 %v465_v53, 0.0  ;;  %v468_v1 = vadd.f32 %v1086_v22, %v467_v61 }
 0x115   : > { %v595_v0 = vmax.f32 %v529_v54, 0.0  ;;  %v532_v2 = vadd.f32 %v1086_v22, %v531_v62  ;;  %614 = vst.msk [vmem:[%s1094_s21 + $0x30] sm:$0xff] %vm607_vm3, %v581_v57  ;;  %v582_v3 = vmax.f32 %v476_v59, 0.0 }
 0x116   : > { %630 = vst.msk [vmem:[%s1094_s21 + $0xb0] sm:$0xff] %vm607_vm3, %v597_v58  ;;  %v598_v4 = vmax.f32 %v540_v60, 0.0  ;;  %612 = vst.msk [vmem:[%s1094_s21 + $0x20] sm:$0xff] %vm607_vm3, %v579_v63  ;;  %v580_v5 = vmax.f32 %v468_v1, 0.0 }
 0x117   : > { %628 = vst.msk [vmem:[%s1094_s21 + $0xa0] sm:$0xff] %vm607_vm3, %v595_v0  ;;  %v596_v6 = vmax.f32 %v532_v2, 0.0  ;;  %615 = vst.msk [vmem:[%s1094_s21 + $0x38] sm:$0xff] %vm607_vm3, %v582_v3 }
 0x118   : > { %631 = vst.msk [vmem:[%s1094_s21 + $0xb8] sm:$0xff] %vm607_vm3, %v598_v4  ;;  %613 = vst.msk [vmem:[%s1094_s21 + $0x28] sm:$0xff] %vm607_vm3, %v580_v5  ;;  %v821_v7 = vpop.f32.mrb[8].mxu0 }
 0x119   : > { %629 = vst.msk [vmem:[%s1094_s21 + $0xa8] sm:$0xff] %vm607_vm3, %v596_v6  ;;  %v837_v8 = vpop.f32.mrb[8].mxu1  ;;  %v489_v9 = vadd.f32 %v821_v7, %v1086_v22  ;;  %v480_v11 = vpop.f32.mrb[9].mxu0 }
 0x11a   : > { %v553_v10 = vadd.f32 %v837_v8, %v1086_v22  ;;  %v544_v12 = vpop.f32.mrb[9].mxu1  ;;  %v481_v13 = vadd.f32 %v1086_v22, %v480_v11  ;;  %v822_v15 = vpop.f32.mrb[10].mxu0 }
 0x11b   : > { %v545_v14 = vadd.f32 %v1086_v22, %v544_v12  ;;  %v838_v16 = vpop.f32.mrb[10].mxu1  ;;  %v585_v17 = vmax.f32 %v489_v9, 0.0  ;;  %v492_v19 = vadd.f32 %v822_v15, %v1086_v22  ;;  %v483_v21 = vpop.f32.mrb[11].mxu0 }
 0x11c   : > { %v601_v18 = vmax.f32 %v553_v10, 0.0  ;;  %v556_v20 = vadd.f32 %v838_v16, %v1086_v22  ;;  %v547_v23 = vpop.f32.mrb[11].mxu1  ;;  %v583_v24 = vmax.f32 %v481_v13, 0.0  ;;  %v484_v26 = vadd.f32 %v1086_v22, %v483_v21 }
 0x11d   : > { %v599_v25 = vmax.f32 %v545_v14, 0.0  ;;  %v548_v27 = vadd.f32 %v1086_v22, %v547_v23  ;;  %618 = vst.msk [vmem:[%s1094_s21 + $0x50] sm:$0xff] %vm607_vm3, %v585_v17  ;;  %v586_v28 = vmax.f32 %v492_v19, 0.0 }
 0x11e   : > { %634 = vst.msk [vmem:[%s1094_s21 + $0xd0] sm:$0xff] %vm607_vm3, %v601_v18  ;;  %v602_v29 = vmax.f32 %v556_v20, 0.0  ;;  %616 = vst.msk [vmem:[%s1094_s21 + $0x40] sm:$0xff] %vm607_vm3, %v583_v24  ;;  %v584_v30 = vmax.f32 %v484_v26, 0.0 }
 0x11f   : > { %632 = vst.msk [vmem:[%s1094_s21 + $0xc0] sm:$0xff] %vm607_vm3, %v599_v25  ;;  %v600_v31 = vmax.f32 %v548_v27, 0.0  ;;  %619 = vst.msk [vmem:[%s1094_s21 + $0x58] sm:$0xff] %vm607_vm3, %v586_v28 }
 0x120   : > { %635 = vst.msk [vmem:[%s1094_s21 + $0xd8] sm:$0xff] %vm607_vm3, %v602_v29  ;;  %617 = vst.msk [vmem:[%s1094_s21 + $0x48] sm:$0xff] %vm607_vm3, %v584_v30  ;;  %v825_v32 = vpop.f32.mrb[12].mxu0 }
 0x121   : > { %633 = vst.msk [vmem:[%s1094_s21 + $0xc8] sm:$0xff] %vm607_vm3, %v600_v31  ;;  %v841_v33 = vpop.f32.mrb[12].mxu1  ;;  %v505_v34 = vadd.f32 %v825_v32, %v1086_v22  ;;  %v496_v36 = vpop.f32.mrb[13].mxu0 }
 0x122   : > { %v569_v35 = vadd.f32 %v841_v33, %v1086_v22  ;;  %v560_v37 = vpop.f32.mrb[13].mxu1  ;;  %v497_v38 = vadd.f32 %v1086_v22, %v496_v36  ;;  %v826_v40 = vpop.f32.mrb[14].mxu0 }
 0x123   : > { %v561_v39 = vadd.f32 %v1086_v22, %v560_v37  ;;  %v842_v41 = vpop.f32.mrb[14].mxu1  ;;  %v589_v42 = vmax.f32 %v505_v34, 0.0  ;;  %v508_v44 = vadd.f32 %v826_v40, %v1086_v22  ;;  %v499_v46 = vpop.f32.mrb[15].mxu0 }
 0x124   : > { %v605_v43 = vmax.f32 %v569_v35, 0.0  ;;  %v572_v45 = vadd.f32 %v842_v41, %v1086_v22  ;;  %v563_v47 = vpop.f32.mrb[15].mxu1  ;;  %v587_v48 = vmax.f32 %v497_v38, 0.0  ;;  %v500_v50 = vadd.f32 %v1086_v22, %v499_v46 }
 0x125   : > { %v603_v49 = vmax.f32 %v561_v39, 0.0  ;;  %v564_v51 = vadd.f32 %v1086_v22, %v563_v47  ;;  %622 = vst.msk [vmem:[%s1094_s21 + $0x70] sm:$0xff] %vm607_vm3, %v589_v42  ;;  %v590_v52 = vmax.f32 %v508_v44, 0.0 }
 0x126   : > { %638 = vst.msk [vmem:[%s1094_s21 + $0xf0] sm:$0xff] %vm607_vm3, %v605_v43  ;;  %v606_v53 = vmax.f32 %v572_v45, 0.0  ;;  %620 = vst.msk [vmem:[%s1094_s21 + $0x60] sm:$0xff] %vm607_vm3, %v587_v48  ;;  %v588_v54 = vmax.f32 %v500_v50, 0.0 }
 0x127   : > { %636 = vst.msk [vmem:[%s1094_s21 + $0xe0] sm:$0xff] %vm607_vm3, %v603_v49  ;;  %v604_v55 = vmax.f32 %v564_v51, 0.0  ;;  %623 = vst.msk [vmem:[%s1094_s21 + $0x78] sm:$0xff] %vm607_vm3, %v590_v52 }
 0x128   : > { %639 = vst.msk [vmem:[%s1094_s21 + $0xf8] sm:$0xff] %vm607_vm3, %v606_v53  ;;  %621 = vst.msk [vmem:[%s1094_s21 + $0x68] sm:$0xff] %vm607_vm3, %v588_v54 }
 0x129   : > { %637 = vst.msk [vmem:[%s1094_s21 + $0xe8] sm:$0xff] %vm607_vm3, %v604_v55 }
 0x12a PF: > { %s14_s14 = sadd.s32 1, %s955_s14   ;;  %s1211_s12 = smov %s951_s13 }
 0x12b   : > { %p11_p3 = scmp.ge.s32.totalorder %s14_s14, 4   ;;  %s1212_s13 = smov %s1214_s16 }
 0x12d   :  { %13 = sbr.rel (!%p11_p3) target bundleno = 2 (0x2), region = 67 }
 0x134   :  { %670 = vsyncpa [#allocation3], 1 }
 0x135   :  { %672 = vsyncpa [#allocation3 + $0x1], 1 }

// kernel: cdcn_forward.8
= control target key start
LH: loop header
LB: loop body
LE: loop exit
PB: predicated region body
PF: predicated region fallthrough
CT: control target
= control target key end

     0   :  { %s1606_s12 = smov 0   ;;  %s1608_s13 = smov 0   ;;  %s1883_s0 = inlined_call_operand.vmem [shape: bf16[2,256,288], index: 0, kind: input, shape index: {}]   ;;  %s1884_s1 = inlined_call_operand.vmem [shape: bf16[288,64], index: 1, kind: input, shape index: {}]   ;;  %s1885_s2 = inlined_call_operand.vmem [shape: f32[1,64], index: 2, kind: input, shape index: {}]   ;;  %s1886_s3 = inlined_call_operand.vmem [shape: f32[2,64,64], index: 3, kind: output, shape index: {}]  }
   0x1   :  { %s1610_s14 = smov 0  }
   0x2 LB: > { %s25_s15 = sadd.s32 1, %s1580_s13  ;;  %p1183_p0 = scmp.ge.s32.totalorder %s1584_s14, 1  ;;  %s1584_s14 = sphi %s1610_s14, %s13_s14   ;;  %s1580_s13 = sphi %s1608_s13, %s1888_s13   ;;  %s1576_s12 = sphi %s1606_s12, %s1887_s12  }
   0x3   : > { %p27_p1 = scmp.ge.s32.totalorder %s25_s15, 2  ;;  %p159_p2 = scmp.lt.s32.totalorder %s1584_s14, 3 }
   0x5   : > { %s1890_s15 = smov (%p27_p1, %s25_s15), 0  ;;  %p160_p3 = pnand %p1183_p0, %p159_p2 }
   0x6   : > { %v1480_v0 = vld [vmem:[%s1884_s1 + $0x40] sm:$0xff] (!%p160_p3)   ;;  %v1482_v2 = vld [vmem:[%s1884_s1 + $0x48] sm:$0xff] (!%p160_p3)   ;;  %p193_p4 = scmp.lt.s32.totalorder (!%p160_p3), %s1576_s12, 1  ;;  %v1484_v4 = vld [vmem:[%s1884_s1 + $0x50] sm:$0xff] (!%p160_p3)   ;;  %vm662_vm0 = vcmask (!%p160_p3), 261120   ;;  %vm1080_vm1 = vcmask (!%p160_p3), 523264  }
   0x7   : > { %163 = sbr.rel (%p160_p3) target bundleno = 355 (0x163), region = 32  ;;  %v1481_v1 = vld [vmem:[%s1884_s1] sm:$0xff] (!%p160_p3)   ;;  %1273 = vmatprep.subr.bf16.mxu0 (!%p160_p3), %v1480_v0  ;;  %1439 = vmatprep.subr.bf16.mxu1 (!%p160_p3), %v1480_v0  ;;  %v1483_v3 = vld [vmem:[%s1884_s1 + $0x8] sm:$0xff] (!%p160_p3)   ;;  %v1485_v5 = vld [vmem:[%s1884_s1 + $0x10] sm:$0xff] (!%p160_p3)  }
   0x8   : > { %1274 = vmatpush3.bf16.msra.mxu0 (!%p160_p3), %v1481_v1  ;;  %1447 = vmatpush3.bf16.msra.mxu1 (!%p160_p3), %v1481_v1  ;;  %v1486_v6 = vld [vmem:[%s1884_s1 + $0x58] sm:$0xff] (!%p160_p3)   ;;  %v1488_v8 = vld [vmem:[%s1884_s1 + $0x60] sm:$0xff] (!%p160_p3)   ;;  %v1490_v10 = vld [vmem:[%s1884_s1 + $0x68] sm:$0xff] (!%p160_p3)  }
   0x9   : > { %1275 = vmatprep.subr.bf16.mxu0 (!%p160_p3), %v1482_v2  ;;  %1440 = vmatprep.subr.bf16.mxu1 (!%p160_p3), %v1482_v2  ;;  %v1487_v7 = vld [vmem:[%s1884_s1 + $0x18] sm:$0xff] (!%p160_p3)   ;;  %v1489_v9 = vld [vmem:[%s1884_s1 + $0x20] sm:$0xff] (!%p160_p3)   ;;  %v1491_v13 = vld [vmem:[%s1884_s1 + $0x28] sm:$0xff] (!%p160_p3)  }
   0xa   : > { %v1492_v14 = vld [vmem:[%s1884_s1 + $0x70] sm:$0xff] (!%p160_p3)   ;;  %v1494_v16 = vld [vmem:[%s1884_s1 + $0x78] sm:$0xff] (!%p160_p3)   ;;  %v1502_v18 = vld [vmem:[%s1884_s1 + $0x80] sm:$0xff] (!%p160_p3)  }
   0xb   : > { %v1493_v15 = vld [vmem:[%s1884_s1 + $0x30] sm:$0xff] (!%p160_p3)   ;;  %v1495_v17 = vld [vmem:[%s1884_s1 + $0x38] sm:$0xff] (!%p160_p3)   ;;  %v1515_v23 = vld [vmem:[%s1884_s1 + $0x88] sm:$0xff] (!%p160_p3)  }
   0xc   : > { %1276 = vmatpush3.bf16.msra.mxu0 (!%p160_p3), %v1483_v3  ;;  %1448 = vmatpush3.bf16.msra.mxu1 (!%p160_p3), %v1483_v3 }
   0xd   : > { %1277 = vmatprep.subr.bf16.mxu0 (!%p160_p3), %v1484_v4  ;;  %1441 = vmatprep.subr.bf16.mxu1 (!%p160_p3), %v1484_v4 }
   0xe   : > { %s1892_s12 = smov (!%p193_p4, %s1576_s12), 1 }
   0xf   : > { %s1455_s30 = smul.u32 384, %s1892_s12  ;;  %s1272_s8 = sshll.u32 %s1892_s12, 6 }
  0x10   : > { %1278 = vmatpush3.bf16.msra.mxu0 %v1485_v5  ;;  %1449 = vmatpush3.bf16.msra.mxu1 %v1485_v5  ;;  %s1836_s12 = scalar_lea.vmem %s1886_s3, %s1272_s8 }
  0x11   : > { %1279 = vmatprep.subr.bf16.mxu0 %v1486_v6  ;;  %1442 = vmatprep.subr.bf16.mxu1 %v1486_v6  ;;  %s1657_s10 = scalar_lea.vmem %s1883_s0, %s1455_s30 }
  0x12   : > { %v1498_v11 = vld [vmem:[%s1657_s10 + $0x4] ss:$12 sps:$4 sm:$0xff]   ;;  %v1496_v19 = vld [vmem:[%s1657_s10] ss:$12 sps:$4 sm:$0xff]   ;;  %v1503_v21 = vld [vmem:[%s1657_s10 + $0x1c] ss:$12 sps:$4 sm:$0xff]  }
  0x13   : > { %v1501_v12 = vld [vmem:[%s1657_s10 + $0x124] ss:$12 sps:$4 sm:$0xff]   ;;  %743 = vmatprep.mubr.bf16.mxu0 %v1498_v11  ;;  %v1499_v20 = vld [vmem:[%s1657_s10 + $0x120] ss:$12 sps:$4 sm:$0xff]   ;;  %v1505_v22 = vld [vmem:[%s1657_s10 + $0x13c] ss:$12 sps:$4 sm:$0xff]  }
  0x14   : > { %1280 = vmatpush3.bf16.msra.mxu0 %v1487_v7  ;;  %1450 = vmatpush3.bf16.msra.mxu1 %v1487_v7  ;;  %v1507_v24 = vld [vmem:[%s1657_s10 + $0x18] ss:$12 sps:$4 sm:$0xff]   ;;  %v1509_v26 = vld [vmem:[%s1657_s10 + $0x34] ss:$12 sps:$4 sm:$0xff]   ;;  %v1513_v28 = vld [vmem:[%s1657_s10 + $0x30] ss:$12 sps:$4 sm:$0xff]  }
  0x15   : > { %1281 = vmatprep.subr.bf16.mxu0 %v1488_v8  ;;  %1443 = vmatprep.subr.bf16.mxu1 %v1488_v8  ;;  %v1508_v25 = vld [vmem:[%s1657_s10 + $0x138] ss:$12 sps:$4 sm:$0xff]   ;;  %v1511_v27 = vld [vmem:[%s1657_s10 + $0x154] ss:$12 sps:$4 sm:$0xff]   ;;  %v1514_v29 = vld [vmem:[%s1657_s10 + $0x150] ss:$12 sps:$4 sm:$0xff]  }
  0x16   : > { %839 = vmatprep.mubr.bf16.mxu1 %v1501_v12  ;;  %v1516_v30 = vld [vmem:[%s1657_s10 + $0x4c] ss:$12 sps:$4 sm:$0xff]   ;;  %v1520_v32 = vld [vmem:[%s1657_s10 + $0x48] ss:$12 sps:$4 sm:$0xff]   ;;  %v1522_v34 = vld [vmem:[%s1657_s10 + $0x64] ss:$12 sps:$4 sm:$0xff]  }
  0x17   : > { %v1518_v31 = vld [vmem:[%s1657_s10 + $0x16c] ss:$12 sps:$4 sm:$0xff]   ;;  %v1521_v33 = vld [vmem:[%s1657_s10 + $0x168] ss:$12 sps:$4 sm:$0xff]   ;;  %v1531_v41 = vld [vmem:[%s1657_s10 + $0x50] ss:$12 sps:$4 sm:$0xff]  }
  0x18   : > { %1282 = vmatpush3.bf16.msra.mxu0 %v1489_v9  ;;  %1451 = vmatpush3.bf16.msra.mxu1 %v1489_v9  ;;  %v1524_v35 = vld [vmem:[%s1657_s10 + $0x8] ss:$12 sps:$4 sm:$0xff]   ;;  %v1525_v36 = vld [vmem:[%s1657_s10 + $0x60] ss:$12 sps:$4 sm:$0xff]   ;;  %v1529_v39 = vld [vmem:[%s1657_s10 + $0x38] ss:$12 sps:$4 sm:$0xff]  }
  0x19   : > { %1283 = vmatprep.subr.bf16.mxu0 %v1490_v10  ;;  %1444 = vmatprep.subr.bf16.mxu1 %v1490_v10  ;;  %v1526_v37 = vld [vmem:[%s1657_s10 + $0x20] ss:$12 sps:$4 sm:$0xff]   ;;  %v1527_v38 = vld [vmem:[%s1657_s10 + $0x7c] ss:$12 sps:$4 sm:$0xff]   ;;  %v1530_v40 = vld [vmem:[%s1657_s10 + $0x78] ss:$12 sps:$4 sm:$0xff]  }
  0x1a   : > { %v1532_v42 = vld [vmem:[%s1657_s10 + $0x94] ss:$12 sps:$4 sm:$0xff]   ;;  %v1535_v44 = vld [vmem:[%s1657_s10 + $0x90] ss:$12 sps:$4 sm:$0xff]   ;;  %v1537_v46 = vld [vmem:[%s1657_s10 + $0xac] ss:$12 sps:$4 sm:$0xff]  }
  0x1b   : > { %v1534_v43 = vld [vmem:[%s1657_s10 + $0x68] ss:$12 sps:$4 sm:$0xff]   ;;  %v1536_v45 = vld [vmem:[%s1657_s10 + $0x80] ss:$12 sps:$4 sm:$0xff]   ;;  %v1539_v47 = vld [vmem:[%s1657_s10 + $0x98] ss:$12 sps:$4 sm:$0xff]  }
  0x1c   : > { %1284 = vmatpush3.bf16.msra.mxu0 %v1491_v13  ;;  %1452 = vmatpush3.bf16.msra.mxu1 %v1491_v13  ;;  %v1540_v48 = vld [vmem:[%s1657_s10 + $0xa8] ss:$12 sps:$4 sm:$0xff]   ;;  %v1541_v49 = vld [vmem:[%s1657_s10 + $0xb0] ss:$12 sps:$4 sm:$0xff]   ;;  %v1545_v52 = vld [vmem:[%s1657_s10 + $0xc0] ss:$12 sps:$4 sm:$0xff]  }
  0x1d   : > { %1285 = vmatprep.subr.bf16.mxu0 %v1492_v14  ;;  %1445 = vmatprep.subr.bf16.mxu1 %v1492_v14  ;;  %v1542_v50 = vld [vmem:[%s1657_s10 + $0xc4] ss:$12 sps:$4 sm:$0xff]   ;;  %v1544_v51 = vld [vmem:[%s1657_s10 + $0xc8] ss:$12 sps:$4 sm:$0xff]   ;;  %v1546_v53 = vld [vmem:[%s1657_s10 + $0xe0] ss:$12 sps:$4 sm:$0xff]  }
  0x1e   : > { %v1547_v54 = vld [vmem:[%s1657_s10 + $0xdc] ss:$12 sps:$4 sm:$0xff]   ;;  %v1549_v55 = vld [vmem:[%s1657_s10 + $0xf8] ss:$12 sps:$4 sm:$0xff]   ;;  %v1552_v58 = vld [vmem:[%s1657_s10 + $0xf4] ss:$12 sps:$4 sm:$0xff]  }
  0x1f   : > { %v1550_v56 = vld [vmem:[%s1657_s10 + $0xd8] ss:$12 sps:$4 sm:$0xff]   ;;  %v1551_v57 = vld [vmem:[%s1657_s10 + $0x110] ss:$12 sps:$4 sm:$0xff]   ;;  %v1554_v59 = vld [vmem:[%s1657_s10 + $0x128] ss:$12 sps:$4 sm:$0xff]  }
  0x20   : > { %1286 = vmatpush3.bf16.msra.mxu0 %v1493_v15  ;;  %1453 = vmatpush3.bf16.msra.mxu1 %v1493_v15  ;;  %v1555_v60 = vld [vmem:[%s1657_s10 + $0xf0] ss:$12 sps:$4 sm:$0xff]   ;;  %v1556_v61 = vld [vmem:[%s1657_s10 + $0x140] ss:$12 sps:$4 sm:$0xff]   ;;  %v1559_v63 = vld [vmem:[%s1657_s10 + $0x158] ss:$12 sps:$4 sm:$0xff]  }
  0x21   : > { %1287 = vmatprep.subr.bf16.mxu0 %v1494_v16  ;;  %1446 = vmatprep.subr.bf16.mxu1 %v1494_v16  ;;  %v1557_v62 = vld [vmem:[%s1657_s10 + $0x10c] ss:$12 sps:$4 sm:$0xff]   ;;  %v1560_v0 = vld [vmem:[%s1657_s10 + $0x108] ss:$12 sps:$4 sm:$0xff]   ;;  %v1561_v1 = vld [vmem:[%s1657_s10 + $0x170] ss:$12 sps:$4 sm:$0xff]  }
  0x24   : > { %1288 = vmatpush3.bf16.msra.mxu0 %v1495_v17  ;;  %1454 = vmatpush3.bf16.msra.mxu1 %v1495_v17 }
  0x25   : > { %1403 = vmatprep.subr.bf16.mxu1 %v1502_v18 }
  0x27   : > { %744 = vmatmul.mubr.bf16.vlgmr.msra.gmra.mrb[0].mxu0 %v1496_v19  ;;  %840 = vmatmul.mubr.bf16.vlgmr.msra.gmra.mrb[0].mxu1 %v1499_v20 }
  0x28   : > { %1404 = vmatpush3.bf16.msra.mxu1 %v1502_v18  ;;  %751 = vmatprep.mubr.bf16.mxu0 %v1503_v21 }
  0x29   : > { %847 = vmatprep.mubr.bf16.mxu1 %v1505_v22  ;;  %1405 = vmatprep.subr.bf16.mxu1 %v1515_v23 }
  0x2c   : > { %1406 = vmatpush3.bf16.msra.mxu1 %v1515_v23 }
  0x2f   : > { %752 = vmatmul.mubr.bf16.gmra.mrb[4].mxu0 %v1507_v24  ;;  %848 = vmatmul.mubr.bf16.gmra.mrb[4].mxu1 %v1508_v25 }
  0x30   : > { %759 = vmatprep.mubr.bf16.mxu0 %v1509_v26  ;;  %855 = vmatprep.mubr.bf16.mxu1 %v1511_v27 }
  0x37   : > { %760 = vmatmul.mubr.bf16.gmra.mrb[8].mxu0 %v1513_v28  ;;  %856 = vmatmul.mubr.bf16.gmra.mrb[8].mxu1 %v1514_v29 }
  0x38   : > { %767 = vmatprep.mubr.bf16.mxu0 %v1516_v30  ;;  %863 = vmatprep.mubr.bf16.mxu1 %v1518_v31 }
  0x3f   : > { %768 = vmatmul.mubr.bf16.gmra.mrb[12].mxu0 %v1520_v32  ;;  %864 = vmatmul.mubr.bf16.gmra.mrb[12].mxu1 %v1521_v33 }
  0x40   : > { %775 = vmatprep.mubr.bf16.mxu0 %v1522_v34  ;;  %1407 = vmatprep.mubr.msk.bf16.mxu1 %vm662_vm0, %v1524_v35 }
  0x47   : > { %776 = vmatmul.mubr.bf16.gmra.mrb[16].mxu0 %v1525_v36  ;;  %1408 = vmatmul.mubr.msk.bf16.vlgmr.msra.gmra.mrb[16].mxu1 %vm662_vm0, %v1526_v37 }
  0x48   : > { %783 = vmatprep.mubr.bf16.mxu0 %v1527_v38  ;;  %1411 = vmatprep.mubr.msk.bf16.mxu1 %vm662_vm0, %v1529_v39 }
  0x4f   : > { %784 = vmatmul.mubr.bf16.gmra.mrb[20].mxu0 %v1530_v40  ;;  %1412 = vmatmul.mubr.msk.bf16.gmra.mrb[20].mxu1 %vm662_vm0, %v1531_v41 }
  0x50   : > { %791 = vmatprep.mubr.bf16.mxu0 %v1532_v42  ;;  %1415 = vmatprep.mubr.msk.bf16.mxu1 %vm662_vm0, %v1534_v43 }
  0x57   : > { %792 = vmatmul.mubr.bf16.gmra.mrb[24].mxu0 %v1535_v44  ;;  %1416 = vmatmul.mubr.msk.bf16.gmra.mrb[24].mxu1 %vm662_vm0, %v1536_v45 }
  0x58   : > { %799 = vmatprep.mubr.bf16.mxu0 %v1537_v46  ;;  %1419 = vmatprep.mubr.msk.bf16.mxu1 %vm662_vm0, %v1539_v47 }
  0x5f   : > { %800 = vmatmul.mubr.bf16.gmra.mrb[28].mxu0 %v1540_v48  ;;  %1420 = vmatmul.mubr.msk.bf16.gmra.mrb[28].mxu1 %vm662_vm0, %v1541_v49 }
  0x60   : > { %807 = vmatprep.mubr.bf16.mxu0 %v1542_v50  ;;  %1423 = vmatprep.mubr.msk.bf16.mxu1 %vm662_vm0, %v1544_v51 }
  0x67   : > { %808 = vmatmul.mubr.bf16.gmra.mrb[32].mxu0 %v1545_v52  ;;  %1424 = vmatmul.mubr.msk.bf16.gmra.mrb[32].mxu1 %vm662_vm0, %v1546_v53 }
  0x68   : > { %815 = vmatprep.mubr.bf16.mxu0 %v1547_v54  ;;  %1427 = vmatprep.mubr.msk.bf16.mxu1 %vm662_vm0, %v1549_v55 }
  0x6f   : > { %816 = vmatmul.mubr.bf16.gmra.mrb[36].mxu0 %v1550_v56  ;;  %1428 = vmatmul.mubr.msk.bf16.gmra.mrb[36].mxu1 %vm662_vm0, %v1551_v57 }
  0x70   : > { %823 = vmatprep.mubr.bf16.mxu0 %v1552_v58  ;;  %1431 = vmatprep.mubr.msk.bf16.mxu1 %vm662_vm0, %v1554_v59 }
  0x77   : > { %824 = vmatmul.mubr.bf16.gmra.mrb[40].mxu0 %v1555_v60  ;;  %1432 = vmatmul.mubr.msk.bf16.gmra.mrb[40].mxu1 %vm662_vm0, %v1556_v61 }
  0x78   : > { %831 = vmatprep.mubr.bf16.mxu0 %v1557_v62  ;;  %1435 = vmatprep.mubr.msk.bf16.mxu1 %vm662_vm0, %v1559_v63 }
  0x7f   : > { %832 = vmatmul.mubr.bf16.gmra.mrb[44].mxu0 %v1560_v0  ;;  %1436 = vmatmul.mubr.msk.bf16.gmra.mrb[44].mxu1 %vm662_vm0, %v1561_v1 }
  0xfa   : > { %v1289_v2 = vpop.f32.mrb[0].mxu0  ;;  %v1361_v3 = vpop.f32.mrb[0].mxu1 }
  0xfb   : > { %v1290_v4 = vpop.f32.mrb[1].mxu0  ;;  %v1362_v5 = vpop.f32.mrb[1].mxu1 }
  0xfc   : > { %v1291_v6 = vadd.f32 %v1290_v4, %v1289_v2  ;;  %v1750_v7 = vadd.f32 %v1362_v5, %v1361_v3  ;;  %v1292_v8 = vpop.f32.mrb[2].mxu0  ;;  %v1364_v9 = vpop.f32.mrb[2].mxu1 }
  0xfd   : > { %v1293_v10 = vpop.f32.mrb[3].mxu0  ;;  %v1365_v11 = vpop.f32.mrb[3].mxu1 }
  0xfe   : > { %v1294_v12 = vadd.f32 %v1293_v10, %v1292_v8  ;;  %v1752_v13 = vadd.f32 %v1365_v11, %v1364_v9 }
 0x102   : > { %v1295_v14 = vpop.f32.mrb[4].mxu0  ;;  %v1367_v15 = vpop.f32.mrb[4].mxu1 }
 0x103   : > { %v1296_v16 = vpop.f32.mrb[5].mxu0  ;;  %v1368_v17 = vpop.f32.mrb[5].mxu1 }
 0x104   : > { %v1297_v18 = vadd.f32 %v1296_v16, %v1295_v14  ;;  %v1754_v19 = vadd.f32 %v1368_v17, %v1367_v15  ;;  %v1298_v20 = vpop.f32.mrb[6].mxu0  ;;  %v1370_v21 = vpop.f32.mrb[6].mxu1 }
 0x105   : > { %v1299_v22 = vpop.f32.mrb[7].mxu0  ;;  %v1371_v23 = vpop.f32.mrb[7].mxu1 }
 0x106   : > { %v1300_v24 = vadd.f32 %v1299_v22, %v1298_v20  ;;  %v1756_v25 = vadd.f32 %v1371_v23, %v1370_v21 }
 0x10a   : > { %v1301_v26 = vpop.f32.mrb[8].mxu0  ;;  %v1373_v27 = vpop.f32.mrb[8].mxu1 }
 0x10b   : > { %v1302_v28 = vpop.f32.mrb[9].mxu0  ;;  %v1374_v29 = vpop.f32.mrb[9].mxu1 }
 0x10c   : > { %v1303_v30 = vadd.f32 %v1302_v28, %v1301_v26  ;;  %v1758_v31 = vadd.f32 %v1374_v29, %v1373_v27  ;;  %v1304_v32 = vpop.f32.mrb[10].mxu0  ;;  %v1376_v33 = vpop.f32.mrb[10].mxu1 }
 0x10d   : > { %v1305_v34 = vpop.f32.mrb[11].mxu0  ;;  %v1377_v35 = vpop.f32.mrb[11].mxu1 }
 0x10e   : > { %v1306_v36 = vadd.f32 %v1305_v34, %v1304_v32  ;;  %v1760_v37 = vadd.f32 %v1377_v35, %v1376_v33 }
 0x112   : > { %v1307_v38 = vpop.f32.mrb[12].mxu0  ;;  %v1379_v39 = vpop.f32.mrb[12].mxu1 }
 0x113   : > { %v1308_v40 = vpop.f32.mrb[13].mxu0  ;;  %v1380_v41 = vpop.f32.mrb[13].mxu1 }
 0x114   : > { %v1309_v42 = vadd.f32 %v1308_v40, %v1307_v38  ;;  %v1762_v43 = vadd.f32 %v1380_v41, %v1379_v39  ;;  %v1310_v44 = vpop.f32.mrb[14].mxu0  ;;  %v1382_v45 = vpop.f32.mrb[14].mxu1 }
 0x115   : > { %v1311_v46 = vpop.f32.mrb[15].mxu0  ;;  %v1383_v47 = vpop.f32.mrb[15].mxu1 }
 0x116   : > { %v1312_v48 = vadd.f32 %v1311_v46, %v1310_v44  ;;  %v1764_v49 = vadd.f32 %v1383_v47, %v1382_v45 }
 0x11a   : > { %v1313_v50 = vpop.f32.mrb[16].mxu0  ;;  %v1409_v51 = vpop.f32.mrb[16].mxu1 }
 0x11b   : > { %v1766_v52 = vadd.f32 %v1409_v51, %v1297_v18  ;;  %v1314_v53 = vpop.f32.mrb[17].mxu0  ;;  %v906_v54 = vpop.f32.mrb[17].mxu1 }
 0x11c   : > { %v1315_v55 = vadd.f32 %v1314_v53, %v1313_v50  ;;  %v1768_v56 = vadd.f32 %v1291_v6, %v906_v54  ;;  %v1316_v57 = vpop.f32.mrb[18].mxu0  ;;  %v1410_v58 = vpop.f32.mrb[18].mxu1 }
 0x11d   : > { %v1770_v59 = vadd.f32 %v1410_v58, %v1300_v24  ;;  %v1317_v60 = vpop.f32.mrb[19].mxu0  ;;  %v909_v61 = vpop.f32.mrb[19].mxu1 }
 0x11e   : > { %v1318_v62 = vadd.f32 %v1317_v60, %v1316_v57  ;;  %v1772_v63 = vadd.f32 %v1294_v12, %v909_v61 }
 0x122   : > { %v1319_v0 = vpop.f32.mrb[20].mxu0  ;;  %v1413_v1 = vpop.f32.mrb[20].mxu1 }
 0x123   : > { %v1774_v2 = vadd.f32 %v1413_v1, %v1309_v42  ;;  %v1320_v3 = vpop.f32.mrb[21].mxu0  ;;  %v922_v4 = vpop.f32.mrb[21].mxu1 }
 0x124   : > { %v1321_v5 = vadd.f32 %v1320_v3, %v1319_v0  ;;  %v1776_v8 = vadd.f32 %v1303_v30, %v922_v4  ;;  %v1322_v6 = vpop.f32.mrb[22].mxu0  ;;  %v1414_v9 = vpop.f32.mrb[22].mxu1 }
 0x125   : > { %v1778_v10 = vadd.f32 %v1414_v9, %v1312_v48  ;;  %v1323_v11 = vpop.f32.mrb[23].mxu0  ;;  %v925_v14 = vpop.f32.mrb[23].mxu1 }
 0x126   : > { %v1324_v15 = vadd.f32 %v1323_v11, %v1322_v6  ;;  %v1780_v16 = vadd.f32 %v1306_v36, %v925_v14 }
 0x12a   : > { %v1325_v12 = vpop.f32.mrb[24].mxu0  ;;  %v1417_v17 = vpop.f32.mrb[24].mxu1 }
 0x12b   : > { %v1782_v18 = vadd.f32 %v1417_v17, %v1321_v5  ;;  %v1326_v20 = vpop.f32.mrb[25].mxu0  ;;  %v938_v21 = vpop.f32.mrb[25].mxu1 }
 0x12c   : > { %v1327_v22 = vadd.f32 %v1326_v20, %v1325_v12  ;;  %v1784_v23 = vadd.f32 %v1315_v55, %v938_v21  ;;  %v1328_v24 = vpop.f32.mrb[26].mxu0  ;;  %v1418_v26 = vpop.f32.mrb[26].mxu1 }
 0x12d   : > { %v1035_v27 = vmax.f32 %v1766_v52, %v1782_v18  ;;  %v1788_v28 = vadd.f32 %v1418_v26, %v1324_v15  ;;  %v1329_v29 = vpop.f32.mrb[27].mxu0  ;;  %v941_v30 = vpop.f32.mrb[27].mxu1 }
 0x12e   : > { %v1033_v32 = vmax.f32 %v1768_v56, %v1784_v23  ;;  %v1330_v33 = vadd.f32 %v1329_v29, %v1328_v24  ;;  %v1792_v34 = vadd.f32 %v1318_v62, %v941_v30 }
 0x12f   : > { %v1036_v35 = vmax.f32 %v1770_v59, %v1788_v28 }
 0x130   : > { %v1034_v36 = vmax.f32 %v1772_v63, %v1792_v34 }
 0x132   : > { %v1331_v38 = vpop.f32.mrb[28].mxu0  ;;  %v1421_v39 = vpop.f32.mrb[28].mxu1 }
 0x133   : > { %v1332_v40 = vpop.f32.mrb[29].mxu0  ;;  %v954_v41 = vpop.f32.mrb[29].mxu1 }
 0x134   : > { %v1333_v42 = vadd.f32 %v1332_v40, %v1331_v38  ;;  %v1798_v44 = vadd.f32 %v1327_v22, %v954_v41  ;;  %v1334_v45 = vpop.f32.mrb[30].mxu0  ;;  %v1422_v46 = vpop.f32.mrb[30].mxu1 }
 0x135   : > { %v1335_v47 = vpop.f32.mrb[31].mxu0  ;;  %v957_v48 = vpop.f32.mrb[31].mxu1 }
 0x136   : > { %v1800_v50 = vadd.f32 %v1421_v39, %v1333_v42  ;;  %v1037_v51 = vmax.f32 %v1776_v8, %v1798_v44  ;;  %v1336_v53 = vadd.f32 %v1335_v47, %v1334_v45  ;;  %v1804_v54 = vadd.f32 %v1330_v33, %v957_v48 }
 0x138   : > { %v1039_v55 = vmax.f32 %v1774_v2, %v1800_v50  ;;  %v1808_v57 = vadd.f32 %v1422_v46, %v1336_v53  ;;  %v1038_v58 = vmax.f32 %v1780_v16, %v1804_v54 }
 0x13a   : > { %v1040_v60 = vmax.f32 %v1778_v10, %v1808_v57  ;;  %v1337_v61 = vpop.f32.mrb[32].mxu0  ;;  %v1425_v62 = vpop.f32.mrb[32].mxu1 }
 0x13b   : > { %v1338_v0 = vpop.f32.mrb[33].mxu0  ;;  %v970_v1 = vpop.f32.mrb[33].mxu1 }
 0x13c   : > { %v1339_v3 = vadd.f32 %v1338_v0, %v1337_v61  ;;  %v1340_v4 = vpop.f32.mrb[34].mxu0  ;;  %v1426_v5 = vpop.f32.mrb[34].mxu1 }
 0x13d   : > { %v1341_v6 = vpop.f32.mrb[35].mxu0  ;;  %v973_v9 = vpop.f32.mrb[35].mxu1 }
 0x13e   : > { %v971_v11 = vadd.f32 %v1339_v3, %v970_v1  ;;  %v1342_v14 = vadd.f32 %v1341_v6, %v1340_v4 }
 0x140   : > { %v974_v15 = vadd.f32 %v1342_v14, %v973_v9 }
 0x142   : > { %v1343_v12 = vpop.f32.mrb[36].mxu0  ;;  %v1429_v17 = vpop.f32.mrb[36].mxu1 }
 0x143   : > { %v1344_v20 = vpop.f32.mrb[37].mxu0  ;;  %v986_v21 = vpop.f32.mrb[37].mxu1 }
 0x144   : > { %v1345_v22 = vadd.f32 %v1344_v20, %v1343_v12  ;;  %v1346_v24 = vpop.f32.mrb[38].mxu0  ;;  %v1814_v26 = vpop.f32.mrb[38].mxu1 }
 0x145   : > { %v1347_v29 = vpop.f32.mrb[39].mxu0  ;;  %v989_v30 = vpop.f32.mrb[39].mxu1 }
 0x146   : > { %v979_v33 = vadd.f32 %v1425_v62, %v1345_v22  ;;  %v1348_v38 = vadd.f32 %v1347_v29, %v1346_v24  ;;  %v1269_v62 = vld [vmem:[%s1885_s2] ss:$0 sm:$0xff] }
 0x148   : > { %v982_v39 = vadd.f32 %v1426_v5, %v1348_v38 }
 0x14a   : > { %v1349_v40 = vpop.f32.mrb[40].mxu0  ;;  %v1433_v41 = vpop.f32.mrb[40].mxu1 }
 0x14b   : > { %v1011_v42 = vadd.f32 %v1433_v41, %v1754_v19  ;;  %v1350_v45 = vpop.f32.mrb[41].mxu0  ;;  %v1002_v46 = vpop.f32.mrb[41].mxu1 }
 0x14c   : > { %v1351_v47 = vadd.f32 %v1350_v45, %v1349_v40  ;;  %v1003_v48 = vadd.f32 %v1750_v7, %v1002_v46  ;;  %v1352_v53 = vpop.f32.mrb[42].mxu0  ;;  %v1434_v61 = vpop.f32.mrb[42].mxu1 }
 0x14d   : > { %v1043_v0 = vmax.f32 %v979_v33, %v1011_v42  ;;  %v1014_v1 = vadd.f32 %v1434_v61, %v1756_v25  ;;  %v1353_v3 = vpop.f32.mrb[43].mxu0  ;;  %v1005_v4 = vpop.f32.mrb[43].mxu1 }
 0x14e   : > { %v987_v5 = vadd.f32 %v1351_v47, %v986_v21  ;;  %v1041_v6 = vmax.f32 %v971_v11, %v1003_v48  ;;  %v1354_v19 = vadd.f32 %v1353_v3, %v1352_v53  ;;  %v1006_v9 = vadd.f32 %v1752_v13, %v1005_v4 }
 0x14f   : > { %v1051_v7 = vmax.f32 %v1035_v27, %v1043_v0  ;;  %v1044_v14 = vmax.f32 %v982_v39, %v1014_v1 }
 0x150   : > { %v1049_v25 = vmax.f32 %v1033_v32, %v1041_v6  ;;  %v990_v12 = vadd.f32 %v1354_v19, %v989_v30  ;;  %v1042_v20 = vmax.f32 %v974_v15, %v1006_v9 }
 0x151   : > { %v1066_v22 = vadd.f32 %v1269_v62, %v1051_v7  ;;  %v1052_v11 = vmax.f32 %v1036_v35, %v1044_v14 }
 0x152   : > { %v1064_v13 = vadd.f32 %v1269_v62, %v1049_v25  ;;  %v1050_v52 = vmax.f32 %v1034_v36, %v1042_v20  ;;  %v1355_v56 = vpop.f32.mrb[44].mxu0  ;;  %v1437_v18 = vpop.f32.mrb[44].mxu1 }
 0x153   : > { %v1074_v23 = vmax.f32 %v1066_v22, 0.0  ;;  %v1067_v27 = vadd.f32 %v1269_v62, %v1052_v11  ;;  %v1027_v59 = vadd.f32 %v1437_v18, %v1762_v43  ;;  %v1356_v28 = vpop.f32.mrb[45].mxu0  ;;  %v1018_v32 = vpop.f32.mrb[45].mxu1 }
 0x154   : > { %v1072_v35 = vmax.f32 %v1064_v13, 0.0  ;;  %v1065_v15 = vadd.f32 %v1269_v62, %v1050_v52  ;;  %v1357_v21 = vadd.f32 %v1356_v28, %v1355_v56  ;;  %v1019_v24 = vadd.f32 %v1758_v31, %v1018_v32  ;;  %v1358_v29 = vpop.f32.mrb[46].mxu0  ;;  %v1438_v30 = vpop.f32.mrb[46].mxu1 }
 0x155   : > { %1083 = vst.msk [vmem:[%s1836_s12 + $0x10] sm:$0xff] %vm1080_vm1, %v1074_v23  ;;  %v1075_v63 = vmax.f32 %v1067_v27, 0.0  ;;  %v1030_v34 = vadd.f32 %v1438_v30, %v1764_v49  ;;  %v1359_v36 = vpop.f32.mrb[47].mxu0  ;;  %v1021_v33 = vpop.f32.mrb[47].mxu1 }
 0x156   : > { %1081 = vst.msk [vmem:[%s1836_s12] sm:$0xff] %vm1080_vm1, %v1072_v35  ;;  %v1073_v43 = vmax.f32 %v1065_v15, 0.0  ;;  %v995_v38 = vadd.f32 %v1429_v17, %v1357_v21  ;;  %v1045_v39 = vmax.f32 %v987_v5, %v1019_v24  ;;  %v1360_v40 = vadd.f32 %v1359_v36, %v1358_v29 }
 0x157   : > { %1084 = vst.msk [vmem:[%s1836_s12 + $0x18] sm:$0xff] %vm1080_vm1, %v1075_v63  ;;  %v1022_v31 = vadd.f32 %v1760_v37, %v1021_v33 }
 0x158   : > { %1082 = vst.msk [vmem:[%s1836_s12 + $0x8] sm:$0xff] %vm1080_vm1, %v1073_v43  ;;  %v1047_v41 = vmax.f32 %v995_v38, %v1027_v59  ;;  %v1053_v49 = vmax.f32 %v1037_v51, %v1045_v39  ;;  %v998_v42 = vadd.f32 %v1814_v26, %v1360_v40 }
 0x159   : > { %v1046_v45 = vmax.f32 %v990_v12, %v1022_v31 }
 0x15a   : > { %v1055_v17 = vmax.f32 %v1039_v55, %v1047_v41  ;;  %v1068_v46 = vadd.f32 %v1269_v62, %v1053_v49  ;;  %v1048_v47 = vmax.f32 %v998_v42, %v1030_v34 }
 0x15b   : > { %v1054_v37 = vmax.f32 %v1038_v58, %v1046_v45 }
 0x15c   : > { %v1070_v48 = vadd.f32 %v1269_v62, %v1055_v17  ;;  %v1076_v53 = vmax.f32 %v1068_v46, 0.0  ;;  %v1056_v8 = vmax.f32 %v1040_v60, %v1048_v47 }
 0x15d   : > { %v1069_v44 = vadd.f32 %v1269_v62, %v1054_v37 }
 0x15e   : > { %v1078_v51 = vmax.f32 %v1070_v48, 0.0  ;;  %1085 = vst.msk [vmem:[%s1836_s12 + $0x20] sm:$0xff] %vm1080_vm1, %v1076_v53  ;;  %v1071_v26 = vadd.f32 %v1269_v62, %v1056_v8 }
 0x15f   : > { %v1077_v2 = vmax.f32 %v1069_v44, 0.0 }
 0x160   : > { %1087 = vst.msk [vmem:[%s1836_s12 + $0x30] sm:$0xff] %vm1080_vm1, %v1078_v51  ;;  %v1079_v50 = vmax.f32 %v1071_v26, 0.0 }
 0x161   : > { %1086 = vst.msk [vmem:[%s1836_s12 + $0x28] sm:$0xff] %vm1080_vm1, %v1077_v2 }
 0x162   : > { %1088 = vst.msk [vmem:[%s1836_s12 + $0x38] sm:$0xff] %vm1080_vm1, %v1079_v50 }
 0x163 PF: > { %s13_s14 = sadd.s32 1, %s1584_s14   ;;  %s1887_s12 = smov %s1580_s13 }
 0x164   : > { %p10_p5 = scmp.ge.s32.totalorder %s13_s14, 4   ;;  %s1888_s13 = smov %s1890_s15 }
 0x166   :  { %12 = sbr.rel (!%p10_p5) target bundleno = 2 (0x2), region = 62 }

// kernel: cdcn_forward.9
= control target key start
LH: loop header
LB: loop body
LE: loop exit
PB: predicated region body
PF: predicated region fallthrough
CT: control target
= control target key end

     0   :  { %s1260_s12 = smov 0   ;;  %s1262_s13 = smov 0   ;;  %s1434_s0 = inlined_call_operand.vmem [shape: bf16[2,64,576], index: 0, kind: input, shape index: {}]   ;;  %s1435_s1 = inlined_call_operand.vmem [shape: bf16[576,128], index: 1, kind: input, shape index: {}]   ;;  %s1436_s2 = inlined_call_operand.vmem [shape: f32[1,128], index: 2, kind: input, shape index: {}]   ;;  %s1437_s3 = inlined_call_operand.vmem [shape: f32[2,16,128], index: 3, kind: output, shape index: {}]  }
   0x1   :  { %s1264_s14 = smov 0  }
   0x2 LB: > { %s25_s15 = sadd.s32 1, %s1234_s13  ;;  %p947_p0 = scmp.ge.s32.totalorder %s1238_s14, 1  ;;  %s1238_s14 = sphi %s1264_s14, %s13_s14   ;;  %s1234_s13 = sphi %s1262_s13, %s1439_s13   ;;  %s1230_s12 = sphi %s1260_s12, %s1438_s12  }
   0x3   : > { %p27_p1 = scmp.ge.s32.totalorder %s25_s15, 2  ;;  %p159_p2 = scmp.lt.s32.totalorder %s1238_s14, 3 }
   0x5   : > { %s1441_s15 = smov (%p27_p1, %s25_s15), 0  ;;  %p160_p3 = pnand %p947_p0, %p159_p2 }
   0x6   : > { %v1152_v0 = vld [vmem:[%s1435_s1 + $0x40] sm:$0xff] (!%p160_p3)   ;;  %v1156_v4 = vld [vmem:[%s1435_s1 + $0x48] sm:$0xff] (!%p160_p3)   ;;  %v1160_v8 = vld [vmem:[%s1435_s1 + $0x50] sm:$0xff] (!%p160_p3)   ;;  %p193_p4 = scmp.lt.s32.totalorder (!%p160_p3), %s1230_s12, 1  ;;  %vm626_vm0 = vcmask (!%p160_p3), 523264  }
   0x7   : > { %163 = sbr.rel (%p160_p3) target bundleno = 299 (0x12b), region = 32  ;;  %v1153_v1 = vld [vmem:[%s1435_s1 + $0xc0] sm:$0xff] (!%p160_p3)   ;;  %1015 = vmatprep.subr.bf16.mxu0 (!%p160_p3), %v1152_v0  ;;  %v1157_v5 = vld [vmem:[%s1435_s1 + $0xc8] sm:$0xff] (!%p160_p3)   ;;  %v1161_v9 = vld [vmem:[%s1435_s1 + $0xd0] sm:$0xff] (!%p160_p3)  }
   0x8   : > { %v1154_v2 = vld [vmem:[%s1435_s1] sm:$0xff] (!%p160_p3)   ;;  %1055 = vmatprep.subr.bf16.mxu1 (!%p160_p3), %v1153_v1  ;;  %v1158_v6 = vld [vmem:[%s1435_s1 + $0x8] sm:$0xff] (!%p160_p3)   ;;  %v1162_v10 = vld [vmem:[%s1435_s1 + $0x10] sm:$0xff] (!%p160_p3)  }
   0x9   : > { %v1155_v3 = vld [vmem:[%s1435_s1 + $0x80] sm:$0xff] (!%p160_p3)   ;;  %1016 = vmatpush3.bf16.msra.mxu0 (!%p160_p3), %v1154_v2  ;;  %v1159_v7 = vld [vmem:[%s1435_s1 + $0x88] sm:$0xff] (!%p160_p3)   ;;  %v1163_v11 = vld [vmem:[%s1435_s1 + $0x90] sm:$0xff] (!%p160_p3)  }
   0xa   : > { %1056 = vmatpush3.bf16.msra.mxu1 (!%p160_p3), %v1155_v3  ;;  %1017 = vmatprep.subr.bf16.mxu0 (!%p160_p3), %v1156_v4  ;;  %v1164_v12 = vld [vmem:[%s1435_s1 + $0x58] sm:$0xff] (!%p160_p3)   ;;  %v1168_v16 = vld [vmem:[%s1435_s1 + $0x60] sm:$0xff] (!%p160_p3)   ;;  %v1172_v20 = vld [vmem:[%s1435_s1 + $0x68] sm:$0xff] (!%p160_p3)  }
   0xb   : > { %1057 = vmatprep.subr.bf16.mxu1 (!%p160_p3), %v1157_v5  ;;  %v1165_v13 = vld [vmem:[%s1435_s1 + $0xd8] sm:$0xff] (!%p160_p3)   ;;  %v1169_v17 = vld [vmem:[%s1435_s1 + $0xe0] sm:$0xff] (!%p160_p3)   ;;  %v1173_v21 = vld [vmem:[%s1435_s1 + $0xe8] sm:$0xff] (!%p160_p3)  }
   0xc   : > { %v1166_v14 = vld [vmem:[%s1435_s1 + $0x18] sm:$0xff] (!%p160_p3)   ;;  %v1170_v18 = vld [vmem:[%s1435_s1 + $0x20] sm:$0xff] (!%p160_p3)   ;;  %v1174_v22 = vld [vmem:[%s1435_s1 + $0x28] sm:$0xff] (!%p160_p3)  }
   0xd   : > { %1018 = vmatpush3.bf16.msra.mxu0 (!%p160_p3), %v1158_v6  ;;  %v1167_v15 = vld [vmem:[%s1435_s1 + $0x98] sm:$0xff] (!%p160_p3)   ;;  %v1171_v19 = vld [vmem:[%s1435_s1 + $0xa0] sm:$0xff] (!%p160_p3)   ;;  %v1175_v23 = vld [vmem:[%s1435_s1 + $0xa8] sm:$0xff] (!%p160_p3)  }
   0xe   : > { %1058 = vmatpush3.bf16.msra.mxu1 %v1159_v7  ;;  %1019 = vmatprep.subr.bf16.mxu0 %v1160_v8  ;;  %s1443_s12 = smov (!%p193_p4, %s1230_s12), 1  ;;  %v1176_v24 = vld [vmem:[%s1435_s1 + $0x70] sm:$0xff]   ;;  %v1180_v28 = vld [vmem:[%s1435_s1 + $0x78] sm:$0xff]   ;;  %v1190_v36 = vld [vmem:[%s1435_s1 + $0x100] sm:$0xff]  }
   0xf   : > { %1059 = vmatprep.subr.bf16.mxu1 %v1161_v9  ;;  %v1177_v25 = vld [vmem:[%s1435_s1 + $0xf0] sm:$0xff]   ;;  %s1127_s22 = smul.u32 160, %s1443_s12  ;;  %v1181_v29 = vld [vmem:[%s1435_s1 + $0xf8] sm:$0xff]   ;;  %v1197_v39 = vld [vmem:[%s1435_s1 + $0x108] sm:$0xff]   ;;  %s1014_s25 = sshll.u32 %s1443_s12, 4 }
  0x10   : > { %v1178_v26 = vld [vmem:[%s1435_s1 + $0x30] sm:$0xff]   ;;  %v1182_v30 = vld [vmem:[%s1435_s1 + $0x38] sm:$0xff]   ;;  %s211_s28 = scalar_lea.vmem %s1437_s3, %s1014_s25 }
  0x11   : > { %1020 = vmatpush3.bf16.msra.mxu0 %v1162_v10  ;;  %v1179_v27 = vld [vmem:[%s1435_s1 + $0xb0] sm:$0xff]   ;;  %s1378_s6 = scalar_lea.vmem %s1434_s0, %s1127_s22  ;;  %v1183_v31 = vld [vmem:[%s1435_s1 + $0xb8] sm:$0xff]  }
  0x12   : > { %1060 = vmatpush3.bf16.msra.mxu1 %v1163_v11  ;;  %1021 = vmatprep.subr.bf16.mxu0 %v1164_v12  ;;  %v1184_v32 = vld [vmem:[%s1378_s6] ss:$20 sps:$4 sm:$0xff]   ;;  %v1186_v33 = vld [vmem:[%s1378_s6 + $0x4] ss:$20 sps:$4 sm:$0xff]   ;;  %v1187_v34 = vld [vmem:[%s1378_s6 + $0x8] ss:$20 sps:$4 sm:$0xff]  }
  0x13   : > { %1061 = vmatprep.subr.bf16.mxu1 %v1165_v13  ;;  %v1189_v35 = vld [vmem:[%s1378_s6 + $0xc] ss:$20 sps:$4 sm:$0xff]   ;;  %671 = vmatprep.mubr.bf16.mxu0 %v1186_v33  ;;  %v1193_v38 = vld [vmem:[%s1378_s6 + $0x34] ss:$20 sps:$4 sm:$0xff]   ;;  %v1196_v41 = vld [vmem:[%s1378_s6 + $0x30] ss:$20 sps:$4 sm:$0xff]  }
  0x14   : > { %736 = vmatprep.mubr.bf16.mxu1 %v1189_v35  ;;  %v1191_v37 = vld [vmem:[%s1378_s6 + $0x2c] ss:$20 sps:$4 sm:$0xff]   ;;  %v1195_v40 = vld [vmem:[%s1378_s6 + $0x28] ss:$20 sps:$4 sm:$0xff]   ;;  %v1204_v44 = vld [vmem:[%s1435_s1 + $0x110] sm:$0xff]  }
  0x15   : > { %1022 = vmatpush3.bf16.msra.mxu0 %v1166_v14  ;;  %v1198_v42 = vld [vmem:[%s1378_s6 + $0x54] ss:$20 sps:$4 sm:$0xff]   ;;  %v1200_v43 = vld [vmem:[%s1378_s6 + $0x5c] ss:$20 sps:$4 sm:$0xff]   ;;  %v1203_v47 = vld [vmem:[%s1378_s6 + $0x58] ss:$20 sps:$4 sm:$0xff]  }
  0x16   : > { %1062 = vmatpush3.bf16.msra.mxu1 %v1167_v15  ;;  %1023 = vmatprep.subr.bf16.mxu0 %v1168_v16  ;;  %v1211_v45 = vld [vmem:[%s1435_s1 + $0x118] sm:$0xff]   ;;  %v1202_v46 = vld [vmem:[%s1378_s6 + $0x50] ss:$20 sps:$4 sm:$0xff]   ;;  %v1210_v51 = vld [vmem:[%s1378_s6 + $0x80] ss:$20 sps:$4 sm:$0xff]  }
  0x17   : > { %1063 = vmatprep.subr.bf16.mxu1 %v1169_v17  ;;  %v1205_v48 = vld [vmem:[%s1378_s6 + $0x7c] ss:$20 sps:$4 sm:$0xff]   ;;  %v1207_v49 = vld [vmem:[%s1378_s6 + $0x84] ss:$20 sps:$4 sm:$0xff]   ;;  %v1213_v53 = vld [vmem:[%s1378_s6 + $0x60] ss:$20 sps:$4 sm:$0xff]  }
  0x18   : > { %v1209_v50 = vld [vmem:[%s1378_s6 + $0x78] ss:$20 sps:$4 sm:$0xff]   ;;  %v1212_v52 = vld [vmem:[%s1378_s6 + $0x10] ss:$20 sps:$4 sm:$0xff]   ;;  %v1215_v55 = vld [vmem:[%s1378_s6 + $0x88] ss:$20 sps:$4 sm:$0xff]  }
  0x19   : > { %1024 = vmatpush3.bf16.msra.mxu0 %v1170_v18  ;;  %v1214_v54 = vld [vmem:[%s1378_s6 + $0x38] ss:$20 sps:$4 sm:$0xff]  }
  0x1a   : > { %1064 = vmatpush3.bf16.msra.mxu1 %v1171_v19  ;;  %1025 = vmatprep.subr.bf16.mxu0 %v1172_v20 }
  0x1b   : > { %1065 = vmatprep.subr.bf16.mxu1 %v1173_v21 }
  0x1d   : > { %1026 = vmatpush3.bf16.msra.mxu0 %v1174_v22 }
  0x1e   : > { %1066 = vmatpush3.bf16.msra.mxu1 %v1175_v23  ;;  %1027 = vmatprep.subr.bf16.mxu0 %v1176_v24 }
  0x1f   : > { %1067 = vmatprep.subr.bf16.mxu1 %v1177_v25 }
  0x21   : > { %1028 = vmatpush3.bf16.msra.mxu0 %v1178_v26 }
  0x22   : > { %1068 = vmatpush3.bf16.msra.mxu1 %v1179_v27  ;;  %1029 = vmatprep.subr.bf16.mxu0 %v1180_v28 }
  0x23   : > { %1069 = vmatprep.subr.bf16.mxu1 %v1181_v29 }
  0x25   : > { %1030 = vmatpush3.bf16.msra.mxu0 %v1182_v30 }
  0x26   : > { %1070 = vmatpush3.bf16.msra.mxu1 %v1183_v31  ;;  %1103 = vmatprep.subr.bf16.mxu0 %v1190_v36 }
  0x27   : > { %1119 = vmatprep.subr.bf16.mxu1 %v1190_v36 }
  0x28   : > { %672 = vmatmul.mubr.bf16.vlgmr.msra.gmra.mrb[0].mxu0 %v1184_v32 }
  0x29   : > { %737 = vmatmul.mubr.bf16.vlgmr.msra.gmra.mrb[0].mxu1 %v1187_v34  ;;  %1104 = vmatpush3.bf16.msra.mxu0 %v1190_v36 }
  0x2a   : > { %1123 = vmatpush3.bf16.msra.mxu1 %v1190_v36  ;;  %679 = vmatprep.mubr.bf16.mxu0 %v1191_v37 }
  0x2b   : > { %744 = vmatprep.mubr.bf16.mxu1 %v1193_v38  ;;  %1105 = vmatprep.subr.bf16.mxu0 %v1197_v39 }
  0x2c   : > { %1120 = vmatprep.subr.bf16.mxu1 %v1197_v39 }
  0x2d   : > { %1106 = vmatpush3.bf16.msra.mxu0 %v1197_v39 }
  0x2e   : > { %1124 = vmatpush3.bf16.msra.mxu1 %v1197_v39  ;;  %1107 = vmatprep.subr.bf16.mxu0 %v1204_v44 }
  0x2f   : > { %1121 = vmatprep.subr.bf16.mxu1 %v1204_v44 }
  0x30   : > { %680 = vmatmul.mubr.bf16.gmra.mrb[4].mxu0 %v1195_v40 }
  0x31   : > { %745 = vmatmul.mubr.bf16.gmra.mrb[4].mxu1 %v1196_v41  ;;  %687 = vmatprep.mubr.bf16.mxu0 %v1198_v42 }
  0x32   : > { %752 = vmatprep.mubr.bf16.mxu1 %v1200_v43  ;;  %1108 = vmatpush3.bf16.msra.mxu0 %v1204_v44 }
  0x33   : > { %1125 = vmatpush3.bf16.msra.mxu1 %v1204_v44  ;;  %1109 = vmatprep.subr.bf16.mxu0 %v1211_v45 }
  0x34   : > { %1122 = vmatprep.subr.bf16.mxu1 %v1211_v45 }
  0x36   : > { %1110 = vmatpush3.bf16.msra.mxu0 %v1211_v45 }
  0x37   : > { %1126 = vmatpush3.bf16.msra.mxu1 %v1211_v45 }
  0x38   : > { %688 = vmatmul.mubr.bf16.gmra.mrb[8].mxu0 %v1202_v46 }
  0x39   : > { %753 = vmatmul.mubr.bf16.gmra.mrb[8].mxu1 %v1203_v47  ;;  %695 = vmatprep.mubr.bf16.mxu0 %v1205_v48 }
  0x3a   : > { %760 = vmatprep.mubr.bf16.mxu1 %v1207_v49 }
  0x40   : > { %696 = vmatmul.mubr.bf16.gmra.mrb[12].mxu0 %v1209_v50 }
  0x41   : > { %761 = vmatmul.mubr.bf16.gmra.mrb[12].mxu1 %v1210_v51  ;;  %1111 = vmatprep.mubr.msk.bf16.mxu0 %vm626_vm0, %v1212_v52 }
  0x42   : > { %1115 = vmatprep.mubr.msk.bf16.mxu1 %vm626_vm0, %v1213_v53 }
  0x48   : > { %1112 = vmatmul.mubr.msk.bf16.vlgmr.msra.gmra.mrb[16].mxu0 %vm626_vm0, %v1214_v54 }
  0x49   : > { %1116 = vmatmul.mubr.msk.bf16.vlgmr.msra.gmra.mrb[16].mxu1 %vm626_vm0, %v1215_v55 }
  0xfb   : > { %v1031_v56 = vpop.f32.mrb[0].mxu0 }
  0xfc   : > { %v1071_v57 = vpop.f32.mrb[0].mxu1  ;;  %v1032_v58 = vpop.f32.mrb[1].mxu0 }
  0xfd   : > { %v1033_v59 = vadd.f32 %v1032_v58, %v1031_v56  ;;  %v1072_v60 = vpop.f32.mrb[1].mxu1  ;;  %v1034_v61 = vpop.f32.mrb[2].mxu0 }
  0xfe   : > { %v1073_v62 = vadd.f32 %v1072_v60, %v1071_v57  ;;  %v1074_v63 = vpop.f32.mrb[2].mxu1  ;;  %v1035_v0 = vpop.f32.mrb[3].mxu0 }
  0xff   : > { %v1036_v1 = vadd.f32 %v1035_v0, %v1034_v61  ;;  %v1075_v2 = vpop.f32.mrb[3].mxu1 }
 0x100   : > { %v1076_v3 = vadd.f32 %v1075_v2, %v1074_v63  ;;  %v739_v4 = vadd.f32 %v1073_v62, %v1033_v59  ;;  %v1011_v2 = vld [vmem:[%s1436_s2] ss:$0 sm:$0xff] }
 0x102   : > { %v742_v5 = vadd.f32 %v1076_v3, %v1036_v1 }
 0x103   : > { %v1037_v6 = vpop.f32.mrb[4].mxu0 }
 0x104   : > { %v1077_v7 = vpop.f32.mrb[4].mxu1  ;;  %v1038_v8 = vpop.f32.mrb[5].mxu0 }
 0x105   : > { %v1039_v9 = vadd.f32 %v1038_v8, %v1037_v6  ;;  %v1078_v10 = vpop.f32.mrb[5].mxu1  ;;  %v1040_v11 = vpop.f32.mrb[6].mxu0 }
 0x106   : > { %v1079_v12 = vadd.f32 %v1078_v10, %v1077_v7  ;;  %v1080_v13 = vpop.f32.mrb[6].mxu1  ;;  %v1041_v14 = vpop.f32.mrb[7].mxu0 }
 0x107   : > { %v1042_v15 = vadd.f32 %v1041_v14, %v1040_v11  ;;  %v1081_v16 = vpop.f32.mrb[7].mxu1 }
 0x108   : > { %v1082_v17 = vadd.f32 %v1081_v16, %v1080_v13  ;;  %v747_v18 = vadd.f32 %v1079_v12, %v1039_v9 }
 0x10a   : > { %v750_v19 = vadd.f32 %v1082_v17, %v1042_v15 }
 0x10b   : > { %v1043_v20 = vpop.f32.mrb[8].mxu0 }
 0x10c   : > { %v1083_v21 = vpop.f32.mrb[8].mxu1  ;;  %v1044_v22 = vpop.f32.mrb[9].mxu0 }
 0x10d   : > { %v1045_v23 = vadd.f32 %v1044_v22, %v1043_v20  ;;  %v1084_v24 = vpop.f32.mrb[9].mxu1  ;;  %v1046_v25 = vpop.f32.mrb[10].mxu0 }
 0x10e   : > { %v1085_v26 = vadd.f32 %v1084_v24, %v1083_v21  ;;  %v1086_v27 = vpop.f32.mrb[10].mxu1  ;;  %v1047_v28 = vpop.f32.mrb[11].mxu0 }
 0x10f   : > { %v1048_v29 = vadd.f32 %v1047_v28, %v1046_v25  ;;  %v1087_v30 = vpop.f32.mrb[11].mxu1 }
 0x110   : > { %v1088_v31 = vadd.f32 %v1087_v30, %v1086_v27  ;;  %v755_v32 = vadd.f32 %v1085_v26, %v1045_v23 }
 0x112   : > { %v758_v33 = vadd.f32 %v1088_v31, %v1048_v29 }
 0x113   : > { %v1049_v34 = vpop.f32.mrb[12].mxu0 }
 0x114   : > { %v1089_v35 = vpop.f32.mrb[12].mxu1  ;;  %v1050_v36 = vpop.f32.mrb[13].mxu0 }
 0x115   : > { %v1051_v37 = vadd.f32 %v1050_v36, %v1049_v34  ;;  %v1090_v38 = vpop.f32.mrb[13].mxu1  ;;  %v1052_v39 = vpop.f32.mrb[14].mxu0 }
 0x116   : > { %v1091_v40 = vadd.f32 %v1090_v38, %v1089_v35  ;;  %v1092_v41 = vpop.f32.mrb[14].mxu1  ;;  %v1053_v42 = vpop.f32.mrb[15].mxu0 }
 0x117   : > { %v1054_v43 = vadd.f32 %v1053_v42, %v1052_v39  ;;  %v1093_v44 = vpop.f32.mrb[15].mxu1 }
 0x118   : > { %v1094_v45 = vadd.f32 %v1093_v44, %v1092_v41  ;;  %v763_v46 = vadd.f32 %v1091_v40, %v1051_v37 }
 0x11a   : > { %v766_v47 = vadd.f32 %v1094_v45, %v1054_v43 }
 0x11b   : > { %v1113_v48 = vpop.f32.mrb[16].mxu0 }
 0x11c   : > { %v812_v49 = vadd.f32 %v1113_v48, %v747_v18  ;;  %v1117_v50 = vpop.f32.mrb[16].mxu1  ;;  %v803_v51 = vpop.f32.mrb[17].mxu0 }
 0x11d   : > { %v828_v52 = vadd.f32 %v1117_v50, %v763_v46  ;;  %v804_v53 = vadd.f32 %v803_v51, %v739_v4  ;;  %v819_v54 = vpop.f32.mrb[17].mxu1  ;;  %v1114_v55 = vpop.f32.mrb[18].mxu0 }
 0x11e   : > { %v820_v56 = vadd.f32 %v819_v54, %v755_v32  ;;  %v815_v57 = vadd.f32 %v1114_v55, %v750_v19  ;;  %v1118_v58 = vpop.f32.mrb[18].mxu1  ;;  %v806_v59 = vpop.f32.mrb[19].mxu0 }
 0x11f   : > { %v834_v60 = vmax.f32 %v804_v53, %v812_v49  ;;  %v831_v61 = vadd.f32 %v1118_v58, %v766_v47  ;;  %v807_v62 = vadd.f32 %v806_v59, %v742_v5  ;;  %v822_v63 = vpop.f32.mrb[19].mxu1 }
 0x120   : > { %v836_v0 = vmax.f32 %v820_v56, %v828_v52  ;;  %v823_v1 = vadd.f32 %v822_v63, %v758_v33 }
 0x121   : > { %v835_v3 = vmax.f32 %v807_v62, %v815_v57 }
 0x122   : > { %v838_v6 = vmax.f32 %v834_v60, %v836_v0  ;;  %v837_v4 = vmax.f32 %v823_v1, %v831_v61 }
 0x124   : > { %v847_v7 = vadd.f32 %v1011_v2, %v838_v6  ;;  %v839_v8 = vmax.f32 %v835_v3, %v837_v4 }
 0x126   : > { %v849_v9 = vmax.f32 %v847_v7, 0.0  ;;  %v848_v10 = vadd.f32 %v1011_v2, %v839_v8 }
 0x128   : > { %851 = vst [vmem:[%s211_s28] sm:$0xff] %v849_v9  ;;  %v850_v5 = vmax.f32 %v848_v10, 0.0 }
 0x12a   : > { %852 = vst [vmem:[%s211_s28 + $0x8] sm:$0xff] %v850_v5 }
 0x12b PF: > { %s13_s14 = sadd.s32 1, %s1238_s14   ;;  %s1438_s12 = smov %s1234_s13 }
 0x12c   : > { %p10_p5 = scmp.ge.s32.totalorder %s13_s14, 4   ;;  %s1439_s13 = smov %s1441_s15 }
 0x12e   :  { %12 = sbr.rel (!%p10_p5) target bundleno = 2 (0x2), region = 62 }

// kernel: cdcn_forward.10
= control target key start
LH: loop header
LB: loop body
LE: loop exit
PB: predicated region body
PF: predicated region fallthrough
CT: control target
= control target key end

     0   :  { %s908_s12 = smov 0   ;;  %s910_s13 = smov 0   ;;  %s1088_s0 = inlined_call_operand.vmem [shape: bf16[2,256,27], index: 0, kind: input, shape index: {}]   ;;  %s1089_s1 = inlined_call_operand.vmem [shape: bf16[27,32], index: 1, kind: input, shape index: {}]   ;;  %s1090_s2 = inlined_call_operand.vmem [shape: f32[1,32], index: 2, kind: input, shape index: {}]   ;;  %s1091_s3 = inlined_call_operand.vmem [shape: f32[2,256,32], index: 3, kind: output, shape index: {}]  }
   0x1   :  { %s912_s14 = smov 0  }
   0x2 LB: > { %s25_s15 = sadd.s32 1, %s881_s13  ;;  %p718_p0 = scmp.ge.s32.totalorder %s885_s14, 1  ;;  %s885_s14 = sphi %s912_s14, %s13_s14   ;;  %s881_s13 = sphi %s910_s13, %s1093_s13   ;;  %s877_s12 = sphi %s908_s12, %s1092_s12  }
   0x3   : > { %p27_p1 = scmp.ge.s32.totalorder %s25_s15, 2  ;;  %p158_p2 = scmp.lt.s32.totalorder %s885_s14, 3 }
   0x5   : > { %s1095_s15 = smov (%p27_p1, %s25_s15), 0  ;;  %p159_p3 = pnand %p718_p0, %p158_p2 }
   0x6   : > { %v845_v0 = vld [vmem:[%s1089_s1] sm:$0xff] (!%p159_p3)   ;;  %vm394_vm0 = vcmask (!%p159_p3), 1044480   ;;  %v846_v1 = vld [vmem:[%s1089_s1 + $0x8] sm:$0x3f] (!%p159_p3)   ;;  %vm395_vm1 = vcmask (!%p159_p3), 1045504   ;;  %p191_p4 = scmp.lt.s32.totalorder (!%p159_p3), %s877_s12, 1 }
   0x7   : > { %162 = sbr.rel (%p159_p3) target bundleno = 264 (0x108), region = 32  ;;  %780 = vmatprep.subr.bf16.mxu0 (!%p159_p3), %v845_v0  ;;  %816 = vmatprep.subr.bf16.mxu1 (!%p159_p3), %v845_v0  ;;  %v887_v2 = vmov (!%p159_p3), 65535   ;;  %vm345_vm2 = vcmask (!%p159_p3), 220160   ;;  %v975_v22 = vld [vmem:[%s1090_s2] ss:$0 sm:$0xff] (!%p159_p3)  ;;  %vm594_vm3 = vcmask (!%p159_p3), 261120  }
   0x8   : > { %781 = vmatpush3.bf16.msra.mxu0 (!%p159_p3), %v845_v0  ;;  %818 = vmatpush3.bf16.msra.mxu1 (!%p159_p3), %v845_v0  ;;  %v396_v3 = vsel (!%p159_p3), %vm394_vm0, 4294967295, %v887_v2 }
   0x9   : > { %v397_v4 = vsel (!%p159_p3), %vm395_vm1, %v396_v3, 0 }
   0xa   : > { %v399_v5 = vand.u32 (!%p159_p3), %v846_v1, %v397_v4 }
   0xc   : > { %782 = vmatprep.subr.bf16.mxu0 (!%p159_p3), %v399_v5  ;;  %817 = vmatprep.subr.bf16.mxu1 (!%p159_p3), %v399_v5 }
   0xd   : > { %783 = vmatpush3.bf16.msra.mxu0 (!%p159_p3), %v399_v5  ;;  %819 = vmatpush3.bf16.msra.mxu1 (!%p159_p3), %v399_v5 }
   0xe   : > { %s1097_s12 = smov (!%p191_p4, %s877_s12), 1 }
   0xf   : > { %s760_s20 = sshll.u32 %s1097_s12, 7  ;;  %s761_s26 = sshll.u32 %s1097_s12, 8 }
  0x10   : > { %s938_s23 = scalar_lea.vmem %s1088_s0, %s760_s20  ;;  %s982_s29 = scalar_lea.vmem %s1091_s3, %s761_s26 }
  0x11   : > { %v847_v6 = vld [vmem:[%s938_s23] sm:$0xff]   ;;  %v849_v8 = vld [vmem:[%s938_s23 + $0x8] sm:$0xff]   ;;  %v851_v10 = vld [vmem:[%s938_s23 + $0x10] sm:$0xff]  }
  0x12   : > { %v848_v7 = vld [vmem:[%s938_s23 + $0x40] sm:$0xff]   ;;  %784 = vmatprep.mubr.msk.bf16.mxu0 %vm345_vm2, %v847_v6  ;;  %v850_v9 = vld [vmem:[%s938_s23 + $0x48] sm:$0xff]   ;;  %v852_v11 = vld [vmem:[%s938_s23 + $0x50] sm:$0xff]  }
  0x13   : > { %800 = vmatprep.mubr.msk.bf16.mxu1 %vm345_vm2, %v848_v7  ;;  %785 = vmatmul.mubr.msk.bf16.vlgmr.msra.gmra.mrb[0].mxu0 %vm345_vm2, %v849_v8  ;;  %v853_v12 = vld [vmem:[%s938_s23 + $0x18] sm:$0xff]   ;;  %v855_v14 = vld [vmem:[%s938_s23 + $0x20] sm:$0xff]   ;;  %v857_v16 = vld [vmem:[%s938_s23 + $0x28] sm:$0xff]  }
  0x14   : > { %801 = vmatmul.mubr.msk.bf16.vlgmr.msra.gmra.mrb[0].mxu1 %vm345_vm2, %v850_v9  ;;  %788 = vmatprep.mubr.msk.bf16.mxu0 %vm345_vm2, %v851_v10  ;;  %v854_v13 = vld [vmem:[%s938_s23 + $0x58] sm:$0xff]   ;;  %v856_v15 = vld [vmem:[%s938_s23 + $0x60] sm:$0xff]   ;;  %v858_v17 = vld [vmem:[%s938_s23 + $0x68] sm:$0xff]  }
  0x15   : > { %804 = vmatprep.mubr.msk.bf16.mxu1 %vm345_vm2, %v852_v11  ;;  %v859_v18 = vld [vmem:[%s938_s23 + $0x30] sm:$0xff]   ;;  %v861_v20 = vld [vmem:[%s938_s23 + $0x38] sm:$0xff]  }
  0x16   : > { %v860_v19 = vld [vmem:[%s938_s23 + $0x70] sm:$0xff]   ;;  %v862_v21 = vld [vmem:[%s938_s23 + $0x78] sm:$0xff]  }
  0x1b   : > { %789 = vmatmul.mubr.msk.bf16.gmra.mrb[4].mxu0 %vm345_vm2, %v853_v12 }
  0x1c   : > { %805 = vmatmul.mubr.msk.bf16.gmra.mrb[4].mxu1 %vm345_vm2, %v854_v13  ;;  %792 = vmatprep.mubr.msk.bf16.mxu0 %vm345_vm2, %v855_v14 }
  0x1d   : > { %808 = vmatprep.mubr.msk.bf16.mxu1 %vm345_vm2, %v856_v15 }
  0x23   : > { %793 = vmatmul.mubr.msk.bf16.gmra.mrb[8].mxu0 %vm345_vm2, %v857_v16 }
  0x24   : > { %809 = vmatmul.mubr.msk.bf16.gmra.mrb[8].mxu1 %vm345_vm2, %v858_v17  ;;  %796 = vmatprep.mubr.msk.bf16.mxu0 %vm345_vm2, %v859_v18 }
  0x25   : > { %812 = vmatprep.mubr.msk.bf16.mxu1 %vm345_vm2, %v860_v19 }
  0x2b   : > { %797 = vmatmul.mubr.msk.bf16.gmra.mrb[12].mxu0 %vm345_vm2, %v861_v20 }
  0x2c   : > { %813 = vmatmul.mubr.msk.bf16.gmra.mrb[12].mxu1 %vm345_vm2, %v862_v21 }
  0xe6   : > { %v786_v23 = vpop.f32.mrb[0].mxu0 }
  0xe7   : > { %v444_v24 = vadd.f32 %v786_v23, %v975_v22  ;;  %v802_v25 = vpop.f32.mrb[0].mxu1  ;;  %v435_v26 = vpop.f32.mrb[1].mxu0 }
  0xe8   : > { %v508_v27 = vadd.f32 %v802_v25, %v975_v22  ;;  %v436_v28 = vadd.f32 %v975_v22, %v435_v26  ;;  %v499_v29 = vpop.f32.mrb[1].mxu1  ;;  %v787_v30 = vpop.f32.mrb[2].mxu0 }
  0xe9   : > { %v564_v31 = vmax.f32 %v444_v24, 0.0  ;;  %v500_v32 = vadd.f32 %v975_v22, %v499_v29  ;;  %v447_v33 = vadd.f32 %v787_v30, %v975_v22  ;;  %v803_v34 = vpop.f32.mrb[2].mxu1  ;;  %v438_v35 = vpop.f32.mrb[3].mxu0 }
  0xea   : > { %v580_v36 = vmax.f32 %v508_v27, 0.0  ;;  %v562_v37 = vmax.f32 %v436_v28, 0.0  ;;  %v511_v38 = vadd.f32 %v803_v34, %v975_v22  ;;  %v439_v39 = vadd.f32 %v975_v22, %v438_v35  ;;  %v502_v40 = vpop.f32.mrb[3].mxu1 }
  0xeb   : > { %597 = vst.msk [vmem:[%s982_s29 + $0x10] sm:$0xff] %vm594_vm3, %v564_v31  ;;  %v578_v41 = vmax.f32 %v500_v32, 0.0  ;;  %v565_v42 = vmax.f32 %v447_v33, 0.0  ;;  %v503_v43 = vadd.f32 %v975_v22, %v502_v40 }
  0xec   : > { %613 = vst.msk [vmem:[%s982_s29 + $0x90] sm:$0xff] %vm594_vm3, %v580_v36  ;;  %595 = vst.msk [vmem:[%s982_s29] sm:$0xff] %vm594_vm3, %v562_v37  ;;  %v581_v44 = vmax.f32 %v511_v38, 0.0  ;;  %v563_v45 = vmax.f32 %v439_v39, 0.0 }
  0xed   : > { %611 = vst.msk [vmem:[%s982_s29 + $0x80] sm:$0xff] %vm594_vm3, %v578_v41  ;;  %598 = vst.msk [vmem:[%s982_s29 + $0x18] sm:$0xff] %vm594_vm3, %v565_v42  ;;  %v579_v46 = vmax.f32 %v503_v43, 0.0 }
  0xee   : > { %614 = vst.msk [vmem:[%s982_s29 + $0x98] sm:$0xff] %vm594_vm3, %v581_v44  ;;  %596 = vst.msk [vmem:[%s982_s29 + $0x8] sm:$0xff] %vm594_vm3, %v563_v45  ;;  %v790_v47 = vpop.f32.mrb[4].mxu0 }
  0xef   : > { %612 = vst.msk [vmem:[%s982_s29 + $0x88] sm:$0xff] %vm594_vm3, %v579_v46  ;;  %v460_v48 = vadd.f32 %v790_v47, %v975_v22  ;;  %v806_v49 = vpop.f32.mrb[4].mxu1  ;;  %v451_v50 = vpop.f32.mrb[5].mxu0 }
  0xf0   : > { %v524_v51 = vadd.f32 %v806_v49, %v975_v22  ;;  %v452_v52 = vadd.f32 %v975_v22, %v451_v50  ;;  %v515_v53 = vpop.f32.mrb[5].mxu1  ;;  %v791_v54 = vpop.f32.mrb[6].mxu0 }
  0xf1   : > { %v568_v55 = vmax.f32 %v460_v48, 0.0  ;;  %v516_v56 = vadd.f32 %v975_v22, %v515_v53  ;;  %v463_v57 = vadd.f32 %v791_v54, %v975_v22  ;;  %v807_v58 = vpop.f32.mrb[6].mxu1  ;;  %v454_v59 = vpop.f32.mrb[7].mxu0 }
  0xf2   : > { %v584_v60 = vmax.f32 %v524_v51, 0.0  ;;  %v566_v61 = vmax.f32 %v452_v52, 0.0  ;;  %v527_v62 = vadd.f32 %v807_v58, %v975_v22  ;;  %v455_v63 = vadd.f32 %v975_v22, %v454_v59  ;;  %v518_v0 = vpop.f32.mrb[7].mxu1 }
  0xf3   : > { %601 = vst.msk [vmem:[%s982_s29 + $0x30] sm:$0xff] %vm594_vm3, %v568_v55  ;;  %v582_v1 = vmax.f32 %v516_v56, 0.0  ;;  %v569_v2 = vmax.f32 %v463_v57, 0.0  ;;  %v519_v3 = vadd.f32 %v975_v22, %v518_v0 }
  0xf4   : > { %617 = vst.msk [vmem:[%s982_s29 + $0xb0] sm:$0xff] %vm594_vm3, %v584_v60  ;;  %599 = vst.msk [vmem:[%s982_s29 + $0x20] sm:$0xff] %vm594_vm3, %v566_v61  ;;  %v585_v4 = vmax.f32 %v527_v62, 0.0  ;;  %v567_v5 = vmax.f32 %v455_v63, 0.0 }
  0xf5   : > { %615 = vst.msk [vmem:[%s982_s29 + $0xa0] sm:$0xff] %vm594_vm3, %v582_v1  ;;  %602 = vst.msk [vmem:[%s982_s29 + $0x38] sm:$0xff] %vm594_vm3, %v569_v2  ;;  %v583_v6 = vmax.f32 %v519_v3, 0.0 }
  0xf6   : > { %618 = vst.msk [vmem:[%s982_s29 + $0xb8] sm:$0xff] %vm594_vm3, %v585_v4  ;;  %600 = vst.msk [vmem:[%s982_s29 + $0x28] sm:$0xff] %vm594_vm3, %v567_v5  ;;  %v794_v7 = vpop.f32.mrb[8].mxu0 }
  0xf7   : > { %616 = vst.msk [vmem:[%s982_s29 + $0xa8] sm:$0xff] %vm594_vm3, %v583_v6  ;;  %v476_v8 = vadd.f32 %v794_v7, %v975_v22  ;;  %v810_v9 = vpop.f32.mrb[8].mxu1  ;;  %v467_v10 = vpop.f32.mrb[9].mxu0 }
  0xf8   : > { %v540_v11 = vadd.f32 %v810_v9, %v975_v22  ;;  %v468_v12 = vadd.f32 %v975_v22, %v467_v10  ;;  %v531_v13 = vpop.f32.mrb[9].mxu1  ;;  %v795_v14 = vpop.f32.mrb[10].mxu0 }
  0xf9   : > { %v572_v15 = vmax.f32 %v476_v8, 0.0  ;;  %v532_v16 = vadd.f32 %v975_v22, %v531_v13  ;;  %v479_v17 = vadd.f32 %v795_v14, %v975_v22  ;;  %v811_v18 = vpop.f32.mrb[10].mxu1  ;;  %v470_v19 = vpop.f32.mrb[11].mxu0 }
  0xfa   : > { %v588_v20 = vmax.f32 %v540_v11, 0.0  ;;  %v570_v21 = vmax.f32 %v468_v12, 0.0  ;;  %v543_v23 = vadd.f32 %v811_v18, %v975_v22  ;;  %v471_v24 = vadd.f32 %v975_v22, %v470_v19  ;;  %v534_v25 = vpop.f32.mrb[11].mxu1 }
  0xfb   : > { %605 = vst.msk [vmem:[%s982_s29 + $0x50] sm:$0xff] %vm594_vm3, %v572_v15  ;;  %v586_v26 = vmax.f32 %v532_v16, 0.0  ;;  %v573_v27 = vmax.f32 %v479_v17, 0.0  ;;  %v535_v28 = vadd.f32 %v975_v22, %v534_v25 }
  0xfc   : > { %621 = vst.msk [vmem:[%s982_s29 + $0xd0] sm:$0xff] %vm594_vm3, %v588_v20  ;;  %603 = vst.msk [vmem:[%s982_s29 + $0x40] sm:$0xff] %vm594_vm3, %v570_v21  ;;  %v589_v29 = vmax.f32 %v543_v23, 0.0  ;;  %v571_v30 = vmax.f32 %v471_v24, 0.0 }
  0xfd   : > { %619 = vst.msk [vmem:[%s982_s29 + $0xc0] sm:$0xff] %vm594_vm3, %v586_v26  ;;  %606 = vst.msk [vmem:[%s982_s29 + $0x58] sm:$0xff] %vm594_vm3, %v573_v27  ;;  %v587_v31 = vmax.f32 %v535_v28, 0.0 }
  0xfe   : > { %622 = vst.msk [vmem:[%s982_s29 + $0xd8] sm:$0xff] %vm594_vm3, %v589_v29  ;;  %604 = vst.msk [vmem:[%s982_s29 + $0x48] sm:$0xff] %vm594_vm3, %v571_v30  ;;  %v798_v32 = vpop.f32.mrb[12].mxu0 }
  0xff   : > { %620 = vst.msk [vmem:[%s982_s29 + $0xc8] sm:$0xff] %vm594_vm3, %v587_v31  ;;  %v492_v33 = vadd.f32 %v798_v32, %v975_v22  ;;  %v814_v34 = vpop.f32.mrb[12].mxu1  ;;  %v483_v35 = vpop.f32.mrb[13].mxu0 }
 0x100   : > { %v556_v36 = vadd.f32 %v814_v34, %v975_v22  ;;  %v484_v37 = vadd.f32 %v975_v22, %v483_v35  ;;  %v547_v38 = vpop.f32.mrb[13].mxu1  ;;  %v799_v39 = vpop.f32.mrb[14].mxu0 }
 0x101   : > { %v576_v40 = vmax.f32 %v492_v33, 0.0  ;;  %v548_v41 = vadd.f32 %v975_v22, %v547_v38  ;;  %v495_v42 = vadd.f32 %v799_v39, %v975_v22  ;;  %v815_v43 = vpop.f32.mrb[14].mxu1  ;;  %v486_v44 = vpop.f32.mrb[15].mxu0 }
 0x102   : > { %v592_v45 = vmax.f32 %v556_v36, 0.0  ;;  %v574_v46 = vmax.f32 %v484_v37, 0.0  ;;  %v559_v47 = vadd.f32 %v815_v43, %v975_v22  ;;  %v487_v48 = vadd.f32 %v975_v22, %v486_v44  ;;  %v550_v49 = vpop.f32.mrb[15].mxu1 }
 0x103   : > { %609 = vst.msk [vmem:[%s982_s29 + $0x70] sm:$0xff] %vm594_vm3, %v576_v40  ;;  %v590_v50 = vmax.f32 %v548_v41, 0.0  ;;  %v577_v51 = vmax.f32 %v495_v42, 0.0  ;;  %v551_v52 = vadd.f32 %v975_v22, %v550_v49 }
 0x104   : > { %625 = vst.msk [vmem:[%s982_s29 + $0xf0] sm:$0xff] %vm594_vm3, %v592_v45  ;;  %607 = vst.msk [vmem:[%s982_s29 + $0x60] sm:$0xff] %vm594_vm3, %v574_v46  ;;  %v593_v53 = vmax.f32 %v559_v47, 0.0  ;;  %v575_v54 = vmax.f32 %v487_v48, 0.0 }
 0x105   : > { %623 = vst.msk [vmem:[%s982_s29 + $0xe0] sm:$0xff] %vm594_vm3, %v590_v50  ;;  %610 = vst.msk [vmem:[%s982_s29 + $0x78] sm:$0xff] %vm594_vm3, %v577_v51  ;;  %v591_v55 = vmax.f32 %v551_v52, 0.0 }
 0x106   : > { %626 = vst.msk [vmem:[%s982_s29 + $0xf8] sm:$0xff] %vm594_vm3, %v593_v53  ;;  %608 = vst.msk [vmem:[%s982_s29 + $0x68] sm:$0xff] %vm594_vm3, %v575_v54 }
 0x107   : > { %624 = vst.msk [vmem:[%s982_s29 + $0xe8] sm:$0xff] %vm594_vm3, %v591_v55 }
 0x108 PF: > { %s13_s14 = sadd.s32 1, %s885_s14   ;;  %s1092_s12 = smov %s881_s13 }
 0x109   : > { %p10_p5 = scmp.ge.s32.totalorder %s13_s14, 4   ;;  %s1093_s13 = smov %s1095_s15 }
 0x10b   :  { %12 = sbr.rel (!%p10_p5) target bundleno = 2 (0x2), region = 62 }

// kernel: cdcn_forward.13
= control target key start
LH: loop header
LB: loop body
LE: loop exit
PB: predicated region body
PF: predicated region fallthrough
CT: control target
= control target key end

     0   :  { %s9972_s12 = smov 0   ;;  %s9974_s13 = smov 0   ;;  %s11773_s0 = inlined_call_operand.vmem [shape: bf16[2,4096], index: 0, kind: input, shape index: {}]   ;;  %s11774_s1 = inlined_call_operand.vmem [shape: bf16[4096,512], index: 1, kind: input, shape index: {}]   ;;  %s11775_s2 = inlined_call_operand.vmem [shape: f32[1,512], index: 2, kind: input, shape index: {}]   ;;  %s11776_s3 = inlined_call_operand.vmem [shape: f32[2,512], index: 3, kind: output, shape index: {}]  }
   0x1   :  { %s9976_s14 = smov 0   ;;  %s9978_s15 = smov 0  }
   0x2   :  { %s9980_s16 = smov 0  }
   0x3 LB: > { %s25_s17 = sadd.s32 1, %s9943_s15  ;;  %p67_p1 = scmp.ne.s32.totalorder %s9935_s13, %s9931_s12  ;;  %s9947_s16 = sphi %s9980_s16, %s13_s16   ;;  %s9943_s15 = sphi %s9978_s15, %s11780_s15   ;;  %s9939_s14 = sphi %s9976_s14, %s11779_s14   ;;  %s9935_s13 = sphi %s9974_s13, %s11778_s13   ;;  %s9931_s12 = sphi %s9972_s12, %s11777_s12  }
   0x4   : > { %p27_p0 = scmp.ge.s32.totalorder %s25_s17, 2  ;;  %p68_p2 = scmp.eq.s32.totalorder %s9947_s16, 0 }
   0x5   : > { %s60_s19 = sadd.s32 1, %s9935_s13  ;;  %p8512_p5 = scmp.ge.s32.totalorder %s9947_s16, 2 }
   0x6   : > { %s11782_s17 = smov (%p27_p0, %s25_s17), 0  ;;  %p69_p3 = por %p68_p2, %p67_p1 }
   0x7   : > { %s56_s18 = ssub.s32 %s9943_s15, %s11782_s17  ;;  %153 = sbr.rel (%p8512_p5) target bundleno = 274 (0x112), region = 20 }
   0x8   : > { %p58_p4 = scmp.eq.s32.totalorder %s56_s18, 0 }
   0xa   : > { %s10007_s20 = scalar_select %p58_p4, %s9935_s13, %s60_s19  }
   0xe   : > { %156 = sbr.rel (!%p69_p3) target bundleno = 274 (0x112), region = 24  ;;  %s158_s21 = sand.u32 (%p69_p3), 1, %s9935_s13  }
   0xf   : > { %s9035_s22 = sshll.u32 (%p69_p3), %s9943_s15, 3  ;;  %s8513_s23 = sshll.u32 (%p69_p3), %s158_s21, 12 }
  0x10   : > { %s10015_s26 = scalar_lea.vmem (%p69_p3), %s11774_s1, %s9035_s22  ;;  %s10020_s27 = scalar_lea.vmem (%p69_p3), [#allocation2], %s8513_s23 }
  0x11   : > { %v1219_v0 = vld [vmem:[%s10015_s26] sm:$0xff] (%p69_p3)  ;;  %v1221_v1 = vld [vmem:[%s10015_s26 + $0x10] sm:$0xff] (%p69_p3) }
  0x12   : > { %v1223_v2 = vld [vmem:[%s10015_s26 + $0x20] sm:$0xff] (%p69_p3)  ;;  %1220 = vst [vmem:[%s10020_s27] sm:$0xff] (%p69_p3), %v1219_v0  ;;  %1222 = vst [vmem:[%s10020_s27 + $0x8] sm:$0xff] (%p69_p3), %v1221_v1  ;;  %v1225_v3 = vld [vmem:[%s10015_s26 + $0x30] sm:$0xff] (%p69_p3) }
  0x13   : > { %1224 = vst [vmem:[%s10020_s27 + $0x10] sm:$0xff] (%p69_p3), %v1223_v2  ;;  %v1227_v4 = vld [vmem:[%s10015_s26 + $0x40] sm:$0xff] (%p69_p3)  ;;  %v1229_v5 = vld [vmem:[%s10015_s26 + $0x50] sm:$0xff] (%p69_p3)  ;;  %1226 = vst [vmem:[%s10020_s27 + $0x18] sm:$0xff] (%p69_p3), %v1225_v3 }
  0x14   : > { %1228 = vst [vmem:[%s10020_s27 + $0x20] sm:$0xff] (%p69_p3), %v1227_v4  ;;  %1230 = vst [vmem:[%s10020_s27 + $0x28] sm:$0xff] (%p69_p3), %v1229_v5  ;;  %v1231_v6 = vld [vmem:[%s10015_s26 + $0x60] sm:$0xff] (%p69_p3)  ;;  %v1233_v7 = vld [vmem:[%s10015_s26 + $0x70] sm:$0xff] (%p69_p3) }
  0x15   : > { %v1235_v8 = vld [vmem:[%s10015_s26 + $0x80] sm:$0xff]  ;;  %1232 = vst [vmem:[%s10020_s27 + $0x30] sm:$0xff] %v1231_v6  ;;  %1234 = vst [vmem:[%s10020_s27 + $0x38] sm:$0xff] %v1233_v7  ;;  %v1237_v9 = vld [vmem:[%s10015_s26 + $0x90] sm:$0xff] }
  0x16   : > { %1236 = vst [vmem:[%s10020_s27 + $0x40] sm:$0xff] %v1235_v8  ;;  %v1239_v10 = vld [vmem:[%s10015_s26 + $0xa0] sm:$0xff]  ;;  %v1241_v11 = vld [vmem:[%s10015_s26 + $0xb0] sm:$0xff]  ;;  %1238 = vst [vmem:[%s10020_s27 + $0x48] sm:$0xff] %v1237_v9 }
  0x17   : > { %1240 = vst [vmem:[%s10020_s27 + $0x50] sm:$0xff] %v1239_v10  ;;  %1242 = vst [vmem:[%s10020_s27 + $0x58] sm:$0xff] %v1241_v11  ;;  %v1243_v12 = vld [vmem:[%s10015_s26 + $0xc0] sm:$0xff]  ;;  %v1245_v13 = vld [vmem:[%s10015_s26 + $0xd0] sm:$0xff] }
  0x18   : > { %v1247_v14 = vld [vmem:[%s10015_s26 + $0xe0] sm:$0xff]  ;;  %1244 = vst [vmem:[%s10020_s27 + $0x60] sm:$0xff] %v1243_v12  ;;  %1246 = vst [vmem:[%s10020_s27 + $0x68] sm:$0xff] %v1245_v13  ;;  %v1249_v15 = vld [vmem:[%s10015_s26 + $0xf0] sm:$0xff] }
  0x19   : > { %1248 = vst [vmem:[%s10020_s27 + $0x70] sm:$0xff] %v1247_v14  ;;  %v1251_v16 = vld [vmem:[%s10015_s26 + $0x100] sm:$0xff]  ;;  %v1253_v17 = vld [vmem:[%s10015_s26 + $0x110] sm:$0xff]  ;;  %1250 = vst [vmem:[%s10020_s27 + $0x78] sm:$0xff] %v1249_v15 }
  0x1a   : > { %1252 = vst [vmem:[%s10020_s27 + $0x80] sm:$0xff] %v1251_v16  ;;  %1254 = vst [vmem:[%s10020_s27 + $0x88] sm:$0xff] %v1253_v17  ;;  %v1255_v18 = vld [vmem:[%s10015_s26 + $0x120] sm:$0xff]  ;;  %v1257_v19 = vld [vmem:[%s10015_s26 + $0x130] sm:$0xff] }
  0x1b   : > { %v1259_v20 = vld [vmem:[%s10015_s26 + $0x140] sm:$0xff]  ;;  %1256 = vst [vmem:[%s10020_s27 + $0x90] sm:$0xff] %v1255_v18  ;;  %1258 = vst [vmem:[%s10020_s27 + $0x98] sm:$0xff] %v1257_v19  ;;  %v1261_v21 = vld [vmem:[%s10015_s26 + $0x150] sm:$0xff] }
  0x1c   : > { %1260 = vst [vmem:[%s10020_s27 + $0xa0] sm:$0xff] %v1259_v20  ;;  %v1263_v22 = vld [vmem:[%s10015_s26 + $0x160] sm:$0xff]  ;;  %v1265_v23 = vld [vmem:[%s10015_s26 + $0x170] sm:$0xff]  ;;  %1262 = vst [vmem:[%s10020_s27 + $0xa8] sm:$0xff] %v1261_v21 }
  0x1d   : > { %1264 = vst [vmem:[%s10020_s27 + $0xb0] sm:$0xff] %v1263_v22  ;;  %1266 = vst [vmem:[%s10020_s27 + $0xb8] sm:$0xff] %v1265_v23  ;;  %v1267_v24 = vld [vmem:[%s10015_s26 + $0x180] sm:$0xff]  ;;  %v1269_v25 = vld [vmem:[%s10015_s26 + $0x190] sm:$0xff] }
  0x1e   : > { %v1271_v26 = vld [vmem:[%s10015_s26 + $0x1a0] sm:$0xff]  ;;  %1268 = vst [vmem:[%s10020_s27 + $0xc0] sm:$0xff] %v1267_v24  ;;  %1270 = vst [vmem:[%s10020_s27 + $0xc8] sm:$0xff] %v1269_v25  ;;  %v1273_v27 = vld [vmem:[%s10015_s26 + $0x1b0] sm:$0xff] }
  0x1f   : > { %1272 = vst [vmem:[%s10020_s27 + $0xd0] sm:$0xff] %v1271_v26  ;;  %v1275_v28 = vld [vmem:[%s10015_s26 + $0x1c0] sm:$0xff]  ;;  %v1277_v29 = vld [vmem:[%s10015_s26 + $0x1d0] sm:$0xff]  ;;  %1274 = vst [vmem:[%s10020_s27 + $0xd8] sm:$0xff] %v1273_v27 }
  0x20   : > { %1276 = vst [vmem:[%s10020_s27 + $0xe0] sm:$0xff] %v1275_v28  ;;  %1278 = vst [vmem:[%s10020_s27 + $0xe8] sm:$0xff] %v1277_v29  ;;  %v1279_v30 = vld [vmem:[%s10015_s26 + $0x1e0] sm:$0xff]  ;;  %v1281_v31 = vld [vmem:[%s10015_s26 + $0x1f0] sm:$0xff] }
  0x21   : > { %v1283_v32 = vld [vmem:[%s10015_s26 + $0x200] sm:$0xff]  ;;  %1280 = vst [vmem:[%s10020_s27 + $0xf0] sm:$0xff] %v1279_v30  ;;  %1282 = vst [vmem:[%s10020_s27 + $0xf8] sm:$0xff] %v1281_v31  ;;  %v1285_v33 = vld [vmem:[%s10015_s26 + $0x210] sm:$0xff] }
  0x22   : > { %1284 = vst [vmem:[%s10020_s27 + $0x100] sm:$0xff] %v1283_v32  ;;  %v1287_v34 = vld [vmem:[%s10015_s26 + $0x220] sm:$0xff]  ;;  %v1289_v35 = vld [vmem:[%s10015_s26 + $0x230] sm:$0xff]  ;;  %1286 = vst [vmem:[%s10020_s27 + $0x108] sm:$0xff] %v1285_v33 }
  0x23   : > { %1288 = vst [vmem:[%s10020_s27 + $0x110] sm:$0xff] %v1287_v34  ;;  %1290 = vst [vmem:[%s10020_s27 + $0x118] sm:$0xff] %v1289_v35  ;;  %v1291_v36 = vld [vmem:[%s10015_s26 + $0x240] sm:$0xff]  ;;  %v1293_v37 = vld [vmem:[%s10015_s26 + $0x250] sm:$0xff] }
  0x24   : > { %v1295_v38 = vld [vmem:[%s10015_s26 + $0x260] sm:$0xff]  ;;  %1292 = vst [vmem:[%s10020_s27 + $0x120] sm:$0xff] %v1291_v36  ;;  %1294 = vst [vmem:[%s10020_s27 + $0x128] sm:$0xff] %v1293_v37  ;;  %v1297_v39 = vld [vmem:[%s10015_s26 + $0x270] sm:$0xff] }
  0x25   : > { %1296 = vst [vmem:[%s10020_s27 + $0x130] sm:$0xff] %v1295_v38  ;;  %v1299_v40 = vld [vmem:[%s10015_s26 + $0x280] sm:$0xff]  ;;  %v1301_v41 = vld [vmem:[%s10015_s26 + $0x290] sm:$0xff]  ;;  %1298 = vst [vmem:[%s10020_s27 + $0x138] sm:$0xff] %v1297_v39 }
  0x26   : > { %1300 = vst [vmem:[%s10020_s27 + $0x140] sm:$0xff] %v1299_v40  ;;  %1302 = vst [vmem:[%s10020_s27 + $0x148] sm:$0xff] %v1301_v41  ;;  %v1303_v42 = vld [vmem:[%s10015_s26 + $0x2a0] sm:$0xff]  ;;  %v1305_v43 = vld [vmem:[%s10015_s26 + $0x2b0] sm:$0xff] }
  0x27   : > { %v1307_v44 = vld [vmem:[%s10015_s26 + $0x2c0] sm:$0xff]  ;;  %1304 = vst [vmem:[%s10020_s27 + $0x150] sm:$0xff] %v1303_v42  ;;  %1306 = vst [vmem:[%s10020_s27 + $0x158] sm:$0xff] %v1305_v43  ;;  %v1309_v45 = vld [vmem:[%s10015_s26 + $0x2d0] sm:$0xff] }
  0x28   : > { %1308 = vst [vmem:[%s10020_s27 + $0x160] sm:$0xff] %v1307_v44  ;;  %v1311_v46 = vld [vmem:[%s10015_s26 + $0x2e0] sm:$0xff]  ;;  %v1313_v47 = vld [vmem:[%s10015_s26 + $0x2f0] sm:$0xff]  ;;  %1310 = vst [vmem:[%s10020_s27 + $0x168] sm:$0xff] %v1309_v45 }
  0x29   : > { %1312 = vst [vmem:[%s10020_s27 + $0x170] sm:$0xff] %v1311_v46  ;;  %1314 = vst [vmem:[%s10020_s27 + $0x178] sm:$0xff] %v1313_v47  ;;  %v1315_v48 = vld [vmem:[%s10015_s26 + $0x300] sm:$0xff]  ;;  %v1317_v49 = vld [vmem:[%s10015_s26 + $0x310] sm:$0xff] }
  0x2a   : > { %v1319_v50 = vld [vmem:[%s10015_s26 + $0x320] sm:$0xff]  ;;  %1316 = vst [vmem:[%s10020_s27 + $0x180] sm:$0xff] %v1315_v48  ;;  %1318 = vst [vmem:[%s10020_s27 + $0x188] sm:$0xff] %v1317_v49  ;;  %v1321_v51 = vld [vmem:[%s10015_s26 + $0x330] sm:$0xff] }
  0x2b   : > { %1320 = vst [vmem:[%s10020_s27 + $0x190] sm:$0xff] %v1319_v50  ;;  %v1323_v52 = vld [vmem:[%s10015_s26 + $0x340] sm:$0xff]  ;;  %v1325_v53 = vld [vmem:[%s10015_s26 + $0x350] sm:$0xff]  ;;  %1322 = vst [vmem:[%s10020_s27 + $0x198] sm:$0xff] %v1321_v51 }
  0x2c   : > { %1324 = vst [vmem:[%s10020_s27 + $0x1a0] sm:$0xff] %v1323_v52  ;;  %1326 = vst [vmem:[%s10020_s27 + $0x1a8] sm:$0xff] %v1325_v53  ;;  %v1327_v54 = vld [vmem:[%s10015_s26 + $0x360] sm:$0xff]  ;;  %v1329_v55 = vld [vmem:[%s10015_s26 + $0x370] sm:$0xff] }
  0x2d   : > { %v1331_v56 = vld [vmem:[%s10015_s26 + $0x380] sm:$0xff]  ;;  %1328 = vst [vmem:[%s10020_s27 + $0x1b0] sm:$0xff] %v1327_v54  ;;  %1330 = vst [vmem:[%s10020_s27 + $0x1b8] sm:$0xff] %v1329_v55  ;;  %v1333_v57 = vld [vmem:[%s10015_s26 + $0x390] sm:$0xff] }
  0x2e   : > { %1332 = vst [vmem:[%s10020_s27 + $0x1c0] sm:$0xff] %v1331_v56  ;;  %v1335_v58 = vld [vmem:[%s10015_s26 + $0x3a0] sm:$0xff]  ;;  %v1337_v59 = vld [vmem:[%s10015_s26 + $0x3b0] sm:$0xff]  ;;  %1334 = vst [vmem:[%s10020_s27 + $0x1c8] sm:$0xff] %v1333_v57 }
  0x2f   : > { %1336 = vst [vmem:[%s10020_s27 + $0x1d0] sm:$0xff] %v1335_v58  ;;  %1338 = vst [vmem:[%s10020_s27 + $0x1d8] sm:$0xff] %v1337_v59  ;;  %v1339_v60 = vld [vmem:[%s10015_s26 + $0x3c0] sm:$0xff]  ;;  %v1341_v61 = vld [vmem:[%s10015_s26 + $0x3d0] sm:$0xff] }
  0x30   : > { %v1343_v62 = vld [vmem:[%s10015_s26 + $0x3e0] sm:$0xff]  ;;  %1340 = vst [vmem:[%s10020_s27 + $0x1e0] sm:$0xff] %v1339_v60  ;;  %1342 = vst [vmem:[%s10020_s27 + $0x1e8] sm:$0xff] %v1341_v61  ;;  %v1345_v63 = vld [vmem:[%s10015_s26 + $0x3f0] sm:$0xff] }
  0x31   : > { %1344 = vst [vmem:[%s10020_s27 + $0x1f0] sm:$0xff] %v1343_v62  ;;  %v1347_v0 = vld [vmem:[%s10015_s26 + $0x400] sm:$0xff]  ;;  %v1349_v1 = vld [vmem:[%s10015_s26 + $0x410] sm:$0xff]  ;;  %1346 = vst [vmem:[%s10020_s27 + $0x1f8] sm:$0xff] %v1345_v63 }
  0x32   : > { %1348 = vst [vmem:[%s10020_s27 + $0x200] sm:$0xff] %v1347_v0  ;;  %1350 = vst [vmem:[%s10020_s27 + $0x208] sm:$0xff] %v1349_v1  ;;  %v1351_v2 = vld [vmem:[%s10015_s26 + $0x420] sm:$0xff]  ;;  %v1353_v3 = vld [vmem:[%s10015_s26 + $0x430] sm:$0xff] }
  0x33   : > { %v1355_v4 = vld [vmem:[%s10015_s26 + $0x440] sm:$0xff]  ;;  %1352 = vst [vmem:[%s10020_s27 + $0x210] sm:$0xff] %v1351_v2  ;;  %1354 = vst [vmem:[%s10020_s27 + $0x218] sm:$0xff] %v1353_v3  ;;  %v1357_v5 = vld [vmem:[%s10015_s26 + $0x450] sm:$0xff] }
  0x34   : > { %1356 = vst [vmem:[%s10020_s27 + $0x220] sm:$0xff] %v1355_v4  ;;  %v1359_v6 = vld [vmem:[%s10015_s26 + $0x460] sm:$0xff]  ;;  %v1361_v7 = vld [vmem:[%s10015_s26 + $0x470] sm:$0xff]  ;;  %1358 = vst [vmem:[%s10020_s27 + $0x228] sm:$0xff] %v1357_v5 }
  0x35   : > { %1360 = vst [vmem:[%s10020_s27 + $0x230] sm:$0xff] %v1359_v6  ;;  %1362 = vst [vmem:[%s10020_s27 + $0x238] sm:$0xff] %v1361_v7  ;;  %v1363_v8 = vld [vmem:[%s10015_s26 + $0x480] sm:$0xff]  ;;  %v1365_v9 = vld [vmem:[%s10015_s26 + $0x490] sm:$0xff] }
  0x36   : > { %v1367_v10 = vld [vmem:[%s10015_s26 + $0x4a0] sm:$0xff]  ;;  %1364 = vst [vmem:[%s10020_s27 + $0x240] sm:$0xff] %v1363_v8  ;;  %1366 = vst [vmem:[%s10020_s27 + $0x248] sm:$0xff] %v1365_v9  ;;  %v1369_v11 = vld [vmem:[%s10015_s26 + $0x4b0] sm:$0xff] }
  0x37   : > { %1368 = vst [vmem:[%s10020_s27 + $0x250] sm:$0xff] %v1367_v10  ;;  %v1371_v12 = vld [vmem:[%s10015_s26 + $0x4c0] sm:$0xff]  ;;  %v1373_v13 = vld [vmem:[%s10015_s26 + $0x4d0] sm:$0xff]  ;;  %1370 = vst [vmem:[%s10020_s27 + $0x258] sm:$0xff] %v1369_v11 }
  0x38   : > { %1372 = vst [vmem:[%s10020_s27 + $0x260] sm:$0xff] %v1371_v12  ;;  %1374 = vst [vmem:[%s10020_s27 + $0x268] sm:$0xff] %v1373_v13  ;;  %v1375_v14 = vld [vmem:[%s10015_s26 + $0x4e0] sm:$0xff]  ;;  %v1377_v15 = vld [vmem:[%s10015_s26 + $0x4f0] sm:$0xff] }
  0x39   : > { %v1379_v16 = vld [vmem:[%s10015_s26 + $0x500] sm:$0xff]  ;;  %1376 = vst [vmem:[%s10020_s27 + $0x270] sm:$0xff] %v1375_v14  ;;  %1378 = vst [vmem:[%s10020_s27 + $0x278] sm:$0xff] %v1377_v15  ;;  %v1381_v17 = vld [vmem:[%s10015_s26 + $0x510] sm:$0xff] }
  0x3a   : > { %1380 = vst [vmem:[%s10020_s27 + $0x280] sm:$0xff] %v1379_v16  ;;  %v1383_v18 = vld [vmem:[%s10015_s26 + $0x520] sm:$0xff]  ;;  %v1385_v19 = vld [vmem:[%s10015_s26 + $0x530] sm:$0xff]  ;;  %1382 = vst [vmem:[%s10020_s27 + $0x288] sm:$0xff] %v1381_v17 }
  0x3b   : > { %1384 = vst [vmem:[%s10020_s27 + $0x290] sm:$0xff] %v1383_v18  ;;  %1386 = vst [vmem:[%s10020_s27 + $0x298] sm:$0xff] %v1385_v19  ;;  %v1387_v20 = vld [vmem:[%s10015_s26 + $0x540] sm:$0xff]  ;;  %v1389_v21 = vld [vmem:[%s10015_s26 + $0x550] sm:$0xff] }
  0x3c   : > { %v1391_v22 = vld [vmem:[%s10015_s26 + $0x560] sm:$0xff]  ;;  %1388 = vst [vmem:[%s10020_s27 + $0x2a0] sm:$0xff] %v1387_v20  ;;  %1390 = vst [vmem:[%s10020_s27 + $0x2a8] sm:$0xff] %v1389_v21  ;;  %v1393_v23 = vld [vmem:[%s10015_s26 + $0x570] sm:$0xff] }
  0x3d   : > { %1392 = vst [vmem:[%s10020_s27 + $0x2b0] sm:$0xff] %v1391_v22  ;;  %v1395_v24 = vld [vmem:[%s10015_s26 + $0x580] sm:$0xff]  ;;  %v1397_v25 = vld [vmem:[%s10015_s26 + $0x590] sm:$0xff]  ;;  %1394 = vst [vmem:[%s10020_s27 + $0x2b8] sm:$0xff] %v1393_v23 }
  0x3e   : > { %1396 = vst [vmem:[%s10020_s27 + $0x2c0] sm:$0xff] %v1395_v24  ;;  %1398 = vst [vmem:[%s10020_s27 + $0x2c8] sm:$0xff] %v1397_v25  ;;  %v1399_v26 = vld [vmem:[%s10015_s26 + $0x5a0] sm:$0xff]  ;;  %v1401_v27 = vld [vmem:[%s10015_s26 + $0x5b0] sm:$0xff] }
  0x3f   : > { %v1403_v28 = vld [vmem:[%s10015_s26 + $0x5c0] sm:$0xff]  ;;  %1400 = vst [vmem:[%s10020_s27 + $0x2d0] sm:$0xff] %v1399_v26  ;;  %1402 = vst [vmem:[%s10020_s27 + $0x2d8] sm:$0xff] %v1401_v27  ;;  %v1405_v29 = vld [vmem:[%s10015_s26 + $0x5d0] sm:$0xff] }
  0x40   : > { %1404 = vst [vmem:[%s10020_s27 + $0x2e0] sm:$0xff] %v1403_v28  ;;  %v1407_v30 = vld [vmem:[%s10015_s26 + $0x5e0] sm:$0xff]  ;;  %v1409_v31 = vld [vmem:[%s10015_s26 + $0x5f0] sm:$0xff]  ;;  %1406 = vst [vmem:[%s10020_s27 + $0x2e8] sm:$0xff] %v1405_v29 }
  0x41   : > { %1408 = vst [vmem:[%s10020_s27 + $0x2f0] sm:$0xff] %v1407_v30  ;;  %1410 = vst [vmem:[%s10020_s27 + $0x2f8] sm:$0xff] %v1409_v31  ;;  %v1411_v32 = vld [vmem:[%s10015_s26 + $0x600] sm:$0xff]  ;;  %v1413_v33 = vld [vmem:[%s10015_s26 + $0x610] sm:$0xff] }
  0x42   : > { %v1415_v34 = vld [vmem:[%s10015_s26 + $0x620] sm:$0xff]  ;;  %1412 = vst [vmem:[%s10020_s27 + $0x300] sm:$0xff] %v1411_v32  ;;  %1414 = vst [vmem:[%s10020_s27 + $0x308] sm:$0xff] %v1413_v33  ;;  %v1417_v35 = vld [vmem:[%s10015_s26 + $0x630] sm:$0xff] }
  0x43   : > { %1416 = vst [vmem:[%s10020_s27 + $0x310] sm:$0xff] %v1415_v34  ;;  %v1419_v36 = vld [vmem:[%s10015_s26 + $0x640] sm:$0xff]  ;;  %v1421_v37 = vld [vmem:[%s10015_s26 + $0x650] sm:$0xff]  ;;  %1418 = vst [vmem:[%s10020_s27 + $0x318] sm:$0xff] %v1417_v35 }
  0x44   : > { %1420 = vst [vmem:[%s10020_s27 + $0x320] sm:$0xff] %v1419_v36  ;;  %1422 = vst [vmem:[%s10020_s27 + $0x328] sm:$0xff] %v1421_v37  ;;  %v1423_v38 = vld [vmem:[%s10015_s26 + $0x660] sm:$0xff]  ;;  %v1425_v39 = vld [vmem:[%s10015_s26 + $0x670] sm:$0xff] }
  0x45   : > { %v1427_v40 = vld [vmem:[%s10015_s26 + $0x680] sm:$0xff]  ;;  %1424 = vst [vmem:[%s10020_s27 + $0x330] sm:$0xff] %v1423_v38  ;;  %1426 = vst [vmem:[%s10020_s27 + $0x338] sm:$0xff] %v1425_v39  ;;  %v1429_v41 = vld [vmem:[%s10015_s26 + $0x690] sm:$0xff] }
  0x46   : > { %1428 = vst [vmem:[%s10020_s27 + $0x340] sm:$0xff] %v1427_v40  ;;  %v1431_v42 = vld [vmem:[%s10015_s26 + $0x6a0] sm:$0xff]  ;;  %v1433_v43 = vld [vmem:[%s10015_s26 + $0x6b0] sm:$0xff]  ;;  %1430 = vst [vmem:[%s10020_s27 + $0x348] sm:$0xff] %v1429_v41 }
  0x47   : > { %1432 = vst [vmem:[%s10020_s27 + $0x350] sm:$0xff] %v1431_v42  ;;  %1434 = vst [vmem:[%s10020_s27 + $0x358] sm:$0xff] %v1433_v43  ;;  %v1435_v44 = vld [vmem:[%s10015_s26 + $0x6c0] sm:$0xff]  ;;  %v1437_v45 = vld [vmem:[%s10015_s26 + $0x6d0] sm:$0xff] }
  0x48   : > { %v1439_v46 = vld [vmem:[%s10015_s26 + $0x6e0] sm:$0xff]  ;;  %1436 = vst [vmem:[%s10020_s27 + $0x360] sm:$0xff] %v1435_v44  ;;  %1438 = vst [vmem:[%s10020_s27 + $0x368] sm:$0xff] %v1437_v45  ;;  %v1441_v47 = vld [vmem:[%s10015_s26 + $0x6f0] sm:$0xff] }
  0x49   : > { %1440 = vst [vmem:[%s10020_s27 + $0x370] sm:$0xff] %v1439_v46  ;;  %v1443_v48 = vld [vmem:[%s10015_s26 + $0x700] sm:$0xff]  ;;  %v1445_v49 = vld [vmem:[%s10015_s26 + $0x710] sm:$0xff]  ;;  %1442 = vst [vmem:[%s10020_s27 + $0x378] sm:$0xff] %v1441_v47 }
  0x4a   : > { %1444 = vst [vmem:[%s10020_s27 + $0x380] sm:$0xff] %v1443_v48  ;;  %1446 = vst [vmem:[%s10020_s27 + $0x388] sm:$0xff] %v1445_v49  ;;  %v1447_v50 = vld [vmem:[%s10015_s26 + $0x720] sm:$0xff]  ;;  %v1449_v51 = vld [vmem:[%s10015_s26 + $0x730] sm:$0xff] }
  0x4b   : > { %v1451_v52 = vld [vmem:[%s10015_s26 + $0x740] sm:$0xff]  ;;  %1448 = vst [vmem:[%s10020_s27 + $0x390] sm:$0xff] %v1447_v50  ;;  %1450 = vst [vmem:[%s10020_s27 + $0x398] sm:$0xff] %v1449_v51  ;;  %v1453_v53 = vld [vmem:[%s10015_s26 + $0x750] sm:$0xff] }
  0x4c   : > { %1452 = vst [vmem:[%s10020_s27 + $0x3a0] sm:$0xff] %v1451_v52  ;;  %v1455_v54 = vld [vmem:[%s10015_s26 + $0x760] sm:$0xff]  ;;  %v1457_v55 = vld [vmem:[%s10015_s26 + $0x770] sm:$0xff]  ;;  %1454 = vst [vmem:[%s10020_s27 + $0x3a8] sm:$0xff] %v1453_v53 }
  0x4d   : > { %1456 = vst [vmem:[%s10020_s27 + $0x3b0] sm:$0xff] %v1455_v54  ;;  %1458 = vst [vmem:[%s10020_s27 + $0x3b8] sm:$0xff] %v1457_v55  ;;  %v1459_v56 = vld [vmem:[%s10015_s26 + $0x780] sm:$0xff]  ;;  %v1461_v57 = vld [vmem:[%s10015_s26 + $0x790] sm:$0xff] }
  0x4e   : > { %v1463_v58 = vld [vmem:[%s10015_s26 + $0x7a0] sm:$0xff]  ;;  %1460 = vst [vmem:[%s10020_s27 + $0x3c0] sm:$0xff] %v1459_v56  ;;  %1462 = vst [vmem:[%s10020_s27 + $0x3c8] sm:$0xff] %v1461_v57  ;;  %v1465_v59 = vld [vmem:[%s10015_s26 + $0x7b0] sm:$0xff] }
  0x4f   : > { %1464 = vst [vmem:[%s10020_s27 + $0x3d0] sm:$0xff] %v1463_v58  ;;  %v1467_v60 = vld [vmem:[%s10015_s26 + $0x7c0] sm:$0xff]  ;;  %v1469_v61 = vld [vmem:[%s10015_s26 + $0x7d0] sm:$0xff]  ;;  %1466 = vst [vmem:[%s10020_s27 + $0x3d8] sm:$0xff] %v1465_v59 }
  0x50   : > { %1468 = vst [vmem:[%s10020_s27 + $0x3e0] sm:$0xff] %v1467_v60  ;;  %1470 = vst [vmem:[%s10020_s27 + $0x3e8] sm:$0xff] %v1469_v61  ;;  %v1471_v62 = vld [vmem:[%s10015_s26 + $0x7e0] sm:$0xff]  ;;  %v1473_v63 = vld [vmem:[%s10015_s26 + $0x7f0] sm:$0xff] }
  0x51   : > { %v1475_v0 = vld [vmem:[%s10015_s26 + $0x800] sm:$0xff]  ;;  %1472 = vst [vmem:[%s10020_s27 + $0x3f0] sm:$0xff] %v1471_v62  ;;  %1474 = vst [vmem:[%s10020_s27 + $0x3f8] sm:$0xff] %v1473_v63  ;;  %v1477_v1 = vld [vmem:[%s10015_s26 + $0x810] sm:$0xff] }
  0x52   : > { %1476 = vst [vmem:[%s10020_s27 + $0x400] sm:$0xff] %v1475_v0  ;;  %v1479_v2 = vld [vmem:[%s10015_s26 + $0x820] sm:$0xff]  ;;  %v1481_v3 = vld [vmem:[%s10015_s26 + $0x830] sm:$0xff]  ;;  %1478 = vst [vmem:[%s10020_s27 + $0x408] sm:$0xff] %v1477_v1 }
  0x53   : > { %1480 = vst [vmem:[%s10020_s27 + $0x410] sm:$0xff] %v1479_v2  ;;  %1482 = vst [vmem:[%s10020_s27 + $0x418] sm:$0xff] %v1481_v3  ;;  %v1483_v4 = vld [vmem:[%s10015_s26 + $0x840] sm:$0xff]  ;;  %v1485_v5 = vld [vmem:[%s10015_s26 + $0x850] sm:$0xff] }
  0x54   : > { %v1487_v6 = vld [vmem:[%s10015_s26 + $0x860] sm:$0xff]  ;;  %1484 = vst [vmem:[%s10020_s27 + $0x420] sm:$0xff] %v1483_v4  ;;  %1486 = vst [vmem:[%s10020_s27 + $0x428] sm:$0xff] %v1485_v5  ;;  %v1489_v7 = vld [vmem:[%s10015_s26 + $0x870] sm:$0xff] }
  0x55   : > { %1488 = vst [vmem:[%s10020_s27 + $0x430] sm:$0xff] %v1487_v6  ;;  %v1491_v8 = vld [vmem:[%s10015_s26 + $0x880] sm:$0xff]  ;;  %v1493_v9 = vld [vmem:[%s10015_s26 + $0x890] sm:$0xff]  ;;  %1490 = vst [vmem:[%s10020_s27 + $0x438] sm:$0xff] %v1489_v7 }
  0x56   : > { %1492 = vst [vmem:[%s10020_s27 + $0x440] sm:$0xff] %v1491_v8  ;;  %1494 = vst [vmem:[%s10020_s27 + $0x448] sm:$0xff] %v1493_v9  ;;  %v1495_v10 = vld [vmem:[%s10015_s26 + $0x8a0] sm:$0xff]  ;;  %v1497_v11 = vld [vmem:[%s10015_s26 + $0x8b0] sm:$0xff] }
  0x57   : > { %v1499_v12 = vld [vmem:[%s10015_s26 + $0x8c0] sm:$0xff]  ;;  %1496 = vst [vmem:[%s10020_s27 + $0x450] sm:$0xff] %v1495_v10  ;;  %1498 = vst [vmem:[%s10020_s27 + $0x458] sm:$0xff] %v1497_v11  ;;  %v1501_v13 = vld [vmem:[%s10015_s26 + $0x8d0] sm:$0xff] }
  0x58   : > { %1500 = vst [vmem:[%s10020_s27 + $0x460] sm:$0xff] %v1499_v12  ;;  %v1503_v14 = vld [vmem:[%s10015_s26 + $0x8e0] sm:$0xff]  ;;  %v1505_v15 = vld [vmem:[%s10015_s26 + $0x8f0] sm:$0xff]  ;;  %1502 = vst [vmem:[%s10020_s27 + $0x468] sm:$0xff] %v1501_v13 }
  0x59   : > { %1504 = vst [vmem:[%s10020_s27 + $0x470] sm:$0xff] %v1503_v14  ;;  %1506 = vst [vmem:[%s10020_s27 + $0x478] sm:$0xff] %v1505_v15  ;;  %v1507_v16 = vld [vmem:[%s10015_s26 + $0x900] sm:$0xff]  ;;  %v1509_v17 = vld [vmem:[%s10015_s26 + $0x910] sm:$0xff] }
  0x5a   : > { %v1511_v18 = vld [vmem:[%s10015_s26 + $0x920] sm:$0xff]  ;;  %1508 = vst [vmem:[%s10020_s27 + $0x480] sm:$0xff] %v1507_v16  ;;  %1510 = vst [vmem:[%s10020_s27 + $0x488] sm:$0xff] %v1509_v17  ;;  %v1513_v19 = vld [vmem:[%s10015_s26 + $0x930] sm:$0xff] }
  0x5b   : > { %1512 = vst [vmem:[%s10020_s27 + $0x490] sm:$0xff] %v1511_v18  ;;  %v1515_v20 = vld [vmem:[%s10015_s26 + $0x940] sm:$0xff]  ;;  %v1517_v21 = vld [vmem:[%s10015_s26 + $0x950] sm:$0xff]  ;;  %1514 = vst [vmem:[%s10020_s27 + $0x498] sm:$0xff] %v1513_v19 }
  0x5c   : > { %1516 = vst [vmem:[%s10020_s27 + $0x4a0] sm:$0xff] %v1515_v20  ;;  %1518 = vst [vmem:[%s10020_s27 + $0x4a8] sm:$0xff] %v1517_v21  ;;  %v1519_v22 = vld [vmem:[%s10015_s26 + $0x960] sm:$0xff]  ;;  %v1521_v23 = vld [vmem:[%s10015_s26 + $0x970] sm:$0xff] }
  0x5d   : > { %v1523_v24 = vld [vmem:[%s10015_s26 + $0x980] sm:$0xff]  ;;  %1520 = vst [vmem:[%s10020_s27 + $0x4b0] sm:$0xff] %v1519_v22  ;;  %1522 = vst [vmem:[%s10020_s27 + $0x4b8] sm:$0xff] %v1521_v23  ;;  %v1525_v25 = vld [vmem:[%s10015_s26 + $0x990] sm:$0xff] }
  0x5e   : > { %1524 = vst [vmem:[%s10020_s27 + $0x4c0] sm:$0xff] %v1523_v24  ;;  %v1527_v26 = vld [vmem:[%s10015_s26 + $0x9a0] sm:$0xff]  ;;  %v1529_v27 = vld [vmem:[%s10015_s26 + $0x9b0] sm:$0xff]  ;;  %1526 = vst [vmem:[%s10020_s27 + $0x4c8] sm:$0xff] %v1525_v25 }
  0x5f   : > { %1528 = vst [vmem:[%s10020_s27 + $0x4d0] sm:$0xff] %v1527_v26  ;;  %1530 = vst [vmem:[%s10020_s27 + $0x4d8] sm:$0xff] %v1529_v27  ;;  %v1531_v28 = vld [vmem:[%s10015_s26 + $0x9c0] sm:$0xff]  ;;  %v1533_v29 = vld [vmem:[%s10015_s26 + $0x9d0] sm:$0xff] }
  0x60   : > { %v1535_v30 = vld [vmem:[%s10015_s26 + $0x9e0] sm:$0xff]  ;;  %1532 = vst [vmem:[%s10020_s27 + $0x4e0] sm:$0xff] %v1531_v28  ;;  %1534 = vst [vmem:[%s10020_s27 + $0x4e8] sm:$0xff] %v1533_v29  ;;  %v1537_v31 = vld [vmem:[%s10015_s26 + $0x9f0] sm:$0xff] }
  0x61   : > { %1536 = vst [vmem:[%s10020_s27 + $0x4f0] sm:$0xff] %v1535_v30  ;;  %v1539_v32 = vld [vmem:[%s10015_s26 + $0xa00] sm:$0xff]  ;;  %v1541_v33 = vld [vmem:[%s10015_s26 + $0xa10] sm:$0xff]  ;;  %1538 = vst [vmem:[%s10020_s27 + $0x4f8] sm:$0xff] %v1537_v31 }
  0x62   : > { %1540 = vst [vmem:[%s10020_s27 + $0x500] sm:$0xff] %v1539_v32  ;;  %1542 = vst [vmem:[%s10020_s27 + $0x508] sm:$0xff] %v1541_v33  ;;  %v1543_v34 = vld [vmem:[%s10015_s26 + $0xa20] sm:$0xff]  ;;  %v1545_v35 = vld [vmem:[%s10015_s26 + $0xa30] sm:$0xff] }
  0x63   : > { %v1547_v36 = vld [vmem:[%s10015_s26 + $0xa40] sm:$0xff]  ;;  %1544 = vst [vmem:[%s10020_s27 + $0x510] sm:$0xff] %v1543_v34  ;;  %1546 = vst [vmem:[%s10020_s27 + $0x518] sm:$0xff] %v1545_v35  ;;  %v1549_v37 = vld [vmem:[%s10015_s26 + $0xa50] sm:$0xff] }
  0x64   : > { %1548 = vst [vmem:[%s10020_s27 + $0x520] sm:$0xff] %v1547_v36  ;;  %v1551_v38 = vld [vmem:[%s10015_s26 + $0xa60] sm:$0xff]  ;;  %v1553_v39 = vld [vmem:[%s10015_s26 + $0xa70] sm:$0xff]  ;;  %1550 = vst [vmem:[%s10020_s27 + $0x528] sm:$0xff] %v1549_v37 }
  0x65   : > { %1552 = vst [vmem:[%s10020_s27 + $0x530] sm:$0xff] %v1551_v38  ;;  %1554 = vst [vmem:[%s10020_s27 + $0x538] sm:$0xff] %v1553_v39  ;;  %v1555_v40 = vld [vmem:[%s10015_s26 + $0xa80] sm:$0xff]  ;;  %v1557_v41 = vld [vmem:[%s10015_s26 + $0xa90] sm:$0xff] }
  0x66   : > { %v1559_v42 = vld [vmem:[%s10015_s26 + $0xaa0] sm:$0xff]  ;;  %1556 = vst [vmem:[%s10020_s27 + $0x540] sm:$0xff] %v1555_v40  ;;  %1558 = vst [vmem:[%s10020_s27 + $0x548] sm:$0xff] %v1557_v41  ;;  %v1561_v43 = vld [vmem:[%s10015_s26 + $0xab0] sm:$0xff] }
  0x67   : > { %1560 = vst [vmem:[%s10020_s27 + $0x550] sm:$0xff] %v1559_v42  ;;  %v1563_v44 = vld [vmem:[%s10015_s26 + $0xac0] sm:$0xff]  ;;  %v1565_v45 = vld [vmem:[%s10015_s26 + $0xad0] sm:$0xff]  ;;  %1562 = vst [vmem:[%s10020_s27 + $0x558] sm:$0xff] %v1561_v43 }
  0x68   : > { %1564 = vst [vmem:[%s10020_s27 + $0x560] sm:$0xff] %v1563_v44  ;;  %1566 = vst [vmem:[%s10020_s27 + $0x568] sm:$0xff] %v1565_v45  ;;  %v1567_v46 = vld [vmem:[%s10015_s26 + $0xae0] sm:$0xff]  ;;  %v1569_v47 = vld [vmem:[%s10015_s26 + $0xaf0] sm:$0xff] }
  0x69   : > { %v1571_v48 = vld [vmem:[%s10015_s26 + $0xb00] sm:$0xff]  ;;  %1568 = vst [vmem:[%s10020_s27 + $0x570] sm:$0xff] %v1567_v46  ;;  %1570 = vst [vmem:[%s10020_s27 + $0x578] sm:$0xff] %v1569_v47  ;;  %v1573_v49 = vld [vmem:[%s10015_s26 + $0xb10] sm:$0xff] }
  0x6a   : > { %1572 = vst [vmem:[%s10020_s27 + $0x580] sm:$0xff] %v1571_v48  ;;  %v1575_v50 = vld [vmem:[%s10015_s26 + $0xb20] sm:$0xff]  ;;  %v1577_v51 = vld [vmem:[%s10015_s26 + $0xb30] sm:$0xff]  ;;  %1574 = vst [vmem:[%s10020_s27 + $0x588] sm:$0xff] %v1573_v49 }
  0x6b   : > { %1576 = vst [vmem:[%s10020_s27 + $0x590] sm:$0xff] %v1575_v50  ;;  %1578 = vst [vmem:[%s10020_s27 + $0x598] sm:$0xff] %v1577_v51  ;;  %v1579_v52 = vld [vmem:[%s10015_s26 + $0xb40] sm:$0xff]  ;;  %v1581_v53 = vld [vmem:[%s10015_s26 + $0xb50] sm:$0xff] }
  0x6c   : > { %v1583_v54 = vld [vmem:[%s10015_s26 + $0xb60] sm:$0xff]  ;;  %1580 = vst [vmem:[%s10020_s27 + $0x5a0] sm:$0xff] %v1579_v52  ;;  %1582 = vst [vmem:[%s10020_s27 + $0x5a8] sm:$0xff] %v1581_v53  ;;  %v1585_v55 = vld [vmem:[%s10015_s26 + $0xb70] sm:$0xff] }
  0x6d   : > { %1584 = vst [vmem:[%s10020_s27 + $0x5b0] sm:$0xff] %v1583_v54  ;;  %v1587_v56 = vld [vmem:[%s10015_s26 + $0xb80] sm:$0xff]  ;;  %v1589_v57 = vld [vmem:[%s10015_s26 + $0xb90] sm:$0xff]  ;;  %1586 = vst [vmem:[%s10020_s27 + $0x5b8] sm:$0xff] %v1585_v55 }
  0x6e   : > { %1588 = vst [vmem:[%s10020_s27 + $0x5c0] sm:$0xff] %v1587_v56  ;;  %1590 = vst [vmem:[%s10020_s27 + $0x5c8] sm:$0xff] %v1589_v57  ;;  %v1591_v58 = vld [vmem:[%s10015_s26 + $0xba0] sm:$0xff]  ;;  %v1593_v59 = vld [vmem:[%s10015_s26 + $0xbb0] sm:$0xff] }
  0x6f   : > { %v1595_v60 = vld [vmem:[%s10015_s26 + $0xbc0] sm:$0xff]  ;;  %1592 = vst [vmem:[%s10020_s27 + $0x5d0] sm:$0xff] %v1591_v58  ;;  %1594 = vst [vmem:[%s10020_s27 + $0x5d8] sm:$0xff] %v1593_v59  ;;  %v1597_v61 = vld [vmem:[%s10015_s26 + $0xbd0] sm:$0xff] }
  0x70   : > { %1596 = vst [vmem:[%s10020_s27 + $0x5e0] sm:$0xff] %v1595_v60  ;;  %v1599_v62 = vld [vmem:[%s10015_s26 + $0xbe0] sm:$0xff]  ;;  %v1601_v63 = vld [vmem:[%s10015_s26 + $0xbf0] sm:$0xff]  ;;  %1598 = vst [vmem:[%s10020_s27 + $0x5e8] sm:$0xff] %v1597_v61 }
  0x71   : > { %1600 = vst [vmem:[%s10020_s27 + $0x5f0] sm:$0xff] %v1599_v62  ;;  %1602 = vst [vmem:[%s10020_s27 + $0x5f8] sm:$0xff] %v1601_v63  ;;  %v1603_v0 = vld [vmem:[%s10015_s26 + $0xc00] sm:$0xff]  ;;  %v1605_v1 = vld [vmem:[%s10015_s26 + $0xc10] sm:$0xff] }
  0x72   : > { %v1607_v2 = vld [vmem:[%s10015_s26 + $0xc20] sm:$0xff]  ;;  %1604 = vst [vmem:[%s10020_s27 + $0x600] sm:$0xff] %v1603_v0  ;;  %1606 = vst [vmem:[%s10020_s27 + $0x608] sm:$0xff] %v1605_v1  ;;  %v1609_v3 = vld [vmem:[%s10015_s26 + $0xc30] sm:$0xff] }
  0x73   : > { %1608 = vst [vmem:[%s10020_s27 + $0x610] sm:$0xff] %v1607_v2  ;;  %v1611_v4 = vld [vmem:[%s10015_s26 + $0xc40] sm:$0xff]  ;;  %v1613_v5 = vld [vmem:[%s10015_s26 + $0xc50] sm:$0xff]  ;;  %1610 = vst [vmem:[%s10020_s27 + $0x618] sm:$0xff] %v1609_v3 }
  0x74   : > { %1612 = vst [vmem:[%s10020_s27 + $0x620] sm:$0xff] %v1611_v4  ;;  %1614 = vst [vmem:[%s10020_s27 + $0x628] sm:$0xff] %v1613_v5  ;;  %v1615_v6 = vld [vmem:[%s10015_s26 + $0xc60] sm:$0xff]  ;;  %v1617_v7 = vld [vmem:[%s10015_s26 + $0xc70] sm:$0xff] }
  0x75   : > { %v1619_v8 = vld [vmem:[%s10015_s26 + $0xc80] sm:$0xff]  ;;  %1616 = vst [vmem:[%s10020_s27 + $0x630] sm:$0xff] %v1615_v6  ;;  %1618 = vst [vmem:[%s10020_s27 + $0x638] sm:$0xff] %v1617_v7  ;;  %v1621_v9 = vld [vmem:[%s10015_s26 + $0xc90] sm:$0xff] }
  0x76   : > { %1620 = vst [vmem:[%s10020_s27 + $0x640] sm:$0xff] %v1619_v8  ;;  %v1623_v10 = vld [vmem:[%s10015_s26 + $0xca0] sm:$0xff]  ;;  %v1625_v11 = vld [vmem:[%s10015_s26 + $0xcb0] sm:$0xff]  ;;  %1622 = vst [vmem:[%s10020_s27 + $0x648] sm:$0xff] %v1621_v9 }
  0x77   : > { %1624 = vst [vmem:[%s10020_s27 + $0x650] sm:$0xff] %v1623_v10  ;;  %1626 = vst [vmem:[%s10020_s27 + $0x658] sm:$0xff] %v1625_v11  ;;  %v1627_v12 = vld [vmem:[%s10015_s26 + $0xcc0] sm:$0xff]  ;;  %v1629_v13 = vld [vmem:[%s10015_s26 + $0xcd0] sm:$0xff] }
  0x78   : > { %v1631_v14 = vld [vmem:[%s10015_s26 + $0xce0] sm:$0xff]  ;;  %1628 = vst [vmem:[%s10020_s27 + $0x660] sm:$0xff] %v1627_v12  ;;  %1630 = vst [vmem:[%s10020_s27 + $0x668] sm:$0xff] %v1629_v13  ;;  %v1633_v15 = vld [vmem:[%s10015_s26 + $0xcf0] sm:$0xff] }
  0x79   : > { %1632 = vst [vmem:[%s10020_s27 + $0x670] sm:$0xff] %v1631_v14  ;;  %v1635_v16 = vld [vmem:[%s10015_s26 + $0xd00] sm:$0xff]  ;;  %v1637_v17 = vld [vmem:[%s10015_s26 + $0xd10] sm:$0xff]  ;;  %1634 = vst [vmem:[%s10020_s27 + $0x678] sm:$0xff] %v1633_v15 }
  0x7a   : > { %1636 = vst [vmem:[%s10020_s27 + $0x680] sm:$0xff] %v1635_v16  ;;  %1638 = vst [vmem:[%s10020_s27 + $0x688] sm:$0xff] %v1637_v17  ;;  %v1639_v18 = vld [vmem:[%s10015_s26 + $0xd20] sm:$0xff]  ;;  %v1641_v19 = vld [vmem:[%s10015_s26 + $0xd30] sm:$0xff] }
  0x7b   : > { %v1643_v20 = vld [vmem:[%s10015_s26 + $0xd40] sm:$0xff]  ;;  %1640 = vst [vmem:[%s10020_s27 + $0x690] sm:$0xff] %v1639_v18  ;;  %1642 = vst [vmem:[%s10020_s27 + $0x698] sm:$0xff] %v1641_v19  ;;  %v1645_v21 = vld [vmem:[%s10015_s26 + $0xd50] sm:$0xff] }
  0x7c   : > { %1644 = vst [vmem:[%s10020_s27 + $0x6a0] sm:$0xff] %v1643_v20  ;;  %v1647_v22 = vld [vmem:[%s10015_s26 + $0xd60] sm:$0xff]  ;;  %v1649_v23 = vld [vmem:[%s10015_s26 + $0xd70] sm:$0xff]  ;;  %1646 = vst [vmem:[%s10020_s27 + $0x6a8] sm:$0xff] %v1645_v21 }
  0x7d   : > { %1648 = vst [vmem:[%s10020_s27 + $0x6b0] sm:$0xff] %v1647_v22  ;;  %1650 = vst [vmem:[%s10020_s27 + $0x6b8] sm:$0xff] %v1649_v23  ;;  %v1651_v24 = vld [vmem:[%s10015_s26 + $0xd80] sm:$0xff]  ;;  %v1653_v25 = vld [vmem:[%s10015_s26 + $0xd90] sm:$0xff] }
  0x7e   : > { %v1655_v26 = vld [vmem:[%s10015_s26 + $0xda0] sm:$0xff]  ;;  %1652 = vst [vmem:[%s10020_s27 + $0x6c0] sm:$0xff] %v1651_v24  ;;  %1654 = vst [vmem:[%s10020_s27 + $0x6c8] sm:$0xff] %v1653_v25  ;;  %v1657_v27 = vld [vmem:[%s10015_s26 + $0xdb0] sm:$0xff] }
  0x7f   : > { %1656 = vst [vmem:[%s10020_s27 + $0x6d0] sm:$0xff] %v1655_v26  ;;  %v1659_v28 = vld [vmem:[%s10015_s26 + $0xdc0] sm:$0xff]  ;;  %v1661_v29 = vld [vmem:[%s10015_s26 + $0xdd0] sm:$0xff]  ;;  %1658 = vst [vmem:[%s10020_s27 + $0x6d8] sm:$0xff] %v1657_v27 }
  0x80   : > { %1660 = vst [vmem:[%s10020_s27 + $0x6e0] sm:$0xff] %v1659_v28  ;;  %1662 = vst [vmem:[%s10020_s27 + $0x6e8] sm:$0xff] %v1661_v29  ;;  %v1663_v30 = vld [vmem:[%s10015_s26 + $0xde0] sm:$0xff]  ;;  %v1665_v31 = vld [vmem:[%s10015_s26 + $0xdf0] sm:$0xff] }
  0x81   : > { %v1667_v32 = vld [vmem:[%s10015_s26 + $0xe00] sm:$0xff]  ;;  %1664 = vst [vmem:[%s10020_s27 + $0x6f0] sm:$0xff] %v1663_v30  ;;  %1666 = vst [vmem:[%s10020_s27 + $0x6f8] sm:$0xff] %v1665_v31  ;;  %v1669_v33 = vld [vmem:[%s10015_s26 + $0xe10] sm:$0xff] }
  0x82   : > { %1668 = vst [vmem:[%s10020_s27 + $0x700] sm:$0xff] %v1667_v32  ;;  %v1671_v34 = vld [vmem:[%s10015_s26 + $0xe20] sm:$0xff]  ;;  %v1673_v35 = vld [vmem:[%s10015_s26 + $0xe30] sm:$0xff]  ;;  %1670 = vst [vmem:[%s10020_s27 + $0x708] sm:$0xff] %v1669_v33 }
  0x83   : > { %1672 = vst [vmem:[%s10020_s27 + $0x710] sm:$0xff] %v1671_v34  ;;  %1674 = vst [vmem:[%s10020_s27 + $0x718] sm:$0xff] %v1673_v35  ;;  %v1675_v36 = vld [vmem:[%s10015_s26 + $0xe40] sm:$0xff]  ;;  %v1677_v37 = vld [vmem:[%s10015_s26 + $0xe50] sm:$0xff] }
  0x84   : > { %v1679_v38 = vld [vmem:[%s10015_s26 + $0xe60] sm:$0xff]  ;;  %1676 = vst [vmem:[%s10020_s27 + $0x720] sm:$0xff] %v1675_v36  ;;  %1678 = vst [vmem:[%s10020_s27 + $0x728] sm:$0xff] %v1677_v37  ;;  %v1681_v39 = vld [vmem:[%s10015_s26 + $0xe70] sm:$0xff] }
  0x85   : > { %1680 = vst [vmem:[%s10020_s27 + $0x730] sm:$0xff] %v1679_v38  ;;  %v1683_v40 = vld [vmem:[%s10015_s26 + $0xe80] sm:$0xff]  ;;  %v1685_v41 = vld [vmem:[%s10015_s26 + $0xe90] sm:$0xff]  ;;  %1682 = vst [vmem:[%s10020_s27 + $0x738] sm:$0xff] %v1681_v39 }
  0x86   : > { %1684 = vst [vmem:[%s10020_s27 + $0x740] sm:$0xff] %v1683_v40  ;;  %1686 = vst [vmem:[%s10020_s27 + $0x748] sm:$0xff] %v1685_v41  ;;  %v1687_v42 = vld [vmem:[%s10015_s26 + $0xea0] sm:$0xff]  ;;  %v1689_v43 = vld [vmem:[%s10015_s26 + $0xeb0] sm:$0xff] }
  0x87   : > { %v1691_v44 = vld [vmem:[%s10015_s26 + $0xec0] sm:$0xff]  ;;  %1688 = vst [vmem:[%s10020_s27 + $0x750] sm:$0xff] %v1687_v42  ;;  %1690 = vst [vmem:[%s10020_s27 + $0x758] sm:$0xff] %v1689_v43  ;;  %v1693_v45 = vld [vmem:[%s10015_s26 + $0xed0] sm:$0xff] }
  0x88   : > { %1692 = vst [vmem:[%s10020_s27 + $0x760] sm:$0xff] %v1691_v44  ;;  %v1695_v46 = vld [vmem:[%s10015_s26 + $0xee0] sm:$0xff]  ;;  %v1697_v47 = vld [vmem:[%s10015_s26 + $0xef0] sm:$0xff]  ;;  %1694 = vst [vmem:[%s10020_s27 + $0x768] sm:$0xff] %v1693_v45 }
  0x89   : > { %1696 = vst [vmem:[%s10020_s27 + $0x770] sm:$0xff] %v1695_v46  ;;  %1698 = vst [vmem:[%s10020_s27 + $0x778] sm:$0xff] %v1697_v47  ;;  %v1699_v48 = vld [vmem:[%s10015_s26 + $0xf00] sm:$0xff]  ;;  %v1701_v49 = vld [vmem:[%s10015_s26 + $0xf10] sm:$0xff] }
  0x8a   : > { %v1703_v50 = vld [vmem:[%s10015_s26 + $0xf20] sm:$0xff]  ;;  %1700 = vst [vmem:[%s10020_s27 + $0x780] sm:$0xff] %v1699_v48  ;;  %1702 = vst [vmem:[%s10020_s27 + $0x788] sm:$0xff] %v1701_v49  ;;  %v1705_v51 = vld [vmem:[%s10015_s26 + $0xf30] sm:$0xff] }
  0x8b   : > { %1704 = vst [vmem:[%s10020_s27 + $0x790] sm:$0xff] %v1703_v50  ;;  %v1707_v52 = vld [vmem:[%s10015_s26 + $0xf40] sm:$0xff]  ;;  %v1709_v53 = vld [vmem:[%s10015_s26 + $0xf50] sm:$0xff]  ;;  %1706 = vst [vmem:[%s10020_s27 + $0x798] sm:$0xff] %v1705_v51 }
  0x8c   : > { %1708 = vst [vmem:[%s10020_s27 + $0x7a0] sm:$0xff] %v1707_v52  ;;  %1710 = vst [vmem:[%s10020_s27 + $0x7a8] sm:$0xff] %v1709_v53  ;;  %v1711_v54 = vld [vmem:[%s10015_s26 + $0xf60] sm:$0xff]  ;;  %v1713_v55 = vld [vmem:[%s10015_s26 + $0xf70] sm:$0xff] }
  0x8d   : > { %v1715_v56 = vld [vmem:[%s10015_s26 + $0xf80] sm:$0xff]  ;;  %1712 = vst [vmem:[%s10020_s27 + $0x7b0] sm:$0xff] %v1711_v54  ;;  %1714 = vst [vmem:[%s10020_s27 + $0x7b8] sm:$0xff] %v1713_v55  ;;  %v1717_v57 = vld [vmem:[%s10015_s26 + $0xf90] sm:$0xff] }
  0x8e   : > { %1716 = vst [vmem:[%s10020_s27 + $0x7c0] sm:$0xff] %v1715_v56  ;;  %v1719_v58 = vld [vmem:[%s10015_s26 + $0xfa0] sm:$0xff]  ;;  %v1721_v59 = vld [vmem:[%s10015_s26 + $0xfb0] sm:$0xff]  ;;  %1718 = vst [vmem:[%s10020_s27 + $0x7c8] sm:$0xff] %v1717_v57 }
  0x8f   : > { %1720 = vst [vmem:[%s10020_s27 + $0x7d0] sm:$0xff] %v1719_v58  ;;  %1722 = vst [vmem:[%s10020_s27 + $0x7d8] sm:$0xff] %v1721_v59  ;;  %v1723_v60 = vld [vmem:[%s10015_s26 + $0xfc0] sm:$0xff]  ;;  %v1725_v61 = vld [vmem:[%s10015_s26 + $0xfd0] sm:$0xff] }
  0x90   : > { %v1727_v62 = vld [vmem:[%s10015_s26 + $0xfe0] sm:$0xff]  ;;  %1724 = vst [vmem:[%s10020_s27 + $0x7e0] sm:$0xff] %v1723_v60  ;;  %1726 = vst [vmem:[%s10020_s27 + $0x7e8] sm:$0xff] %v1725_v61  ;;  %v1729_v63 = vld [vmem:[%s10015_s26 + $0xff0] sm:$0xff] }
  0x91   : > { %1728 = vst [vmem:[%s10020_s27 + $0x7f0] sm:$0xff] %v1727_v62  ;;  %v1731_v0 = vld [vmem:[%s10015_s26 + $0x1000] sm:$0xff]  ;;  %v1733_v1 = vld [vmem:[%s10015_s26 + $0x1010] sm:$0xff]  ;;  %1730 = vst [vmem:[%s10020_s27 + $0x7f8] sm:$0xff] %v1729_v63 }
  0x92   : > { %1732 = vst [vmem:[%s10020_s27 + $0x800] sm:$0xff] %v1731_v0  ;;  %1734 = vst [vmem:[%s10020_s27 + $0x808] sm:$0xff] %v1733_v1  ;;  %v1735_v2 = vld [vmem:[%s10015_s26 + $0x1020] sm:$0xff]  ;;  %v1737_v3 = vld [vmem:[%s10015_s26 + $0x1030] sm:$0xff] }
  0x93   : > { %v1739_v4 = vld [vmem:[%s10015_s26 + $0x1040] sm:$0xff]  ;;  %1736 = vst [vmem:[%s10020_s27 + $0x810] sm:$0xff] %v1735_v2  ;;  %1738 = vst [vmem:[%s10020_s27 + $0x818] sm:$0xff] %v1737_v3  ;;  %v1741_v5 = vld [vmem:[%s10015_s26 + $0x1050] sm:$0xff] }
  0x94   : > { %1740 = vst [vmem:[%s10020_s27 + $0x820] sm:$0xff] %v1739_v4  ;;  %v1743_v6 = vld [vmem:[%s10015_s26 + $0x1060] sm:$0xff]  ;;  %v1745_v7 = vld [vmem:[%s10015_s26 + $0x1070] sm:$0xff]  ;;  %1742 = vst [vmem:[%s10020_s27 + $0x828] sm:$0xff] %v1741_v5 }
  0x95   : > { %1744 = vst [vmem:[%s10020_s27 + $0x830] sm:$0xff] %v1743_v6  ;;  %1746 = vst [vmem:[%s10020_s27 + $0x838] sm:$0xff] %v1745_v7  ;;  %v1747_v8 = vld [vmem:[%s10015_s26 + $0x1080] sm:$0xff]  ;;  %v1749_v9 = vld [vmem:[%s10015_s26 + $0x1090] sm:$0xff] }
  0x96   : > { %v1751_v10 = vld [vmem:[%s10015_s26 + $0x10a0] sm:$0xff]  ;;  %1748 = vst [vmem:[%s10020_s27 + $0x840] sm:$0xff] %v1747_v8  ;;  %1750 = vst [vmem:[%s10020_s27 + $0x848] sm:$0xff] %v1749_v9  ;;  %v1753_v11 = vld [vmem:[%s10015_s26 + $0x10b0] sm:$0xff] }
  0x97   : > { %1752 = vst [vmem:[%s10020_s27 + $0x850] sm:$0xff] %v1751_v10  ;;  %v1755_v12 = vld [vmem:[%s10015_s26 + $0x10c0] sm:$0xff]  ;;  %v1757_v13 = vld [vmem:[%s10015_s26 + $0x10d0] sm:$0xff]  ;;  %1754 = vst [vmem:[%s10020_s27 + $0x858] sm:$0xff] %v1753_v11 }
  0x98   : > { %1756 = vst [vmem:[%s10020_s27 + $0x860] sm:$0xff] %v1755_v12  ;;  %1758 = vst [vmem:[%s10020_s27 + $0x868] sm:$0xff] %v1757_v13  ;;  %v1759_v14 = vld [vmem:[%s10015_s26 + $0x10e0] sm:$0xff]  ;;  %v1761_v15 = vld [vmem:[%s10015_s26 + $0x10f0] sm:$0xff] }
  0x99   : > { %v1763_v16 = vld [vmem:[%s10015_s26 + $0x1100] sm:$0xff]  ;;  %1760 = vst [vmem:[%s10020_s27 + $0x870] sm:$0xff] %v1759_v14  ;;  %1762 = vst [vmem:[%s10020_s27 + $0x878] sm:$0xff] %v1761_v15  ;;  %v1765_v17 = vld [vmem:[%s10015_s26 + $0x1110] sm:$0xff] }
  0x9a   : > { %1764 = vst [vmem:[%s10020_s27 + $0x880] sm:$0xff] %v1763_v16  ;;  %v1767_v18 = vld [vmem:[%s10015_s26 + $0x1120] sm:$0xff]  ;;  %v1769_v19 = vld [vmem:[%s10015_s26 + $0x1130] sm:$0xff]  ;;  %1766 = vst [vmem:[%s10020_s27 + $0x888] sm:$0xff] %v1765_v17 }
  0x9b   : > { %1768 = vst [vmem:[%s10020_s27 + $0x890] sm:$0xff] %v1767_v18  ;;  %1770 = vst [vmem:[%s10020_s27 + $0x898] sm:$0xff] %v1769_v19  ;;  %v1771_v20 = vld [vmem:[%s10015_s26 + $0x1140] sm:$0xff]  ;;  %v1773_v21 = vld [vmem:[%s10015_s26 + $0x1150] sm:$0xff] }
  0x9c   : > { %v1775_v22 = vld [vmem:[%s10015_s26 + $0x1160] sm:$0xff]  ;;  %1772 = vst [vmem:[%s10020_s27 + $0x8a0] sm:$0xff] %v1771_v20  ;;  %1774 = vst [vmem:[%s10020_s27 + $0x8a8] sm:$0xff] %v1773_v21  ;;  %v1777_v23 = vld [vmem:[%s10015_s26 + $0x1170] sm:$0xff] }
  0x9d   : > { %1776 = vst [vmem:[%s10020_s27 + $0x8b0] sm:$0xff] %v1775_v22  ;;  %v1779_v24 = vld [vmem:[%s10015_s26 + $0x1180] sm:$0xff]  ;;  %v1781_v25 = vld [vmem:[%s10015_s26 + $0x1190] sm:$0xff]  ;;  %1778 = vst [vmem:[%s10020_s27 + $0x8b8] sm:$0xff] %v1777_v23 }
  0x9e   : > { %1780 = vst [vmem:[%s10020_s27 + $0x8c0] sm:$0xff] %v1779_v24  ;;  %1782 = vst [vmem:[%s10020_s27 + $0x8c8] sm:$0xff] %v1781_v25  ;;  %v1783_v26 = vld [vmem:[%s10015_s26 + $0x11a0] sm:$0xff]  ;;  %v1785_v27 = vld [vmem:[%s10015_s26 + $0x11b0] sm:$0xff] }
  0x9f   : > { %v1787_v28 = vld [vmem:[%s10015_s26 + $0x11c0] sm:$0xff]  ;;  %1784 = vst [vmem:[%s10020_s27 + $0x8d0] sm:$0xff] %v1783_v26  ;;  %1786 = vst [vmem:[%s10020_s27 + $0x8d8] sm:$0xff] %v1785_v27  ;;  %v1789_v29 = vld [vmem:[%s10015_s26 + $0x11d0] sm:$0xff] }
  0xa0   : > { %1788 = vst [vmem:[%s10020_s27 + $0x8e0] sm:$0xff] %v1787_v28  ;;  %v1791_v30 = vld [vmem:[%s10015_s26 + $0x11e0] sm:$0xff]  ;;  %v1793_v31 = vld [vmem:[%s10015_s26 + $0x11f0] sm:$0xff]  ;;  %1790 = vst [vmem:[%s10020_s27 + $0x8e8] sm:$0xff] %v1789_v29 }
  0xa1   : > { %1792 = vst [vmem:[%s10020_s27 + $0x8f0] sm:$0xff] %v1791_v30  ;;  %1794 = vst [vmem:[%s10020_s27 + $0x8f8] sm:$0xff] %v1793_v31  ;;  %v1795_v32 = vld [vmem:[%s10015_s26 + $0x1200] sm:$0xff]  ;;  %v1797_v33 = vld [vmem:[%s10015_s26 + $0x1210] sm:$0xff] }
  0xa2   : > { %v1799_v34 = vld [vmem:[%s10015_s26 + $0x1220] sm:$0xff]  ;;  %1796 = vst [vmem:[%s10020_s27 + $0x900] sm:$0xff] %v1795_v32  ;;  %1798 = vst [vmem:[%s10020_s27 + $0x908] sm:$0xff] %v1797_v33  ;;  %v1801_v35 = vld [vmem:[%s10015_s26 + $0x1230] sm:$0xff] }
  0xa3   : > { %1800 = vst [vmem:[%s10020_s27 + $0x910] sm:$0xff] %v1799_v34  ;;  %v1803_v36 = vld [vmem:[%s10015_s26 + $0x1240] sm:$0xff]  ;;  %v1805_v37 = vld [vmem:[%s10015_s26 + $0x1250] sm:$0xff]  ;;  %1802 = vst [vmem:[%s10020_s27 + $0x918] sm:$0xff] %v1801_v35 }
  0xa4   : > { %1804 = vst [vmem:[%s10020_s27 + $0x920] sm:$0xff] %v1803_v36  ;;  %1806 = vst [vmem:[%s10020_s27 + $0x928] sm:$0xff] %v1805_v37  ;;  %v1807_v38 = vld [vmem:[%s10015_s26 + $0x1260] sm:$0xff]  ;;  %v1809_v39 = vld [vmem:[%s10015_s26 + $0x1270] sm:$0xff] }
  0xa5   : > { %v1811_v40 = vld [vmem:[%s10015_s26 + $0x1280] sm:$0xff]  ;;  %1808 = vst [vmem:[%s10020_s27 + $0x930] sm:$0xff] %v1807_v38  ;;  %1810 = vst [vmem:[%s10020_s27 + $0x938] sm:$0xff] %v1809_v39  ;;  %v1813_v41 = vld [vmem:[%s10015_s26 + $0x1290] sm:$0xff] }
  0xa6   : > { %1812 = vst [vmem:[%s10020_s27 + $0x940] sm:$0xff] %v1811_v40  ;;  %v1815_v42 = vld [vmem:[%s10015_s26 + $0x12a0] sm:$0xff]  ;;  %v1817_v43 = vld [vmem:[%s10015_s26 + $0x12b0] sm:$0xff]  ;;  %1814 = vst [vmem:[%s10020_s27 + $0x948] sm:$0xff] %v1813_v41 }
  0xa7   : > { %1816 = vst [vmem:[%s10020_s27 + $0x950] sm:$0xff] %v1815_v42  ;;  %1818 = vst [vmem:[%s10020_s27 + $0x958] sm:$0xff] %v1817_v43  ;;  %v1819_v44 = vld [vmem:[%s10015_s26 + $0x12c0] sm:$0xff]  ;;  %v1821_v45 = vld [vmem:[%s10015_s26 + $0x12d0] sm:$0xff] }
  0xa8   : > { %v1823_v46 = vld [vmem:[%s10015_s26 + $0x12e0] sm:$0xff]  ;;  %1820 = vst [vmem:[%s10020_s27 + $0x960] sm:$0xff] %v1819_v44  ;;  %1822 = vst [vmem:[%s10020_s27 + $0x968] sm:$0xff] %v1821_v45  ;;  %v1825_v47 = vld [vmem:[%s10015_s26 + $0x12f0] sm:$0xff] }
  0xa9   : > { %1824 = vst [vmem:[%s10020_s27 + $0x970] sm:$0xff] %v1823_v46  ;;  %v1827_v48 = vld [vmem:[%s10015_s26 + $0x1300] sm:$0xff]  ;;  %v1829_v49 = vld [vmem:[%s10015_s26 + $0x1310] sm:$0xff]  ;;  %1826 = vst [vmem:[%s10020_s27 + $0x978] sm:$0xff] %v1825_v47 }
  0xaa   : > { %1828 = vst [vmem:[%s10020_s27 + $0x980] sm:$0xff] %v1827_v48  ;;  %1830 = vst [vmem:[%s10020_s27 + $0x988] sm:$0xff] %v1829_v49  ;;  %v1831_v50 = vld [vmem:[%s10015_s26 + $0x1320] sm:$0xff]  ;;  %v1833_v51 = vld [vmem:[%s10015_s26 + $0x1330] sm:$0xff] }
  0xab   : > { %v1835_v52 = vld [vmem:[%s10015_s26 + $0x1340] sm:$0xff]  ;;  %1832 = vst [vmem:[%s10020_s27 + $0x990] sm:$0xff] %v1831_v50  ;;  %1834 = vst [vmem:[%s10020_s27 + $0x998] sm:$0xff] %v1833_v51  ;;  %v1837_v53 = vld [vmem:[%s10015_s26 + $0x1350] sm:$0xff] }
  0xac   : > { %1836 = vst [vmem:[%s10020_s27 + $0x9a0] sm:$0xff] %v1835_v52  ;;  %v1839_v54 = vld [vmem:[%s10015_s26 + $0x1360] sm:$0xff]  ;;  %v1841_v55 = vld [vmem:[%s10015_s26 + $0x1370] sm:$0xff]  ;;  %1838 = vst [vmem:[%s10020_s27 + $0x9a8] sm:$0xff] %v1837_v53 }
  0xad   : > { %1840 = vst [vmem:[%s10020_s27 + $0x9b0] sm:$0xff] %v1839_v54  ;;  %1842 = vst [vmem:[%s10020_s27 + $0x9b8] sm:$0xff] %v1841_v55  ;;  %v1843_v56 = vld [vmem:[%s10015_s26 + $0x1380] sm:$0xff]  ;;  %v1845_v57 = vld [vmem:[%s10015_s26 + $0x1390] sm:$0xff] }
  0xae   : > { %v1847_v58 = vld [vmem:[%s10015_s26 + $0x13a0] sm:$0xff]  ;;  %1844 = vst [vmem:[%s10020_s27 + $0x9c0] sm:$0xff] %v1843_v56  ;;  %1846 = vst [vmem:[%s10020_s27 + $0x9c8] sm:$0xff] %v1845_v57  ;;  %v1849_v59 = vld [vmem:[%s10015_s26 + $0x13b0] sm:$0xff] }
  0xaf   : > { %1848 = vst [vmem:[%s10020_s27 + $0x9d0] sm:$0xff] %v1847_v58  ;;  %v1851_v60 = vld [vmem:[%s10015_s26 + $0x13c0] sm:$0xff]  ;;  %v1853_v61 = vld [vmem:[%s10015_s26 + $0x13d0] sm:$0xff]  ;;  %1850 = vst [vmem:[%s10020_s27 + $0x9d8] sm:$0xff] %v1849_v59 }
  0xb0   : > { %1852 = vst [vmem:[%s10020_s27 + $0x9e0] sm:$0xff] %v1851_v60  ;;  %1854 = vst [vmem:[%s10020_s27 + $0x9e8] sm:$0xff] %v1853_v61  ;;  %v1855_v62 = vld [vmem:[%s10015_s26 + $0x13e0] sm:$0xff]  ;;  %v1857_v63 = vld [vmem:[%s10015_s26 + $0x13f0] sm:$0xff] }
  0xb1   : > { %v1859_v0 = vld [vmem:[%s10015_s26 + $0x1400] sm:$0xff]  ;;  %1856 = vst [vmem:[%s10020_s27 + $0x9f0] sm:$0xff] %v1855_v62  ;;  %1858 = vst [vmem:[%s10020_s27 + $0x9f8] sm:$0xff] %v1857_v63  ;;  %v1861_v1 = vld [vmem:[%s10015_s26 + $0x1410] sm:$0xff] }
  0xb2   : > { %1860 = vst [vmem:[%s10020_s27 + $0xa00] sm:$0xff] %v1859_v0  ;;  %v1863_v2 = vld [vmem:[%s10015_s26 + $0x1420] sm:$0xff]  ;;  %v1865_v3 = vld [vmem:[%s10015_s26 + $0x1430] sm:$0xff]  ;;  %1862 = vst [vmem:[%s10020_s27 + $0xa08] sm:$0xff] %v1861_v1 }
  0xb3   : > { %1864 = vst [vmem:[%s10020_s27 + $0xa10] sm:$0xff] %v1863_v2  ;;  %1866 = vst [vmem:[%s10020_s27 + $0xa18] sm:$0xff] %v1865_v3  ;;  %v1867_v4 = vld [vmem:[%s10015_s26 + $0x1440] sm:$0xff]  ;;  %v1869_v5 = vld [vmem:[%s10015_s26 + $0x1450] sm:$0xff] }
  0xb4   : > { %v1871_v6 = vld [vmem:[%s10015_s26 + $0x1460] sm:$0xff]  ;;  %1868 = vst [vmem:[%s10020_s27 + $0xa20] sm:$0xff] %v1867_v4  ;;  %1870 = vst [vmem:[%s10020_s27 + $0xa28] sm:$0xff] %v1869_v5  ;;  %v1873_v7 = vld [vmem:[%s10015_s26 + $0x1470] sm:$0xff] }
  0xb5   : > { %1872 = vst [vmem:[%s10020_s27 + $0xa30] sm:$0xff] %v1871_v6  ;;  %v1875_v8 = vld [vmem:[%s10015_s26 + $0x1480] sm:$0xff]  ;;  %v1877_v9 = vld [vmem:[%s10015_s26 + $0x1490] sm:$0xff]  ;;  %1874 = vst [vmem:[%s10020_s27 + $0xa38] sm:$0xff] %v1873_v7 }
  0xb6   : > { %1876 = vst [vmem:[%s10020_s27 + $0xa40] sm:$0xff] %v1875_v8  ;;  %1878 = vst [vmem:[%s10020_s27 + $0xa48] sm:$0xff] %v1877_v9  ;;  %v1879_v10 = vld [vmem:[%s10015_s26 + $0x14a0] sm:$0xff]  ;;  %v1881_v11 = vld [vmem:[%s10015_s26 + $0x14b0] sm:$0xff] }
  0xb7   : > { %v1883_v12 = vld [vmem:[%s10015_s26 + $0x14c0] sm:$0xff]  ;;  %1880 = vst [vmem:[%s10020_s27 + $0xa50] sm:$0xff] %v1879_v10  ;;  %1882 = vst [vmem:[%s10020_s27 + $0xa58] sm:$0xff] %v1881_v11  ;;  %v1885_v13 = vld [vmem:[%s10015_s26 + $0x14d0] sm:$0xff] }
  0xb8   : > { %1884 = vst [vmem:[%s10020_s27 + $0xa60] sm:$0xff] %v1883_v12  ;;  %v1887_v14 = vld [vmem:[%s10015_s26 + $0x14e0] sm:$0xff]  ;;  %v1889_v15 = vld [vmem:[%s10015_s26 + $0x14f0] sm:$0xff]  ;;  %1886 = vst [vmem:[%s10020_s27 + $0xa68] sm:$0xff] %v1885_v13 }
  0xb9   : > { %1888 = vst [vmem:[%s10020_s27 + $0xa70] sm:$0xff] %v1887_v14  ;;  %1890 = vst [vmem:[%s10020_s27 + $0xa78] sm:$0xff] %v1889_v15  ;;  %v1891_v16 = vld [vmem:[%s10015_s26 + $0x1500] sm:$0xff]  ;;  %v1893_v17 = vld [vmem:[%s10015_s26 + $0x1510] sm:$0xff] }
  0xba   : > { %v1895_v18 = vld [vmem:[%s10015_s26 + $0x1520] sm:$0xff]  ;;  %1892 = vst [vmem:[%s10020_s27 + $0xa80] sm:$0xff] %v1891_v16  ;;  %1894 = vst [vmem:[%s10020_s27 + $0xa88] sm:$0xff] %v1893_v17  ;;  %v1897_v19 = vld [vmem:[%s10015_s26 + $0x1530] sm:$0xff] }
  0xbb   : > { %1896 = vst [vmem:[%s10020_s27 + $0xa90] sm:$0xff] %v1895_v18  ;;  %v1899_v20 = vld [vmem:[%s10015_s26 + $0x1540] sm:$0xff]  ;;  %v1901_v21 = vld [vmem:[%s10015_s26 + $0x1550] sm:$0xff]  ;;  %1898 = vst [vmem:[%s10020_s27 + $0xa98] sm:$0xff] %v1897_v19 }
  0xbc   : > { %1900 = vst [vmem:[%s10020_s27 + $0xaa0] sm:$0xff] %v1899_v20  ;;  %1902 = vst [vmem:[%s10020_s27 + $0xaa8] sm:$0xff] %v1901_v21  ;;  %v1903_v22 = vld [vmem:[%s10015_s26 + $0x1560] sm:$0xff]  ;;  %v1905_v23 = vld [vmem:[%s10015_s26 + $0x1570] sm:$0xff] }
  0xbd   : > { %v1907_v24 = vld [vmem:[%s10015_s26 + $0x1580] sm:$0xff]  ;;  %1904 = vst [vmem:[%s10020_s27 + $0xab0] sm:$0xff] %v1903_v22  ;;  %1906 = vst [vmem:[%s10020_s27 + $0xab8] sm:$0xff] %v1905_v23  ;;  %v1909_v25 = vld [vmem:[%s10015_s26 + $0x1590] sm:$0xff] }
  0xbe   : > { %1908 = vst [vmem:[%s10020_s27 + $0xac0] sm:$0xff] %v1907_v24  ;;  %v1911_v26 = vld [vmem:[%s10015_s26 + $0x15a0] sm:$0xff]  ;;  %v1913_v27 = vld [vmem:[%s10015_s26 + $0x15b0] sm:$0xff]  ;;  %1910 = vst [vmem:[%s10020_s27 + $0xac8] sm:$0xff] %v1909_v25 }
  0xbf   : > { %1912 = vst [vmem:[%s10020_s27 + $0xad0] sm:$0xff] %v1911_v26  ;;  %1914 = vst [vmem:[%s10020_s27 + $0xad8] sm:$0xff] %v1913_v27  ;;  %v1915_v28 = vld [vmem:[%s10015_s26 + $0x15c0] sm:$0xff]  ;;  %v1917_v29 = vld [vmem:[%s10015_s26 + $0x15d0] sm:$0xff] }
  0xc0   : > { %v1919_v30 = vld [vmem:[%s10015_s26 + $0x15e0] sm:$0xff]  ;;  %1916 = vst [vmem:[%s10020_s27 + $0xae0] sm:$0xff] %v1915_v28  ;;  %1918 = vst [vmem:[%s10020_s27 + $0xae8] sm:$0xff] %v1917_v29  ;;  %v1921_v31 = vld [vmem:[%s10015_s26 + $0x15f0] sm:$0xff] }
  0xc1   : > { %1920 = vst [vmem:[%s10020_s27 + $0xaf0] sm:$0xff] %v1919_v30  ;;  %v1923_v32 = vld [vmem:[%s10015_s26 + $0x1600] sm:$0xff]  ;;  %v1925_v33 = vld [vmem:[%s10015_s26 + $0x1610] sm:$0xff]  ;;  %1922 = vst [vmem:[%s10020_s27 + $0xaf8] sm:$0xff] %v1921_v31 }
  0xc2   : > { %1924 = vst [vmem:[%s10020_s27 + $0xb00] sm:$0xff] %v1923_v32  ;;  %1926 = vst [vmem:[%s10020_s27 + $0xb08] sm:$0xff] %v1925_v33  ;;  %v1927_v34 = vld [vmem:[%s10015_s26 + $0x1620] sm:$0xff]  ;;  %v1929_v35 = vld [vmem:[%s10015_s26 + $0x1630] sm:$0xff] }
  0xc3   : > { %v1931_v36 = vld [vmem:[%s10015_s26 + $0x1640] sm:$0xff]  ;;  %1928 = vst [vmem:[%s10020_s27 + $0xb10] sm:$0xff] %v1927_v34  ;;  %1930 = vst [vmem:[%s10020_s27 + $0xb18] sm:$0xff] %v1929_v35  ;;  %v1933_v37 = vld [vmem:[%s10015_s26 + $0x1650] sm:$0xff] }
  0xc4   : > { %1932 = vst [vmem:[%s10020_s27 + $0xb20] sm:$0xff] %v1931_v36  ;;  %v1935_v38 = vld [vmem:[%s10015_s26 + $0x1660] sm:$0xff]  ;;  %v1937_v39 = vld [vmem:[%s10015_s26 + $0x1670] sm:$0xff]  ;;  %1934 = vst [vmem:[%s10020_s27 + $0xb28] sm:$0xff] %v1933_v37 }
  0xc5   : > { %1936 = vst [vmem:[%s10020_s27 + $0xb30] sm:$0xff] %v1935_v38  ;;  %1938 = vst [vmem:[%s10020_s27 + $0xb38] sm:$0xff] %v1937_v39  ;;  %v1939_v40 = vld [vmem:[%s10015_s26 + $0x1680] sm:$0xff]  ;;  %v1941_v41 = vld [vmem:[%s10015_s26 + $0x1690] sm:$0xff] }
  0xc6   : > { %v1943_v42 = vld [vmem:[%s10015_s26 + $0x16a0] sm:$0xff]  ;;  %1940 = vst [vmem:[%s10020_s27 + $0xb40] sm:$0xff] %v1939_v40  ;;  %1942 = vst [vmem:[%s10020_s27 + $0xb48] sm:$0xff] %v1941_v41  ;;  %v1945_v43 = vld [vmem:[%s10015_s26 + $0x16b0] sm:$0xff] }
  0xc7   : > { %1944 = vst [vmem:[%s10020_s27 + $0xb50] sm:$0xff] %v1943_v42  ;;  %v1947_v44 = vld [vmem:[%s10015_s26 + $0x16c0] sm:$0xff]  ;;  %v1949_v45 = vld [vmem:[%s10015_s26 + $0x16d0] sm:$0xff]  ;;  %1946 = vst [vmem:[%s10020_s27 + $0xb58] sm:$0xff] %v1945_v43 }
  0xc8   : > { %1948 = vst [vmem:[%s10020_s27 + $0xb60] sm:$0xff] %v1947_v44  ;;  %1950 = vst [vmem:[%s10020_s27 + $0xb68] sm:$0xff] %v1949_v45  ;;  %v1951_v46 = vld [vmem:[%s10015_s26 + $0x16e0] sm:$0xff]  ;;  %v1953_v47 = vld [vmem:[%s10015_s26 + $0x16f0] sm:$0xff] }
  0xc9   : > { %v1955_v48 = vld [vmem:[%s10015_s26 + $0x1700] sm:$0xff]  ;;  %1952 = vst [vmem:[%s10020_s27 + $0xb70] sm:$0xff] %v1951_v46  ;;  %1954 = vst [vmem:[%s10020_s27 + $0xb78] sm:$0xff] %v1953_v47  ;;  %v1957_v49 = vld [vmem:[%s10015_s26 + $0x1710] sm:$0xff] }
  0xca   : > { %1956 = vst [vmem:[%s10020_s27 + $0xb80] sm:$0xff] %v1955_v48  ;;  %v1959_v50 = vld [vmem:[%s10015_s26 + $0x1720] sm:$0xff]  ;;  %v1961_v51 = vld [vmem:[%s10015_s26 + $0x1730] sm:$0xff]  ;;  %1958 = vst [vmem:[%s10020_s27 + $0xb88] sm:$0xff] %v1957_v49 }
  0xcb   : > { %1960 = vst [vmem:[%s10020_s27 + $0xb90] sm:$0xff] %v1959_v50  ;;  %1962 = vst [vmem:[%s10020_s27 + $0xb98] sm:$0xff] %v1961_v51  ;;  %v1963_v52 = vld [vmem:[%s10015_s26 + $0x1740] sm:$0xff]  ;;  %v1965_v53 = vld [vmem:[%s10015_s26 + $0x1750] sm:$0xff] }
  0xcc   : > { %v1967_v54 = vld [vmem:[%s10015_s26 + $0x1760] sm:$0xff]  ;;  %1964 = vst [vmem:[%s10020_s27 + $0xba0] sm:$0xff] %v1963_v52  ;;  %1966 = vst [vmem:[%s10020_s27 + $0xba8] sm:$0xff] %v1965_v53  ;;  %v1969_v55 = vld [vmem:[%s10015_s26 + $0x1770] sm:$0xff] }
  0xcd   : > { %1968 = vst [vmem:[%s10020_s27 + $0xbb0] sm:$0xff] %v1967_v54  ;;  %v1971_v56 = vld [vmem:[%s10015_s26 + $0x1780] sm:$0xff]  ;;  %v1973_v57 = vld [vmem:[%s10015_s26 + $0x1790] sm:$0xff]  ;;  %1970 = vst [vmem:[%s10020_s27 + $0xbb8] sm:$0xff] %v1969_v55 }
  0xce   : > { %1972 = vst [vmem:[%s10020_s27 + $0xbc0] sm:$0xff] %v1971_v56  ;;  %1974 = vst [vmem:[%s10020_s27 + $0xbc8] sm:$0xff] %v1973_v57  ;;  %v1975_v58 = vld [vmem:[%s10015_s26 + $0x17a0] sm:$0xff]  ;;  %v1977_v59 = vld [vmem:[%s10015_s26 + $0x17b0] sm:$0xff] }
  0xcf   : > { %v1979_v60 = vld [vmem:[%s10015_s26 + $0x17c0] sm:$0xff]  ;;  %1976 = vst [vmem:[%s10020_s27 + $0xbd0] sm:$0xff] %v1975_v58  ;;  %1978 = vst [vmem:[%s10020_s27 + $0xbd8] sm:$0xff] %v1977_v59  ;;  %v1981_v61 = vld [vmem:[%s10015_s26 + $0x17d0] sm:$0xff] }
  0xd0   : > { %1980 = vst [vmem:[%s10020_s27 + $0xbe0] sm:$0xff] %v1979_v60  ;;  %v1983_v62 = vld [vmem:[%s10015_s26 + $0x17e0] sm:$0xff]  ;;  %v1985_v63 = vld [vmem:[%s10015_s26 + $0x17f0] sm:$0xff]  ;;  %1982 = vst [vmem:[%s10020_s27 + $0xbe8] sm:$0xff] %v1981_v61 }
  0xd1   : > { %1984 = vst [vmem:[%s10020_s27 + $0xbf0] sm:$0xff] %v1983_v62  ;;  %1986 = vst [vmem:[%s10020_s27 + $0xbf8] sm:$0xff] %v1985_v63  ;;  %v1987_v0 = vld [vmem:[%s10015_s26 + $0x1800] sm:$0xff]  ;;  %v1989_v1 = vld [vmem:[%s10015_s26 + $0x1810] sm:$0xff] }
  0xd2   : > { %v1991_v2 = vld [vmem:[%s10015_s26 + $0x1820] sm:$0xff]  ;;  %1988 = vst [vmem:[%s10020_s27 + $0xc00] sm:$0xff] %v1987_v0  ;;  %1990 = vst [vmem:[%s10020_s27 + $0xc08] sm:$0xff] %v1989_v1  ;;  %v1993_v3 = vld [vmem:[%s10015_s26 + $0x1830] sm:$0xff] }
  0xd3   : > { %1992 = vst [vmem:[%s10020_s27 + $0xc10] sm:$0xff] %v1991_v2  ;;  %v1995_v4 = vld [vmem:[%s10015_s26 + $0x1840] sm:$0xff]  ;;  %v1997_v5 = vld [vmem:[%s10015_s26 + $0x1850] sm:$0xff]  ;;  %1994 = vst [vmem:[%s10020_s27 + $0xc18] sm:$0xff] %v1993_v3 }
  0xd4   : > { %1996 = vst [vmem:[%s10020_s27 + $0xc20] sm:$0xff] %v1995_v4  ;;  %1998 = vst [vmem:[%s10020_s27 + $0xc28] sm:$0xff] %v1997_v5  ;;  %v1999_v6 = vld [vmem:[%s10015_s26 + $0x1860] sm:$0xff]  ;;  %v2001_v7 = vld [vmem:[%s10015_s26 + $0x1870] sm:$0xff] }
  0xd5   : > { %v2003_v8 = vld [vmem:[%s10015_s26 + $0x1880] sm:$0xff]  ;;  %2000 = vst [vmem:[%s10020_s27 + $0xc30] sm:$0xff] %v1999_v6  ;;  %2002 = vst [vmem:[%s10020_s27 + $0xc38] sm:$0xff] %v2001_v7  ;;  %v2005_v9 = vld [vmem:[%s10015_s26 + $0x1890] sm:$0xff] }
  0xd6   : > { %2004 = vst [vmem:[%s10020_s27 + $0xc40] sm:$0xff] %v2003_v8  ;;  %v2007_v10 = vld [vmem:[%s10015_s26 + $0x18a0] sm:$0xff]  ;;  %v2009_v11 = vld [vmem:[%s10015_s26 + $0x18b0] sm:$0xff]  ;;  %2006 = vst [vmem:[%s10020_s27 + $0xc48] sm:$0xff] %v2005_v9 }
  0xd7   : > { %2008 = vst [vmem:[%s10020_s27 + $0xc50] sm:$0xff] %v2007_v10  ;;  %2010 = vst [vmem:[%s10020_s27 + $0xc58] sm:$0xff] %v2009_v11  ;;  %v2011_v12 = vld [vmem:[%s10015_s26 + $0x18c0] sm:$0xff]  ;;  %v2013_v13 = vld [vmem:[%s10015_s26 + $0x18d0] sm:$0xff] }
  0xd8   : > { %v2015_v14 = vld [vmem:[%s10015_s26 + $0x18e0] sm:$0xff]  ;;  %2012 = vst [vmem:[%s10020_s27 + $0xc60] sm:$0xff] %v2011_v12  ;;  %2014 = vst [vmem:[%s10020_s27 + $0xc68] sm:$0xff] %v2013_v13  ;;  %v2017_v15 = vld [vmem:[%s10015_s26 + $0x18f0] sm:$0xff] }
  0xd9   : > { %2016 = vst [vmem:[%s10020_s27 + $0xc70] sm:$0xff] %v2015_v14  ;;  %v2019_v16 = vld [vmem:[%s10015_s26 + $0x1900] sm:$0xff]  ;;  %v2021_v17 = vld [vmem:[%s10015_s26 + $0x1910] sm:$0xff]  ;;  %2018 = vst [vmem:[%s10020_s27 + $0xc78] sm:$0xff] %v2017_v15 }
  0xda   : > { %2020 = vst [vmem:[%s10020_s27 + $0xc80] sm:$0xff] %v2019_v16  ;;  %2022 = vst [vmem:[%s10020_s27 + $0xc88] sm:$0xff] %v2021_v17  ;;  %v2023_v18 = vld [vmem:[%s10015_s26 + $0x1920] sm:$0xff]  ;;  %v2025_v19 = vld [vmem:[%s10015_s26 + $0x1930] sm:$0xff] }
  0xdb   : > { %v2027_v20 = vld [vmem:[%s10015_s26 + $0x1940] sm:$0xff]  ;;  %2024 = vst [vmem:[%s10020_s27 + $0xc90] sm:$0xff] %v2023_v18  ;;  %2026 = vst [vmem:[%s10020_s27 + $0xc98] sm:$0xff] %v2025_v19  ;;  %v2029_v21 = vld [vmem:[%s10015_s26 + $0x1950] sm:$0xff] }
  0xdc   : > { %2028 = vst [vmem:[%s10020_s27 + $0xca0] sm:$0xff] %v2027_v20  ;;  %v2031_v22 = vld [vmem:[%s10015_s26 + $0x1960] sm:$0xff]  ;;  %v2033_v23 = vld [vmem:[%s10015_s26 + $0x1970] sm:$0xff]  ;;  %2030 = vst [vmem:[%s10020_s27 + $0xca8] sm:$0xff] %v2029_v21 }
  0xdd   : > { %2032 = vst [vmem:[%s10020_s27 + $0xcb0] sm:$0xff] %v2031_v22  ;;  %2034 = vst [vmem:[%s10020_s27 + $0xcb8] sm:$0xff] %v2033_v23  ;;  %v2035_v24 = vld [vmem:[%s10015_s26 + $0x1980] sm:$0xff]  ;;  %v2037_v25 = vld [vmem:[%s10015_s26 + $0x1990] sm:$0xff] }
  0xde   : > { %v2039_v26 = vld [vmem:[%s10015_s26 + $0x19a0] sm:$0xff]  ;;  %2036 = vst [vmem:[%s10020_s27 + $0xcc0] sm:$0xff] %v2035_v24  ;;  %2038 = vst [vmem:[%s10020_s27 + $0xcc8] sm:$0xff] %v2037_v25  ;;  %v2041_v27 = vld [vmem:[%s10015_s26 + $0x19b0] sm:$0xff] }
  0xdf   : > { %2040 = vst [vmem:[%s10020_s27 + $0xcd0] sm:$0xff] %v2039_v26  ;;  %v2043_v28 = vld [vmem:[%s10015_s26 + $0x19c0] sm:$0xff]  ;;  %v2045_v29 = vld [vmem:[%s10015_s26 + $0x19d0] sm:$0xff]  ;;  %2042 = vst [vmem:[%s10020_s27 + $0xcd8] sm:$0xff] %v2041_v27 }
  0xe0   : > { %2044 = vst [vmem:[%s10020_s27 + $0xce0] sm:$0xff] %v2043_v28  ;;  %2046 = vst [vmem:[%s10020_s27 + $0xce8] sm:$0xff] %v2045_v29  ;;  %v2047_v30 = vld [vmem:[%s10015_s26 + $0x19e0] sm:$0xff]  ;;  %v2049_v31 = vld [vmem:[%s10015_s26 + $0x19f0] sm:$0xff] }
  0xe1   : > { %v2051_v32 = vld [vmem:[%s10015_s26 + $0x1a00] sm:$0xff]  ;;  %2048 = vst [vmem:[%s10020_s27 + $0xcf0] sm:$0xff] %v2047_v30  ;;  %2050 = vst [vmem:[%s10020_s27 + $0xcf8] sm:$0xff] %v2049_v31  ;;  %v2053_v33 = vld [vmem:[%s10015_s26 + $0x1a10] sm:$0xff] }
  0xe2   : > { %2052 = vst [vmem:[%s10020_s27 + $0xd00] sm:$0xff] %v2051_v32  ;;  %v2055_v34 = vld [vmem:[%s10015_s26 + $0x1a20] sm:$0xff]  ;;  %v2057_v35 = vld [vmem:[%s10015_s26 + $0x1a30] sm:$0xff]  ;;  %2054 = vst [vmem:[%s10020_s27 + $0xd08] sm:$0xff] %v2053_v33 }
  0xe3   : > { %2056 = vst [vmem:[%s10020_s27 + $0xd10] sm:$0xff] %v2055_v34  ;;  %2058 = vst [vmem:[%s10020_s27 + $0xd18] sm:$0xff] %v2057_v35  ;;  %v2059_v36 = vld [vmem:[%s10015_s26 + $0x1a40] sm:$0xff]  ;;  %v2061_v37 = vld [vmem:[%s10015_s26 + $0x1a50] sm:$0xff] }
  0xe4   : > { %v2063_v38 = vld [vmem:[%s10015_s26 + $0x1a60] sm:$0xff]  ;;  %2060 = vst [vmem:[%s10020_s27 + $0xd20] sm:$0xff] %v2059_v36  ;;  %2062 = vst [vmem:[%s10020_s27 + $0xd28] sm:$0xff] %v2061_v37  ;;  %v2065_v39 = vld [vmem:[%s10015_s26 + $0x1a70] sm:$0xff] }
  0xe5   : > { %2064 = vst [vmem:[%s10020_s27 + $0xd30] sm:$0xff] %v2063_v38  ;;  %v2067_v40 = vld [vmem:[%s10015_s26 + $0x1a80] sm:$0xff]  ;;  %v2069_v41 = vld [vmem:[%s10015_s26 + $0x1a90] sm:$0xff]  ;;  %2066 = vst [vmem:[%s10020_s27 + $0xd38] sm:$0xff] %v2065_v39 }
  0xe6   : > { %2068 = vst [vmem:[%s10020_s27 + $0xd40] sm:$0xff] %v2067_v40  ;;  %2070 = vst [vmem:[%s10020_s27 + $0xd48] sm:$0xff] %v2069_v41  ;;  %v2071_v42 = vld [vmem:[%s10015_s26 + $0x1aa0] sm:$0xff]  ;;  %v2073_v43 = vld [vmem:[%s10015_s26 + $0x1ab0] sm:$0xff] }
  0xe7   : > { %v2075_v44 = vld [vmem:[%s10015_s26 + $0x1ac0] sm:$0xff]  ;;  %2072 = vst [vmem:[%s10020_s27 + $0xd50] sm:$0xff] %v2071_v42  ;;  %2074 = vst [vmem:[%s10020_s27 + $0xd58] sm:$0xff] %v2073_v43  ;;  %v2077_v45 = vld [vmem:[%s10015_s26 + $0x1ad0] sm:$0xff] }
  0xe8   : > { %2076 = vst [vmem:[%s10020_s27 + $0xd60] sm:$0xff] %v2075_v44  ;;  %v2079_v46 = vld [vmem:[%s10015_s26 + $0x1ae0] sm:$0xff]  ;;  %v2081_v47 = vld [vmem:[%s10015_s26 + $0x1af0] sm:$0xff]  ;;  %2078 = vst [vmem:[%s10020_s27 + $0xd68] sm:$0xff] %v2077_v45 }
  0xe9   : > { %2080 = vst [vmem:[%s10020_s27 + $0xd70] sm:$0xff] %v2079_v46  ;;  %2082 = vst [vmem:[%s10020_s27 + $0xd78] sm:$0xff] %v2081_v47  ;;  %v2083_v48 = vld [vmem:[%s10015_s26 + $0x1b00] sm:$0xff]  ;;  %v2085_v49 = vld [vmem:[%s10015_s26 + $0x1b10] sm:$0xff] }
  0xea   : > { %v2087_v50 = vld [vmem:[%s10015_s26 + $0x1b20] sm:$0xff]  ;;  %2084 = vst [vmem:[%s10020_s27 + $0xd80] sm:$0xff] %v2083_v48  ;;  %2086 = vst [vmem:[%s10020_s27 + $0xd88] sm:$0xff] %v2085_v49  ;;  %v2089_v51 = vld [vmem:[%s10015_s26 + $0x1b30] sm:$0xff] }
  0xeb   : > { %2088 = vst [vmem:[%s10020_s27 + $0xd90] sm:$0xff] %v2087_v50  ;;  %v2091_v52 = vld [vmem:[%s10015_s26 + $0x1b40] sm:$0xff]  ;;  %v2093_v53 = vld [vmem:[%s10015_s26 + $0x1b50] sm:$0xff]  ;;  %2090 = vst [vmem:[%s10020_s27 + $0xd98] sm:$0xff] %v2089_v51 }
  0xec   : > { %2092 = vst [vmem:[%s10020_s27 + $0xda0] sm:$0xff] %v2091_v52  ;;  %2094 = vst [vmem:[%s10020_s27 + $0xda8] sm:$0xff] %v2093_v53  ;;  %v2095_v54 = vld [vmem:[%s10015_s26 + $0x1b60] sm:$0xff]  ;;  %v2097_v55 = vld [vmem:[%s10015_s26 + $0x1b70] sm:$0xff] }
  0xed   : > { %v2099_v56 = vld [vmem:[%s10015_s26 + $0x1b80] sm:$0xff]  ;;  %2096 = vst [vmem:[%s10020_s27 + $0xdb0] sm:$0xff] %v2095_v54  ;;  %2098 = vst [vmem:[%s10020_s27 + $0xdb8] sm:$0xff] %v2097_v55  ;;  %v2101_v57 = vld [vmem:[%s10015_s26 + $0x1b90] sm:$0xff] }
  0xee   : > { %2100 = vst [vmem:[%s10020_s27 + $0xdc0] sm:$0xff] %v2099_v56  ;;  %v2103_v58 = vld [vmem:[%s10015_s26 + $0x1ba0] sm:$0xff]  ;;  %v2105_v59 = vld [vmem:[%s10015_s26 + $0x1bb0] sm:$0xff]  ;;  %2102 = vst [vmem:[%s10020_s27 + $0xdc8] sm:$0xff] %v2101_v57 }
  0xef   : > { %2104 = vst [vmem:[%s10020_s27 + $0xdd0] sm:$0xff] %v2103_v58  ;;  %2106 = vst [vmem:[%s10020_s27 + $0xdd8] sm:$0xff] %v2105_v59  ;;  %v2107_v60 = vld [vmem:[%s10015_s26 + $0x1bc0] sm:$0xff]  ;;  %v2109_v61 = vld [vmem:[%s10015_s26 + $0x1bd0] sm:$0xff] }
  0xf0   : > { %v2111_v62 = vld [vmem:[%s10015_s26 + $0x1be0] sm:$0xff]  ;;  %2108 = vst [vmem:[%s10020_s27 + $0xde0] sm:$0xff] %v2107_v60  ;;  %2110 = vst [vmem:[%s10020_s27 + $0xde8] sm:$0xff] %v2109_v61  ;;  %v2113_v63 = vld [vmem:[%s10015_s26 + $0x1bf0] sm:$0xff] }
  0xf1   : > { %2112 = vst [vmem:[%s10020_s27 + $0xdf0] sm:$0xff] %v2111_v62  ;;  %v2115_v0 = vld [vmem:[%s10015_s26 + $0x1c00] sm:$0xff]  ;;  %v2117_v1 = vld [vmem:[%s10015_s26 + $0x1c10] sm:$0xff]  ;;  %2114 = vst [vmem:[%s10020_s27 + $0xdf8] sm:$0xff] %v2113_v63 }
  0xf2   : > { %2116 = vst [vmem:[%s10020_s27 + $0xe00] sm:$0xff] %v2115_v0  ;;  %2118 = vst [vmem:[%s10020_s27 + $0xe08] sm:$0xff] %v2117_v1  ;;  %v2119_v2 = vld [vmem:[%s10015_s26 + $0x1c20] sm:$0xff]  ;;  %v2121_v3 = vld [vmem:[%s10015_s26 + $0x1c30] sm:$0xff] }
  0xf3   : > { %v2123_v4 = vld [vmem:[%s10015_s26 + $0x1c40] sm:$0xff]  ;;  %2120 = vst [vmem:[%s10020_s27 + $0xe10] sm:$0xff] %v2119_v2  ;;  %2122 = vst [vmem:[%s10020_s27 + $0xe18] sm:$0xff] %v2121_v3  ;;  %v2125_v5 = vld [vmem:[%s10015_s26 + $0x1c50] sm:$0xff] }
  0xf4   : > { %2124 = vst [vmem:[%s10020_s27 + $0xe20] sm:$0xff] %v2123_v4  ;;  %v2127_v6 = vld [vmem:[%s10015_s26 + $0x1c60] sm:$0xff]  ;;  %v2129_v7 = vld [vmem:[%s10015_s26 + $0x1c70] sm:$0xff]  ;;  %2126 = vst [vmem:[%s10020_s27 + $0xe28] sm:$0xff] %v2125_v5 }
  0xf5   : > { %2128 = vst [vmem:[%s10020_s27 + $0xe30] sm:$0xff] %v2127_v6  ;;  %2130 = vst [vmem:[%s10020_s27 + $0xe38] sm:$0xff] %v2129_v7  ;;  %v2131_v8 = vld [vmem:[%s10015_s26 + $0x1c80] sm:$0xff]  ;;  %v2133_v9 = vld [vmem:[%s10015_s26 + $0x1c90] sm:$0xff] }
  0xf6   : > { %v2135_v10 = vld [vmem:[%s10015_s26 + $0x1ca0] sm:$0xff]  ;;  %2132 = vst [vmem:[%s10020_s27 + $0xe40] sm:$0xff] %v2131_v8  ;;  %2134 = vst [vmem:[%s10020_s27 + $0xe48] sm:$0xff] %v2133_v9  ;;  %v2137_v11 = vld [vmem:[%s10015_s26 + $0x1cb0] sm:$0xff] }
  0xf7   : > { %2136 = vst [vmem:[%s10020_s27 + $0xe50] sm:$0xff] %v2135_v10  ;;  %v2139_v12 = vld [vmem:[%s10015_s26 + $0x1cc0] sm:$0xff]  ;;  %v2141_v13 = vld [vmem:[%s10015_s26 + $0x1cd0] sm:$0xff]  ;;  %2138 = vst [vmem:[%s10020_s27 + $0xe58] sm:$0xff] %v2137_v11 }
  0xf8   : > { %2140 = vst [vmem:[%s10020_s27 + $0xe60] sm:$0xff] %v2139_v12  ;;  %2142 = vst [vmem:[%s10020_s27 + $0xe68] sm:$0xff] %v2141_v13  ;;  %v2143_v14 = vld [vmem:[%s10015_s26 + $0x1ce0] sm:$0xff]  ;;  %v2145_v15 = vld [vmem:[%s10015_s26 + $0x1cf0] sm:$0xff] }
  0xf9   : > { %v2147_v16 = vld [vmem:[%s10015_s26 + $0x1d00] sm:$0xff]  ;;  %2144 = vst [vmem:[%s10020_s27 + $0xe70] sm:$0xff] %v2143_v14  ;;  %2146 = vst [vmem:[%s10020_s27 + $0xe78] sm:$0xff] %v2145_v15  ;;  %v2149_v17 = vld [vmem:[%s10015_s26 + $0x1d10] sm:$0xff] }
  0xfa   : > { %2148 = vst [vmem:[%s10020_s27 + $0xe80] sm:$0xff] %v2147_v16  ;;  %v2151_v18 = vld [vmem:[%s10015_s26 + $0x1d20] sm:$0xff]  ;;  %v2153_v19 = vld [vmem:[%s10015_s26 + $0x1d30] sm:$0xff]  ;;  %2150 = vst [vmem:[%s10020_s27 + $0xe88] sm:$0xff] %v2149_v17 }
  0xfb   : > { %2152 = vst [vmem:[%s10020_s27 + $0xe90] sm:$0xff] %v2151_v18  ;;  %2154 = vst [vmem:[%s10020_s27 + $0xe98] sm:$0xff] %v2153_v19  ;;  %v2155_v20 = vld [vmem:[%s10015_s26 + $0x1d40] sm:$0xff]  ;;  %v2157_v21 = vld [vmem:[%s10015_s26 + $0x1d50] sm:$0xff] }
  0xfc   : > { %v2159_v22 = vld [vmem:[%s10015_s26 + $0x1d60] sm:$0xff]  ;;  %2156 = vst [vmem:[%s10020_s27 + $0xea0] sm:$0xff] %v2155_v20  ;;  %2158 = vst [vmem:[%s10020_s27 + $0xea8] sm:$0xff] %v2157_v21  ;;  %v2161_v23 = vld [vmem:[%s10015_s26 + $0x1d70] sm:$0xff] }
  0xfd   : > { %2160 = vst [vmem:[%s10020_s27 + $0xeb0] sm:$0xff] %v2159_v22  ;;  %v2163_v24 = vld [vmem:[%s10015_s26 + $0x1d80] sm:$0xff]  ;;  %v2165_v25 = vld [vmem:[%s10015_s26 + $0x1d90] sm:$0xff]  ;;  %2162 = vst [vmem:[%s10020_s27 + $0xeb8] sm:$0xff] %v2161_v23 }
  0xfe   : > { %2164 = vst [vmem:[%s10020_s27 + $0xec0] sm:$0xff] %v2163_v24  ;;  %2166 = vst [vmem:[%s10020_s27 + $0xec8] sm:$0xff] %v2165_v25  ;;  %v2167_v26 = vld [vmem:[%s10015_s26 + $0x1da0] sm:$0xff]  ;;  %v2169_v27 = vld [vmem:[%s10015_s26 + $0x1db0] sm:$0xff] }
  0xff   : > { %v2171_v28 = vld [vmem:[%s10015_s26 + $0x1dc0] sm:$0xff]  ;;  %2168 = vst [vmem:[%s10020_s27 + $0xed0] sm:$0xff] %v2167_v26  ;;  %2170 = vst [vmem:[%s10020_s27 + $0xed8] sm:$0xff] %v2169_v27  ;;  %v2173_v29 = vld [vmem:[%s10015_s26 + $0x1dd0] sm:$0xff] }
 0x100   : > { %2172 = vst [vmem:[%s10020_s27 + $0xee0] sm:$0xff] %v2171_v28  ;;  %v2175_v30 = vld [vmem:[%s10015_s26 + $0x1de0] sm:$0xff]  ;;  %v2177_v31 = vld [vmem:[%s10015_s26 + $0x1df0] sm:$0xff]  ;;  %2174 = vst [vmem:[%s10020_s27 + $0xee8] sm:$0xff] %v2173_v29 }
 0x101   : > { %2176 = vst [vmem:[%s10020_s27 + $0xef0] sm:$0xff] %v2175_v30  ;;  %2178 = vst [vmem:[%s10020_s27 + $0xef8] sm:$0xff] %v2177_v31  ;;  %v2179_v32 = vld [vmem:[%s10015_s26 + $0x1e00] sm:$0xff]  ;;  %v2181_v33 = vld [vmem:[%s10015_s26 + $0x1e10] sm:$0xff] }
 0x102   : > { %v2183_v34 = vld [vmem:[%s10015_s26 + $0x1e20] sm:$0xff]  ;;  %2180 = vst [vmem:[%s10020_s27 + $0xf00] sm:$0xff] %v2179_v32  ;;  %2182 = vst [vmem:[%s10020_s27 + $0xf08] sm:$0xff] %v2181_v33  ;;  %v2185_v35 = vld [vmem:[%s10015_s26 + $0x1e30] sm:$0xff] }
 0x103   : > { %2184 = vst [vmem:[%s10020_s27 + $0xf10] sm:$0xff] %v2183_v34  ;;  %v2187_v36 = vld [vmem:[%s10015_s26 + $0x1e40] sm:$0xff]  ;;  %v2189_v37 = vld [vmem:[%s10015_s26 + $0x1e50] sm:$0xff]  ;;  %2186 = vst [vmem:[%s10020_s27 + $0xf18] sm:$0xff] %v2185_v35 }
 0x104   : > { %2188 = vst [vmem:[%s10020_s27 + $0xf20] sm:$0xff] %v2187_v36  ;;  %2190 = vst [vmem:[%s10020_s27 + $0xf28] sm:$0xff] %v2189_v37  ;;  %v2191_v38 = vld [vmem:[%s10015_s26 + $0x1e60] sm:$0xff]  ;;  %v2193_v39 = vld [vmem:[%s10015_s26 + $0x1e70] sm:$0xff] }
 0x105   : > { %v2195_v40 = vld [vmem:[%s10015_s26 + $0x1e80] sm:$0xff]  ;;  %2192 = vst [vmem:[%s10020_s27 + $0xf30] sm:$0xff] %v2191_v38  ;;  %2194 = vst [vmem:[%s10020_s27 + $0xf38] sm:$0xff] %v2193_v39  ;;  %v2197_v41 = vld [vmem:[%s10015_s26 + $0x1e90] sm:$0xff] }
 0x106   : > { %2196 = vst [vmem:[%s10020_s27 + $0xf40] sm:$0xff] %v2195_v40  ;;  %v2199_v42 = vld [vmem:[%s10015_s26 + $0x1ea0] sm:$0xff]  ;;  %v2201_v43 = vld [vmem:[%s10015_s26 + $0x1eb0] sm:$0xff]  ;;  %2198 = vst [vmem:[%s10020_s27 + $0xf48] sm:$0xff] %v2197_v41 }
 0x107   : > { %2200 = vst [vmem:[%s10020_s27 + $0xf50] sm:$0xff] %v2199_v42  ;;  %2202 = vst [vmem:[%s10020_s27 + $0xf58] sm:$0xff] %v2201_v43  ;;  %v2203_v44 = vld [vmem:[%s10015_s26 + $0x1ec0] sm:$0xff]  ;;  %v2205_v45 = vld [vmem:[%s10015_s26 + $0x1ed0] sm:$0xff] }
 0x108   : > { %v2207_v46 = vld [vmem:[%s10015_s26 + $0x1ee0] sm:$0xff]  ;;  %2204 = vst [vmem:[%s10020_s27 + $0xf60] sm:$0xff] %v2203_v44  ;;  %2206 = vst [vmem:[%s10020_s27 + $0xf68] sm:$0xff] %v2205_v45  ;;  %v2209_v47 = vld [vmem:[%s10015_s26 + $0x1ef0] sm:$0xff] }
 0x109   : > { %2208 = vst [vmem:[%s10020_s27 + $0xf70] sm:$0xff] %v2207_v46  ;;  %v2211_v48 = vld [vmem:[%s10015_s26 + $0x1f00] sm:$0xff]  ;;  %v2213_v49 = vld [vmem:[%s10015_s26 + $0x1f10] sm:$0xff]  ;;  %2210 = vst [vmem:[%s10020_s27 + $0xf78] sm:$0xff] %v2209_v47 }
 0x10a   : > { %2212 = vst [vmem:[%s10020_s27 + $0xf80] sm:$0xff] %v2211_v48  ;;  %2214 = vst [vmem:[%s10020_s27 + $0xf88] sm:$0xff] %v2213_v49  ;;  %v2215_v50 = vld [vmem:[%s10015_s26 + $0x1f20] sm:$0xff]  ;;  %v2217_v51 = vld [vmem:[%s10015_s26 + $0x1f30] sm:$0xff] }
 0x10b   : > { %v2219_v52 = vld [vmem:[%s10015_s26 + $0x1f40] sm:$0xff]  ;;  %2216 = vst [vmem:[%s10020_s27 + $0xf90] sm:$0xff] %v2215_v50  ;;  %2218 = vst [vmem:[%s10020_s27 + $0xf98] sm:$0xff] %v2217_v51  ;;  %v2221_v53 = vld [vmem:[%s10015_s26 + $0x1f50] sm:$0xff] }
 0x10c   : > { %2220 = vst [vmem:[%s10020_s27 + $0xfa0] sm:$0xff] %v2219_v52  ;;  %v2223_v54 = vld [vmem:[%s10015_s26 + $0x1f60] sm:$0xff]  ;;  %v2225_v55 = vld [vmem:[%s10015_s26 + $0x1f70] sm:$0xff]  ;;  %2222 = vst [vmem:[%s10020_s27 + $0xfa8] sm:$0xff] %v2221_v53 }
 0x10d   : > { %2224 = vst [vmem:[%s10020_s27 + $0xfb0] sm:$0xff] %v2223_v54  ;;  %2226 = vst [vmem:[%s10020_s27 + $0xfb8] sm:$0xff] %v2225_v55  ;;  %v2227_v56 = vld [vmem:[%s10015_s26 + $0x1f80] sm:$0xff]  ;;  %v2229_v57 = vld [vmem:[%s10015_s26 + $0x1f90] sm:$0xff] }
 0x10e   : > { %v2231_v58 = vld [vmem:[%s10015_s26 + $0x1fa0] sm:$0xff]  ;;  %2228 = vst [vmem:[%s10020_s27 + $0xfc0] sm:$0xff] %v2227_v56  ;;  %2230 = vst [vmem:[%s10020_s27 + $0xfc8] sm:$0xff] %v2229_v57  ;;  %v2233_v59 = vld [vmem:[%s10015_s26 + $0x1fb0] sm:$0xff] }
 0x10f   : > { %2232 = vst [vmem:[%s10020_s27 + $0xfd0] sm:$0xff] %v2231_v58  ;;  %v2235_v60 = vld [vmem:[%s10015_s26 + $0x1fc0] sm:$0xff]  ;;  %v2237_v61 = vld [vmem:[%s10015_s26 + $0x1fd0] sm:$0xff]  ;;  %2234 = vst [vmem:[%s10020_s27 + $0xfd8] sm:$0xff] %v2233_v59 }
 0x110   : > { %2236 = vst [vmem:[%s10020_s27 + $0xfe0] sm:$0xff] %v2235_v60  ;;  %2238 = vst [vmem:[%s10020_s27 + $0xfe8] sm:$0xff] %v2237_v61  ;;  %v2239_v62 = vld [vmem:[%s10015_s26 + $0x1fe0] sm:$0xff]  ;;  %v2241_v63 = vld [vmem:[%s10015_s26 + $0x1ff0] sm:$0xff] }
 0x111   : > { %2240 = vst [vmem:[%s10020_s27 + $0xff0] sm:$0xff] %v2239_v62  ;;  %2242 = vst [vmem:[%s10020_s27 + $0xff8] sm:$0xff] %v2241_v63 }
 0x112 PF: > { %p8516_p6 = scmp.ge.s32.totalorder %s9947_s16, 1  ;;  %p4339_p7 = scmp.lt.s32.totalorder %s9947_s16, 3 }
 0x114   : > { %p4340_p8 = pnand %p8516_p6, %p4339_p7 }
 0x115   : > { %s4346_s28 = sand.u32 (!%p4340_p8), 1, %s9931_s12   ;;  %v4925_v0 = vlaneseq (!%p4340_p8)  ;;  %v9949_v1 = vmov (!%p4340_p8), 1966171168   ;;  %v11049_v3 = vld [vmem:[%s11773_s0] sm:$0xff] (!%p4340_p8)  ;;  %v11056_v5 = vld [vmem:[%s11773_s0 + $0x10] sm:$0xff] (!%p4340_p8)  ;;  %s8518_s12 = sshll.u32 (!%p4340_p8), %s9939_s14, 1 }
 0x116   : > { %4343 = sbr.rel (%p4340_p8) target bundleno = 1028 (0x404), region = 80  ;;  %s8517_s29 = sshll.u32 (!%p4340_p8), %s4346_s28, 12  ;;  %v4923_v2 = vunpack.c.l.s4 (!%p4340_p8), %v9949_v1 }
 0x117   : > { %v11051_v4 = vshrl.u32 (!%p4340_p8), %v4925_v0, 7  ;;  %s11058_s7 = scalar_lea.vmem (!%p4340_p8), [#allocation2], %s8517_s29  ;;  %p4385_p9 = scmp.lt.s32.totalorder (!%p4340_p8), %s8518_s12, 3 }
 0x118   : > { %v9137_v6 = vld [vmem:[%s11058_s7 + $0x4] ss:$8 sps:$4 sm:$0xff] (!%p4340_p8)   ;;  %v4924_v7 = vunpack.c.0.s8 (!%p4340_p8), %v4923_v2  ;;  %v9141_v9 = vld [vmem:[%s11058_s7] ss:$8 sps:$4 sm:$0xff] (!%p4340_p8)   ;;  %v9143_v12 = vld [vmem:[%s11058_s7 + $0x14] ss:$8 sps:$4 sm:$0xff] (!%p4340_p8)  }
 0x119   : > { %v9139_v8 = vld [vmem:[%s11058_s7 + $0x804] ss:$8 sps:$4 sm:$0xff] (!%p4340_p8)   ;;  %7709 = vmatprep.subr.bf16.mxu1 (!%p4340_p8), %v9137_v6  ;;  %v9142_v10 = vld [vmem:[%s11058_s7 + $0x800] ss:$8 sps:$4 sm:$0xff] (!%p4340_p8)   ;;  %v9145_v13 = vld [vmem:[%s11058_s7 + $0x814] ss:$8 sps:$4 sm:$0xff] (!%p4340_p8)  }
 0x11a   : > { %v11065_v11 = vsub.s32 (!%p4340_p8), %v4924_v7, %v11051_v4  ;;  %8037 = vmatprep.subr.bf16.mxu0 (!%p4340_p8), %v9139_v8  ;;  %7710 = vmatpush1.bf16.msra.mxu1 (!%p4340_p8), %v9141_v9  ;;  %v9147_v14 = vld [vmem:[%s11058_s7 + $0x10] ss:$8 sps:$4 sm:$0xff] (!%p4340_p8)   ;;  %v9149_v18 = vld [vmem:[%s11058_s7 + $0x24] ss:$8 sps:$4 sm:$0xff] (!%p4340_p8)   ;;  %v9153_v22 = vld [vmem:[%s11058_s7 + $0x20] ss:$8 sps:$4 sm:$0xff] (!%p4340_p8)  }
 0x11b   : > { %8038 = vmatpush1.bf16.msra.mxu0 (!%p4340_p8), %v9142_v10  ;;  %7711 = vmatprep.subr.bf16.mxu1 (!%p4340_p8), %v9143_v12  ;;  %v9148_v17 = vld [vmem:[%s11058_s7 + $0x810] ss:$8 sps:$4 sm:$0xff] (!%p4340_p8)   ;;  %v9151_v21 = vld [vmem:[%s11058_s7 + $0x824] ss:$8 sps:$4 sm:$0xff] (!%p4340_p8)   ;;  %v9154_v23 = vld [vmem:[%s11058_s7 + $0x820] ss:$8 sps:$4 sm:$0xff] (!%p4340_p8)  }
 0x11c   : > { %v11072_v15 = vrot.slane (!%p4340_p8), %v11049_v3, %v11065_v11  ;;  %v11076_v16 = vrot.slane (!%p4340_p8), %v11056_v5, %v11065_v11  ;;  %8039 = vmatprep.subr.bf16.mxu0 (!%p4340_p8), %v9145_v13  ;;  %v9155_v24 = vld [vmem:[%s11058_s7 + $0x34] ss:$8 sps:$4 sm:$0xff] (!%p4340_p8)   ;;  %v9159_v28 = vld [vmem:[%s11058_s7 + $0x30] ss:$8 sps:$4 sm:$0xff] (!%p4340_p8)   ;;  %v9161_v30 = vld [vmem:[%s11058_s7 + $0x44] ss:$8 sps:$4 sm:$0xff] (!%p4340_p8)  }
 0x11d   : > { %v9157_v27 = vld [vmem:[%s11058_s7 + $0x834] ss:$8 sps:$4 sm:$0xff]   ;;  %v9160_v29 = vld [vmem:[%s11058_s7 + $0x830] ss:$8 sps:$4 sm:$0xff]   ;;  %v9163_v31 = vld [vmem:[%s11058_s7 + $0x844] ss:$8 sps:$4 sm:$0xff]  }
 0x11e   : > { %v4936_v19 = vcombine.high %v11072_v15, %v11072_v15  ;;  %v5034_v20 = vcombine.high %v11076_v16, %v11076_v16  ;;  %7712 = vmatpush1.bf16.msra.mxu1 %v9147_v14  ;;  %v9165_v32 = vld [vmem:[%s11058_s7 + $0x40] ss:$8 sps:$4 sm:$0xff]   ;;  %v9167_v34 = vld [vmem:[%s11058_s7 + $0x54] ss:$8 sps:$4 sm:$0xff]   ;;  %v9171_v36 = vld [vmem:[%s11058_s7 + $0x50] ss:$8 sps:$4 sm:$0xff]  }
 0x11f   : > { %8040 = vmatpush1.bf16.msra.mxu0 %v9148_v17  ;;  %7713 = vmatprep.subr.bf16.mxu1 %v9149_v18  ;;  %v9166_v33 = vld [vmem:[%s11058_s7 + $0x840] ss:$8 sps:$4 sm:$0xff]   ;;  %v9169_v35 = vld [vmem:[%s11058_s7 + $0x854] ss:$8 sps:$4 sm:$0xff]   ;;  %v9172_v37 = vld [vmem:[%s11058_s7 + $0x850] ss:$8 sps:$4 sm:$0xff]  }
 0x120   : > { %v11089_v25 = vrot.slane %v4936_v19, %v11065_v11  ;;  %v11092_v26 = vrot.slane %v5034_v20, %v11065_v11  ;;  %8041 = vmatprep.subr.bf16.mxu0 %v9151_v21  ;;  %v9173_v38 = vld [vmem:[%s11058_s7 + $0x64] ss:$8 sps:$4 sm:$0xff]   ;;  %v9177_v40 = vld [vmem:[%s11058_s7 + $0x60] ss:$8 sps:$4 sm:$0xff]   ;;  %v9179_v42 = vld [vmem:[%s11058_s7 + $0x74] ss:$8 sps:$4 sm:$0xff]  }
 0x121   : > { %v9175_v39 = vld [vmem:[%s11058_s7 + $0x864] ss:$8 sps:$4 sm:$0xff]   ;;  %v9178_v41 = vld [vmem:[%s11058_s7 + $0x860] ss:$8 sps:$4 sm:$0xff]   ;;  %v9181_v43 = vld [vmem:[%s11058_s7 + $0x874] ss:$8 sps:$4 sm:$0xff]  }
 0x122   : > { %7741 = vmatprep.mubr.bf16.mxu1 %v11089_v25  ;;  %8069 = vmatprep.mubr.bf16.mxu0 %v11092_v26  ;;  %v9183_v44 = vld [vmem:[%s11058_s7 + $0x70] ss:$8 sps:$4 sm:$0xff]   ;;  %v9185_v46 = vld [vmem:[%s11058_s7 + $0x84] ss:$8 sps:$4 sm:$0xff]   ;;  %v9189_v48 = vld [vmem:[%s11058_s7 + $0x80] ss:$8 sps:$4 sm:$0xff]  }
 0x123   : > { %7714 = vmatpush1.bf16.msra.mxu1 %v9153_v22  ;;  %8042 = vmatpush1.bf16.msra.mxu0 %v9154_v23  ;;  %v9184_v45 = vld [vmem:[%s11058_s7 + $0x870] ss:$8 sps:$4 sm:$0xff]   ;;  %v9187_v47 = vld [vmem:[%s11058_s7 + $0x884] ss:$8 sps:$4 sm:$0xff]   ;;  %v9190_v49 = vld [vmem:[%s11058_s7 + $0x880] ss:$8 sps:$4 sm:$0xff]  }
 0x124   : > { %7715 = vmatprep.subr.bf16.mxu1 %v9155_v24  ;;  %8043 = vmatprep.subr.bf16.mxu0 %v9157_v27  ;;  %v9191_v50 = vld [vmem:[%s11058_s7 + $0x94] ss:$8 sps:$4 sm:$0xff]   ;;  %v9195_v52 = vld [vmem:[%s11058_s7 + $0x90] ss:$8 sps:$4 sm:$0xff]   ;;  %v9197_v54 = vld [vmem:[%s11058_s7 + $0xa4] ss:$8 sps:$4 sm:$0xff]   ;;  %v11153_v24 = vrot.slane %v11072_v15, %v11065_v11  ;;  %v11157_v27 = vrot.slane %v11076_v16, %v11065_v11  ;;  %v5066_v15 = vcombine.high %v11092_v26, %v11092_v26 }
 0x125   : > { %v9193_v51 = vld [vmem:[%s11058_s7 + $0x894] ss:$8 sps:$4 sm:$0xff]   ;;  %v9196_v53 = vld [vmem:[%s11058_s7 + $0x890] ss:$8 sps:$4 sm:$0xff]   ;;  %v9199_v55 = vld [vmem:[%s11058_s7 + $0x8a4] ss:$8 sps:$4 sm:$0xff]  }
 0x126   : > { %v9201_v56 = vld [vmem:[%s11058_s7 + $0xa0] ss:$8 sps:$4 sm:$0xff]   ;;  %v9203_v58 = vld [vmem:[%s11058_s7 + $0xb4] ss:$8 sps:$4 sm:$0xff]   ;;  %v9207_v60 = vld [vmem:[%s11058_s7 + $0xb0] ss:$8 sps:$4 sm:$0xff]  }
 0x127   : > { %7716 = vmatpush1.bf16.msra.mxu1 %v9159_v28  ;;  %8044 = vmatpush1.bf16.msra.mxu0 %v9160_v29  ;;  %v9202_v57 = vld [vmem:[%s11058_s7 + $0x8a0] ss:$8 sps:$4 sm:$0xff]   ;;  %v9205_v59 = vld [vmem:[%s11058_s7 + $0x8b4] ss:$8 sps:$4 sm:$0xff]   ;;  %v9208_v61 = vld [vmem:[%s11058_s7 + $0x8b0] ss:$8 sps:$4 sm:$0xff]  }
 0x128   : > { %7717 = vmatprep.subr.bf16.mxu1 %v9161_v30  ;;  %8045 = vmatprep.subr.bf16.mxu0 %v9163_v31  ;;  %v9209_v62 = vld [vmem:[%s11058_s7 + $0xc4] ss:$8 sps:$4 sm:$0xff]   ;;  %v9213_v0 = vld [vmem:[%s11058_s7 + $0xc0] ss:$8 sps:$4 sm:$0xff]   ;;  %v9215_v2 = vld [vmem:[%s11058_s7 + $0xd4] ss:$8 sps:$4 sm:$0xff]   ;;  %v4968_v30 = vcombine.high %v11089_v25, %v11089_v25 }
 0x129   : > { %v9211_v63 = vld [vmem:[%s11058_s7 + $0x8c4] ss:$8 sps:$4 sm:$0xff]   ;;  %v9214_v1 = vld [vmem:[%s11058_s7 + $0x8c0] ss:$8 sps:$4 sm:$0xff]   ;;  %v9217_v6 = vld [vmem:[%s11058_s7 + $0x8d4] ss:$8 sps:$4 sm:$0xff]  }
 0x12a   : > { %v9219_v7 = vld [vmem:[%s11058_s7 + $0xd0] ss:$8 sps:$4 sm:$0xff]   ;;  %v9221_v9 = vld [vmem:[%s11058_s7 + $0xe4] ss:$8 sps:$4 sm:$0xff]   ;;  %v9225_v12 = vld [vmem:[%s11058_s7 + $0xe0] ss:$8 sps:$4 sm:$0xff]  }
 0x12b   : > { %7718 = vmatpush1.bf16.msra.mxu1 %v9165_v32  ;;  %8046 = vmatpush1.bf16.msra.mxu0 %v9166_v33  ;;  %v9220_v8 = vld [vmem:[%s11058_s7 + $0x8d0] ss:$8 sps:$4 sm:$0xff]   ;;  %v9223_v10 = vld [vmem:[%s11058_s7 + $0x8e4] ss:$8 sps:$4 sm:$0xff]   ;;  %v9226_v13 = vld [vmem:[%s11058_s7 + $0x8e0] ss:$8 sps:$4 sm:$0xff]  }
 0x12c   : > { %7719 = vmatprep.subr.bf16.mxu1 %v9167_v34  ;;  %8047 = vmatprep.subr.bf16.mxu0 %v9169_v35  ;;  %v9227_v14 = vld [vmem:[%s11058_s7 + $0xf4] ss:$8 sps:$4 sm:$0xff]   ;;  %v9231_v18 = vld [vmem:[%s11058_s7 + $0xf0] ss:$8 sps:$4 sm:$0xff]   ;;  %v9236_v20 = vld [vmem:[%s11058_s7 + $0x104] ss:$8 sps:$4 sm:$0xff]  }
 0x12d   : > { %v9229_v17 = vld [vmem:[%s11058_s7 + $0x8f4] ss:$8 sps:$4 sm:$0xff]   ;;  %v9232_v19 = vld [vmem:[%s11058_s7 + $0x8f0] ss:$8 sps:$4 sm:$0xff]   ;;  %v9240_v21 = vld [vmem:[%s11058_s7 + $0x904] ss:$8 sps:$4 sm:$0xff]  }
 0x12e   : > { %v9234_v22 = vld [vmem:[%s11058_s7 + $0x100] ss:$8 sps:$4 sm:$0xff]   ;;  %v9243_v28 = vld [vmem:[%s11058_s7 + $0x114] ss:$8 sps:$4 sm:$0xff]   ;;  %v9241_v16 = vld [vmem:[%s11058_s7 + $0x110] ss:$8 sps:$4 sm:$0xff]  }
 0x12f   : > { %7720 = vmatpush1.bf16.msra.mxu1 %v9171_v36  ;;  %8048 = vmatpush1.bf16.msra.mxu0 %v9172_v37  ;;  %v9238_v23 = vld [vmem:[%s11058_s7 + $0x900] ss:$8 sps:$4 sm:$0xff]   ;;  %v9246_v29 = vld [vmem:[%s11058_s7 + $0x914] ss:$8 sps:$4 sm:$0xff]   ;;  %v9244_v31 = vld [vmem:[%s11058_s7 + $0x910] ss:$8 sps:$4 sm:$0xff]  }
 0x130   : > { %7721 = vmatprep.subr.bf16.mxu1 %v9173_v38  ;;  %8049 = vmatprep.subr.bf16.mxu0 %v9175_v39  ;;  %v9249_v32 = vld [vmem:[%s11058_s7 + $0x124] ss:$8 sps:$4 sm:$0xff]   ;;  %v9247_v26 = vld [vmem:[%s11058_s7 + $0x120] ss:$8 sps:$4 sm:$0xff]   ;;  %v9255_v34 = vld [vmem:[%s11058_s7 + $0x134] ss:$8 sps:$4 sm:$0xff]  }
 0x131   : > { %v9252_v25 = vld [vmem:[%s11058_s7 + $0x924] ss:$8 sps:$4 sm:$0xff]   ;;  %v9250_v33 = vld [vmem:[%s11058_s7 + $0x920] ss:$8 sps:$4 sm:$0xff]   ;;  %v9258_v35 = vld [vmem:[%s11058_s7 + $0x934] ss:$8 sps:$4 sm:$0xff]  }
 0x132   : > { %v9253_v36 = vld [vmem:[%s11058_s7 + $0x130] ss:$8 sps:$4 sm:$0xff]   ;;  %v9261_v38 = vld [vmem:[%s11058_s7 + $0x144] ss:$8 sps:$4 sm:$0xff]   ;;  %s11784_s12 = smov (!%p4385_p9, %s8518_s12), 3 }
 0x133   : > { %7722 = vmatpush1.bf16.msra.mxu1 %v9177_v40  ;;  %8050 = vmatpush1.bf16.msra.mxu0 %v9178_v41  ;;  %v9256_v37 = vld [vmem:[%s11058_s7 + $0x930] ss:$8 sps:$4 sm:$0xff]   ;;  %v9264_v39 = vld [vmem:[%s11058_s7 + $0x944] ss:$8 sps:$4 sm:$0xff]   ;;  %v9259_v40 = vld [vmem:[%s11058_s7 + $0x140] ss:$8 sps:$4 sm:$0xff]   ;;  %s4387_s14 = scalar_lea.vmem %s11775_s2, %s11784_s12 }
 0x134   : > { %7723 = vmatprep.subr.bf16.mxu1 %v9179_v42  ;;  %8051 = vmatprep.subr.bf16.mxu0 %v9181_v43  ;;  %v9262_v41 = vld [vmem:[%s11058_s7 + $0x940] ss:$8 sps:$4 sm:$0xff]   ;;  %v9267_v42 = vld [vmem:[%s11058_s7 + $0x154] ss:$8 sps:$4 sm:$0xff]   ;;  %s8520_s18 = sshll.u32 %s11784_s12, 1 }
 0x135   : > { %v9270_v43 = vld [vmem:[%s11058_s7 + $0x954] ss:$8 sps:$4 sm:$0xff]   ;;  %s11745_s22 = scalar_lea.vmem %s11776_s3, %s8520_s18 }
 0x137   : > { %7724 = vmatpush1.bf16.msra.mxu1 %v9183_v44  ;;  %8052 = vmatpush1.bf16.msra.mxu0 %v9184_v45  ;;  %v9265_v44 = vld [vmem:[%s11058_s7 + $0x150] ss:$8 sps:$4 sm:$0xff]  }
 0x138   : > { %7725 = vmatprep.subr.bf16.mxu1 %v9185_v46  ;;  %8053 = vmatprep.subr.bf16.mxu0 %v9187_v47  ;;  %v9268_v45 = vld [vmem:[%s11058_s7 + $0x950] ss:$8 sps:$4 sm:$0xff]   ;;  %v9273_v46 = vld [vmem:[%s11058_s7 + $0x164] ss:$8 sps:$4 sm:$0xff]  }
 0x139   : > { %v9276_v47 = vld [vmem:[%s11058_s7 + $0x964] ss:$8 sps:$4 sm:$0xff]  }
 0x13b   : > { %7726 = vmatpush1.bf16.msra.mxu1 %v9189_v48  ;;  %8054 = vmatpush1.bf16.msra.mxu0 %v9190_v49  ;;  %v9271_v48 = vld [vmem:[%s11058_s7 + $0x160] ss:$8 sps:$4 sm:$0xff]  }
 0x13c   : > { %7727 = vmatprep.subr.bf16.mxu1 %v9191_v50  ;;  %8055 = vmatprep.subr.bf16.mxu0 %v9193_v51  ;;  %v9274_v49 = vld [vmem:[%s11058_s7 + $0x960] ss:$8 sps:$4 sm:$0xff]   ;;  %v9279_v50 = vld [vmem:[%s11058_s7 + $0x174] ss:$8 sps:$4 sm:$0xff]  }
 0x13d   : > { %v9282_v51 = vld [vmem:[%s11058_s7 + $0x974] ss:$8 sps:$4 sm:$0xff]  }
 0x13f   : > { %7728 = vmatpush1.bf16.msra.mxu1 %v9195_v52  ;;  %8056 = vmatpush1.bf16.msra.mxu0 %v9196_v53  ;;  %v9277_v52 = vld [vmem:[%s11058_s7 + $0x170] ss:$8 sps:$4 sm:$0xff]  }
 0x140   : > { %7729 = vmatprep.subr.bf16.mxu1 %v9197_v54  ;;  %8057 = vmatprep.subr.bf16.mxu0 %v9199_v55  ;;  %v9280_v53 = vld [vmem:[%s11058_s7 + $0x970] ss:$8 sps:$4 sm:$0xff]   ;;  %v9285_v54 = vld [vmem:[%s11058_s7 + $0x184] ss:$8 sps:$4 sm:$0xff]  }
 0x141   : > { %v9288_v55 = vld [vmem:[%s11058_s7 + $0x984] ss:$8 sps:$4 sm:$0xff]  }
 0x143   : > { %7730 = vmatpush1.bf16.msra.mxu1 %v9201_v56  ;;  %8058 = vmatpush1.bf16.msra.mxu0 %v9202_v57  ;;  %v9283_v56 = vld [vmem:[%s11058_s7 + $0x180] ss:$8 sps:$4 sm:$0xff]  }
 0x144   : > { %7731 = vmatprep.subr.bf16.mxu1 %v9203_v58  ;;  %8059 = vmatprep.subr.bf16.mxu0 %v9205_v59  ;;  %v9286_v57 = vld [vmem:[%s11058_s7 + $0x980] ss:$8 sps:$4 sm:$0xff]   ;;  %v9291_v58 = vld [vmem:[%s11058_s7 + $0x194] ss:$8 sps:$4 sm:$0xff]  }
 0x145   : > { %v9294_v59 = vld [vmem:[%s11058_s7 + $0x994] ss:$8 sps:$4 sm:$0xff]  }
 0x147   : > { %7732 = vmatpush1.bf16.msra.mxu1 %v9207_v60  ;;  %8060 = vmatpush1.bf16.msra.mxu0 %v9208_v61  ;;  %v9289_v60 = vld [vmem:[%s11058_s7 + $0x190] ss:$8 sps:$4 sm:$0xff]  }
 0x148   : > { %7733 = vmatprep.subr.bf16.mxu1 %v9209_v62  ;;  %8061 = vmatprep.subr.bf16.mxu0 %v9211_v63  ;;  %v9292_v61 = vld [vmem:[%s11058_s7 + $0x990] ss:$8 sps:$4 sm:$0xff]   ;;  %v9297_v62 = vld [vmem:[%s11058_s7 + $0x1a4] ss:$8 sps:$4 sm:$0xff]  }
 0x149   : > { %v9300_v63 = vld [vmem:[%s11058_s7 + $0x9a4] ss:$8 sps:$4 sm:$0xff]  }
 0x14b   : > { %7734 = vmatpush1.bf16.msra.mxu1 %v9213_v0  ;;  %8062 = vmatpush1.bf16.msra.mxu0 %v9214_v1  ;;  %v9295_v0 = vld [vmem:[%s11058_s7 + $0x1a0] ss:$8 sps:$4 sm:$0xff]  }
 0x14c   : > { %7735 = vmatprep.subr.bf16.mxu1 %v9215_v2  ;;  %8063 = vmatprep.subr.bf16.mxu0 %v9217_v6  ;;  %v9298_v1 = vld [vmem:[%s11058_s7 + $0x9a0] ss:$8 sps:$4 sm:$0xff]   ;;  %v9303_v2 = vld [vmem:[%s11058_s7 + $0x1b4] ss:$8 sps:$4 sm:$0xff]  }
 0x14d   : > { %v9306_v6 = vld [vmem:[%s11058_s7 + $0x9b4] ss:$8 sps:$4 sm:$0xff]  }
 0x14f   : > { %7736 = vmatpush1.bf16.msra.mxu1 %v9219_v7  ;;  %8064 = vmatpush1.bf16.msra.mxu0 %v9220_v8  ;;  %v9301_v7 = vld [vmem:[%s11058_s7 + $0x1b0] ss:$8 sps:$4 sm:$0xff]  }
 0x150   : > { %7737 = vmatprep.subr.bf16.mxu1 %v9221_v9  ;;  %8065 = vmatprep.subr.bf16.mxu0 %v9223_v10  ;;  %v9304_v8 = vld [vmem:[%s11058_s7 + $0x9b0] ss:$8 sps:$4 sm:$0xff]   ;;  %v9309_v9 = vld [vmem:[%s11058_s7 + $0x1c4] ss:$8 sps:$4 sm:$0xff]  }
 0x151   : > { %v9312_v10 = vld [vmem:[%s11058_s7 + $0x9c4] ss:$8 sps:$4 sm:$0xff]  }
 0x153   : > { %7738 = vmatpush1.bf16.msra.mxu1 %v9225_v12  ;;  %8066 = vmatpush1.bf16.msra.mxu0 %v9226_v13  ;;  %v9307_v12 = vld [vmem:[%s11058_s7 + $0x1c0] ss:$8 sps:$4 sm:$0xff]  }
 0x154   : > { %7739 = vmatprep.subr.bf16.mxu1 %v9227_v14  ;;  %8067 = vmatprep.subr.bf16.mxu0 %v9229_v17  ;;  %v9310_v13 = vld [vmem:[%s11058_s7 + $0x9c0] ss:$8 sps:$4 sm:$0xff]   ;;  %v9315_v14 = vld [vmem:[%s11058_s7 + $0x1d4] ss:$8 sps:$4 sm:$0xff]  }
 0x155   : > { %v9318_v17 = vld [vmem:[%s11058_s7 + $0x9d4] ss:$8 sps:$4 sm:$0xff]  }
 0x157   : > { %7740 = vmatpush1.bf16.msra.mxu1 %v9231_v18  ;;  %8068 = vmatpush1.bf16.msra.mxu0 %v9232_v19  ;;  %v9313_v18 = vld [vmem:[%s11058_s7 + $0x1d0] ss:$8 sps:$4 sm:$0xff]  }
 0x158   : > { %7750 = vmatprep.subr.bf16.mxu1 %v9236_v20  ;;  %8078 = vmatprep.subr.bf16.mxu0 %v9240_v21  ;;  %v9316_v19 = vld [vmem:[%s11058_s7 + $0x9d0] ss:$8 sps:$4 sm:$0xff]   ;;  %v9321_v20 = vld [vmem:[%s11058_s7 + $0x1e4] ss:$8 sps:$4 sm:$0xff]  }
 0x159   : > { %v9324_v21 = vld [vmem:[%s11058_s7 + $0x9e4] ss:$8 sps:$4 sm:$0xff]  }
 0x15a   : > { %7742 = vmatmul.mubr.bf16.vlgmr.msra.gmra.mrb[0].mxu1 %v11153_v24  ;;  %8070 = vmatmul.mubr.bf16.vlgmr.msra.gmra.mrb[0].mxu0 %v11157_v27 }
 0x15b   : > { %7751 = vmatpush1.bf16.msra.mxu1 %v9234_v22  ;;  %8079 = vmatpush1.bf16.msra.mxu0 %v9238_v23  ;;  %v4921_v22 = vcombine.high %v11049_v3, %v11049_v3  ;;  %v5019_v23 = vcombine.high %v11056_v5, %v11056_v5  ;;  %v9328_v5 = vld [vmem:[%s11058_s7 + $0x9f0] ss:$8 sps:$4 sm:$0xff]  }
 0x15c   : > { %7752 = vmatprep.subr.bf16.mxu1 %v9243_v28  ;;  %8080 = vmatprep.subr.bf16.mxu0 %v9246_v29  ;;  %v9319_v28 = vld [vmem:[%s11058_s7 + $0x1e0] ss:$8 sps:$4 sm:$0xff]  }
 0x15d   : > { %7782 = vmatprep.mubr.bf16.mxu1 %v4968_v30  ;;  %8110 = vmatprep.mubr.bf16.mxu0 %v5066_v15  ;;  %v9322_v29 = vld [vmem:[%s11058_s7 + $0x9e0] ss:$8 sps:$4 sm:$0xff]   ;;  %v9327_v30 = vld [vmem:[%s11058_s7 + $0x1f4] ss:$8 sps:$4 sm:$0xff]   ;;  %v11231_v3 = vrot.slane %v5019_v23, %v11065_v11  ;;  %v9400_v23 = vld [vmem:[%s11058_s7 + $0xab0] ss:$8 sps:$4 sm:$0xff]  }
 0x15e   : > { %v9330_v15 = vld [vmem:[%s11058_s7 + $0x9f4] ss:$8 sps:$4 sm:$0xff]  }
 0x15f   : > { %7753 = vmatpush1.bf16.msra.mxu1 %v9241_v16  ;;  %8081 = vmatpush1.bf16.msra.mxu0 %v9244_v31  ;;  %v11228_v16 = vrot.slane %v4921_v22, %v11065_v11  ;;  %v9325_v31 = vld [vmem:[%s11058_s7 + $0x1f0] ss:$8 sps:$4 sm:$0xff]  }
 0x160   : > { %7754 = vmatprep.subr.bf16.mxu1 %v9249_v32  ;;  %8082 = vmatprep.subr.bf16.mxu0 %v9252_v25  ;;  %v9333_v32 = vld [vmem:[%s11058_s7 + $0x204] ss:$8 sps:$4 sm:$0xff]   ;;  %v9397_v22 = vld [vmem:[%s11058_s7 + $0x2b0] ss:$8 sps:$4 sm:$0xff]  }
 0x161   : > { %v9336_v25 = vld [vmem:[%s11058_s7 + $0xa04] ss:$8 sps:$4 sm:$0xff]  }
 0x163   : > { %7755 = vmatpush1.bf16.msra.mxu1 %v9247_v26  ;;  %8083 = vmatpush1.bf16.msra.mxu0 %v9250_v33  ;;  %v4937_v26 = vcombine.high %v11228_v16, %v11228_v16  ;;  %v5035_v33 = vcombine.high %v11231_v3, %v11231_v3 }
 0x164   : > { %7756 = vmatprep.subr.bf16.mxu1 %v9255_v34  ;;  %8084 = vmatprep.subr.bf16.mxu0 %v9258_v35  ;;  %v4966_v34 = vcombine.high %v11153_v24, %v11153_v24  ;;  %v5064_v35 = vcombine.high %v11157_v27, %v11157_v27  ;;  %v9337_v27 = vld [vmem:[%s11058_s7 + $0x210] ss:$8 sps:$4 sm:$0xff]  }
 0x165   : > { %v11253_v24 = vrot.slane %v5035_v33, %v11065_v11  ;;  %v9420_v33 = vld [vmem:[%s11058_s7 + $0xae4] ss:$8 sps:$4 sm:$0xff]  }
 0x167   : > { %7757 = vmatpush1.bf16.msra.mxu1 %v9253_v36  ;;  %8085 = vmatpush1.bf16.msra.mxu0 %v9256_v37  ;;  %v9331_v36 = vld [vmem:[%s11058_s7 + $0x200] ss:$8 sps:$4 sm:$0xff]  }
 0x168   : > { %7758 = vmatprep.subr.bf16.mxu1 %v9261_v38  ;;  %8086 = vmatprep.subr.bf16.mxu0 %v9264_v39  ;;  %v9334_v37 = vld [vmem:[%s11058_s7 + $0xa00] ss:$8 sps:$4 sm:$0xff]   ;;  %v9339_v38 = vld [vmem:[%s11058_s7 + $0x214] ss:$8 sps:$4 sm:$0xff]  }
 0x169   : > { %v9342_v39 = vld [vmem:[%s11058_s7 + $0xa14] ss:$8 sps:$4 sm:$0xff]  }
 0x16b   : > { %7759 = vmatpush1.bf16.msra.mxu1 %v9259_v40  ;;  %8087 = vmatpush1.bf16.msra.mxu0 %v9262_v41  ;;  %v11250_v40 = vrot.slane %v4937_v26, %v11065_v11  ;;  %v9340_v41 = vld [vmem:[%s11058_s7 + $0xa10] ss:$8 sps:$4 sm:$0xff]   ;;  %v9417_v26 = vld [vmem:[%s11058_s7 + $0x2e4] ss:$8 sps:$4 sm:$0xff]  }
 0x16c   : > { %7760 = vmatprep.subr.bf16.mxu1 %v9267_v42  ;;  %8088 = vmatprep.subr.bf16.mxu0 %v9270_v43  ;;  %v9345_v42 = vld [vmem:[%s11058_s7 + $0x224] ss:$8 sps:$4 sm:$0xff]  }
 0x16d   : > { %v9348_v43 = vld [vmem:[%s11058_s7 + $0xa24] ss:$8 sps:$4 sm:$0xff]  }
 0x16f   : > { %7761 = vmatpush1.bf16.msra.mxu1 %v9265_v44  ;;  %8089 = vmatpush1.bf16.msra.mxu0 %v9268_v45  ;;  %v9343_v44 = vld [vmem:[%s11058_s7 + $0x220] ss:$8 sps:$4 sm:$0xff]  }
 0x170   : > { %7762 = vmatprep.subr.bf16.mxu1 %v9273_v46  ;;  %8090 = vmatprep.subr.bf16.mxu0 %v9276_v47  ;;  %v9346_v45 = vld [vmem:[%s11058_s7 + $0xa20] ss:$8 sps:$4 sm:$0xff]   ;;  %v9351_v46 = vld [vmem:[%s11058_s7 + $0x234] ss:$8 sps:$4 sm:$0xff]  }
 0x171   : > { %v9354_v47 = vld [vmem:[%s11058_s7 + $0xa34] ss:$8 sps:$4 sm:$0xff]  }
 0x173   : > { %7763 = vmatpush1.bf16.msra.mxu1 %v9271_v48  ;;  %8091 = vmatpush1.bf16.msra.mxu0 %v9274_v49  ;;  %v9349_v48 = vld [vmem:[%s11058_s7 + $0x230] ss:$8 sps:$4 sm:$0xff]  }
 0x174   : > { %7764 = vmatprep.subr.bf16.mxu1 %v9279_v50  ;;  %8092 = vmatprep.subr.bf16.mxu0 %v9282_v51  ;;  %v9352_v49 = vld [vmem:[%s11058_s7 + $0xa30] ss:$8 sps:$4 sm:$0xff]   ;;  %v9357_v50 = vld [vmem:[%s11058_s7 + $0x244] ss:$8 sps:$4 sm:$0xff]  }
 0x175   : > { %v9360_v51 = vld [vmem:[%s11058_s7 + $0xa44] ss:$8 sps:$4 sm:$0xff]  }
 0x177   : > { %7765 = vmatpush1.bf16.msra.mxu1 %v9277_v52  ;;  %8093 = vmatpush1.bf16.msra.mxu0 %v9280_v53  ;;  %v9355_v52 = vld [vmem:[%s11058_s7 + $0x240] ss:$8 sps:$4 sm:$0xff]  }
 0x178   : > { %7766 = vmatprep.subr.bf16.mxu1 %v9285_v54  ;;  %8094 = vmatprep.subr.bf16.mxu0 %v9288_v55  ;;  %v9358_v53 = vld [vmem:[%s11058_s7 + $0xa40] ss:$8 sps:$4 sm:$0xff]   ;;  %v9363_v54 = vld [vmem:[%s11058_s7 + $0x254] ss:$8 sps:$4 sm:$0xff]  }
 0x179   : > { %v9366_v55 = vld [vmem:[%s11058_s7 + $0xa54] ss:$8 sps:$4 sm:$0xff]  }
 0x17b   : > { %7767 = vmatpush1.bf16.msra.mxu1 %v9283_v56  ;;  %8095 = vmatpush1.bf16.msra.mxu0 %v9286_v57  ;;  %v9361_v56 = vld [vmem:[%s11058_s7 + $0x250] ss:$8 sps:$4 sm:$0xff]  }
 0x17c   : > { %7768 = vmatprep.subr.bf16.mxu1 %v9291_v58  ;;  %8096 = vmatprep.subr.bf16.mxu0 %v9294_v59  ;;  %v9364_v57 = vld [vmem:[%s11058_s7 + $0xa50] ss:$8 sps:$4 sm:$0xff]   ;;  %v9369_v58 = vld [vmem:[%s11058_s7 + $0x264] ss:$8 sps:$4 sm:$0xff]  }
 0x17d   : > { %v9372_v59 = vld [vmem:[%s11058_s7 + $0xa64] ss:$8 sps:$4 sm:$0xff]  }
 0x17f   : > { %7769 = vmatpush1.bf16.msra.mxu1 %v9289_v60  ;;  %8097 = vmatpush1.bf16.msra.mxu0 %v9292_v61  ;;  %v9367_v60 = vld [vmem:[%s11058_s7 + $0x260] ss:$8 sps:$4 sm:$0xff]  }
 0x180   : > { %7770 = vmatprep.subr.bf16.mxu1 %v9297_v62  ;;  %8098 = vmatprep.subr.bf16.mxu0 %v9300_v63  ;;  %v9370_v61 = vld [vmem:[%s11058_s7 + $0xa60] ss:$8 sps:$4 sm:$0xff]   ;;  %v9375_v62 = vld [vmem:[%s11058_s7 + $0x274] ss:$8 sps:$4 sm:$0xff]  }
 0x181   : > { %v9378_v63 = vld [vmem:[%s11058_s7 + $0xa74] ss:$8 sps:$4 sm:$0xff]  }
 0x183   : > { %7771 = vmatpush1.bf16.msra.mxu1 %v9295_v0  ;;  %8099 = vmatpush1.bf16.msra.mxu0 %v9298_v1  ;;  %v9373_v0 = vld [vmem:[%s11058_s7 + $0x270] ss:$8 sps:$4 sm:$0xff]  }
 0x184   : > { %7772 = vmatprep.subr.bf16.mxu1 %v9303_v2  ;;  %8100 = vmatprep.subr.bf16.mxu0 %v9306_v6  ;;  %v9376_v1 = vld [vmem:[%s11058_s7 + $0xa70] ss:$8 sps:$4 sm:$0xff]   ;;  %v9381_v2 = vld [vmem:[%s11058_s7 + $0x284] ss:$8 sps:$4 sm:$0xff]  }
 0x185   : > { %v9384_v6 = vld [vmem:[%s11058_s7 + $0xa84] ss:$8 sps:$4 sm:$0xff]  }
 0x187   : > { %7773 = vmatpush1.bf16.msra.mxu1 %v9301_v7  ;;  %8101 = vmatpush1.bf16.msra.mxu0 %v9304_v8  ;;  %v9379_v7 = vld [vmem:[%s11058_s7 + $0x280] ss:$8 sps:$4 sm:$0xff]  }
 0x188   : > { %7774 = vmatprep.subr.bf16.mxu1 %v9309_v9  ;;  %8102 = vmatprep.subr.bf16.mxu0 %v9312_v10  ;;  %v9382_v8 = vld [vmem:[%s11058_s7 + $0xa80] ss:$8 sps:$4 sm:$0xff]   ;;  %v9387_v9 = vld [vmem:[%s11058_s7 + $0x294] ss:$8 sps:$4 sm:$0xff]  }
 0x189   : > { %v9390_v10 = vld [vmem:[%s11058_s7 + $0xa94] ss:$8 sps:$4 sm:$0xff]  }
 0x18b   : > { %7775 = vmatpush1.bf16.msra.mxu1 %v9307_v12  ;;  %8103 = vmatpush1.bf16.msra.mxu0 %v9310_v13  ;;  %v9385_v12 = vld [vmem:[%s11058_s7 + $0x290] ss:$8 sps:$4 sm:$0xff]  }
 0x18c   : > { %7776 = vmatprep.subr.bf16.mxu1 %v9315_v14  ;;  %8104 = vmatprep.subr.bf16.mxu0 %v9318_v17  ;;  %v9388_v13 = vld [vmem:[%s11058_s7 + $0xa90] ss:$8 sps:$4 sm:$0xff]   ;;  %v9393_v14 = vld [vmem:[%s11058_s7 + $0x2a4] ss:$8 sps:$4 sm:$0xff]  }
 0x18d   : > { %v9396_v17 = vld [vmem:[%s11058_s7 + $0xaa4] ss:$8 sps:$4 sm:$0xff]  }
 0x18f   : > { %7777 = vmatpush1.bf16.msra.mxu1 %v9313_v18  ;;  %8105 = vmatpush1.bf16.msra.mxu0 %v9316_v19  ;;  %v9391_v18 = vld [vmem:[%s11058_s7 + $0x2a0] ss:$8 sps:$4 sm:$0xff]  }
 0x190   : > { %7778 = vmatprep.subr.bf16.mxu1 %v9321_v20  ;;  %8106 = vmatprep.subr.bf16.mxu0 %v9324_v21  ;;  %v9394_v19 = vld [vmem:[%s11058_s7 + $0xaa0] ss:$8 sps:$4 sm:$0xff]   ;;  %v9399_v20 = vld [vmem:[%s11058_s7 + $0x2b4] ss:$8 sps:$4 sm:$0xff]  }
 0x191   : > { %v9402_v21 = vld [vmem:[%s11058_s7 + $0xab4] ss:$8 sps:$4 sm:$0xff]  }
 0x193   : > { %7779 = vmatpush1.bf16.msra.mxu1 %v9319_v28  ;;  %8107 = vmatpush1.bf16.msra.mxu0 %v9322_v29  ;;  %v9405_v28 = vld [vmem:[%s11058_s7 + $0x2c4] ss:$8 sps:$4 sm:$0xff]  }
 0x194   : > { %7780 = vmatprep.subr.bf16.mxu1 %v9327_v30  ;;  %8108 = vmatprep.subr.bf16.mxu0 %v9330_v15  ;;  %v9408_v29 = vld [vmem:[%s11058_s7 + $0xac4] ss:$8 sps:$4 sm:$0xff]   ;;  %v9403_v30 = vld [vmem:[%s11058_s7 + $0x2c0] ss:$8 sps:$4 sm:$0xff]  }
 0x195   : > { %v9406_v15 = vld [vmem:[%s11058_s7 + $0xac0] ss:$8 sps:$4 sm:$0xff]  }
 0x197   : > { %7781 = vmatpush1.bf16.msra.mxu1 %v9325_v31  ;;  %8109 = vmatpush1.bf16.msra.mxu0 %v9328_v5  ;;  %v9411_v31 = vld [vmem:[%s11058_s7 + $0x2d4] ss:$8 sps:$4 sm:$0xff]  }
 0x198   : > { %7791 = vmatprep.subr.bf16.mxu1 %v9333_v32  ;;  %8119 = vmatprep.subr.bf16.mxu0 %v9336_v25  ;;  %v9414_v5 = vld [vmem:[%s11058_s7 + $0xad4] ss:$8 sps:$4 sm:$0xff]   ;;  %v9409_v32 = vld [vmem:[%s11058_s7 + $0x2d0] ss:$8 sps:$4 sm:$0xff]  }
 0x199   : > { %v9412_v25 = vld [vmem:[%s11058_s7 + $0xad0] ss:$8 sps:$4 sm:$0xff]  }
 0x19a   : > { %7783 = vmatmul.mubr.bf16.vlgmr.msra.gmra.mrb[0].mxu1 %v4966_v34  ;;  %8111 = vmatmul.mubr.bf16.vlgmr.msra.gmra.mrb[0].mxu0 %v5064_v35  ;;  %v9415_v34 = vld [vmem:[%s11058_s7 + $0x2e0] ss:$8 sps:$4 sm:$0xff]  }
 0x19b   : > { %7792 = vmatpush1.bf16.msra.mxu1 %v9331_v36  ;;  %8120 = vmatpush1.bf16.msra.mxu0 %v9334_v37  ;;  %v9418_v35 = vld [vmem:[%s11058_s7 + $0xae0] ss:$8 sps:$4 sm:$0xff]   ;;  %v9423_v36 = vld [vmem:[%s11058_s7 + $0x2f4] ss:$8 sps:$4 sm:$0xff]  }
 0x19c   : > { %7793 = vmatprep.subr.bf16.mxu1 %v9339_v38  ;;  %8121 = vmatprep.subr.bf16.mxu0 %v9342_v39  ;;  %v9426_v37 = vld [vmem:[%s11058_s7 + $0xaf4] ss:$8 sps:$4 sm:$0xff]   ;;  %v9421_v38 = vld [vmem:[%s11058_s7 + $0x2f0] ss:$8 sps:$4 sm:$0xff]  }
 0x19d   : > { %7823 = vmatprep.mubr.bf16.mxu1 %v11250_v40  ;;  %8151 = vmatprep.mubr.bf16.mxu0 %v11253_v24  ;;  %v9424_v39 = vld [vmem:[%s11058_s7 + $0xaf0] ss:$8 sps:$4 sm:$0xff]  }
 0x19f   : > { %7794 = vmatpush1.bf16.msra.mxu1 %v9337_v27  ;;  %8122 = vmatpush1.bf16.msra.mxu0 %v9340_v41  ;;  %v9429_v27 = vld [vmem:[%s11058_s7 + $0x304] ss:$8 sps:$4 sm:$0xff]  }
 0x1a0   : > { %7795 = vmatprep.subr.bf16.mxu1 %v9345_v42  ;;  %8123 = vmatprep.subr.bf16.mxu0 %v9348_v43  ;;  %v9432_v41 = vld [vmem:[%s11058_s7 + $0xb04] ss:$8 sps:$4 sm:$0xff]   ;;  %v9427_v42 = vld [vmem:[%s11058_s7 + $0x300] ss:$8 sps:$4 sm:$0xff]  }
 0x1a1   : > { %v9430_v43 = vld [vmem:[%s11058_s7 + $0xb00] ss:$8 sps:$4 sm:$0xff]  }
 0x1a3   : > { %7796 = vmatpush1.bf16.msra.mxu1 %v9343_v44  ;;  %8124 = vmatpush1.bf16.msra.mxu0 %v9346_v45  ;;  %v11321_v44 = vrot.slane %v11228_v16, %v11065_v11  ;;  %v11325_v45 = vrot.slane %v11231_v3, %v11065_v11  ;;  %v5067_v16 = vcombine.high %v11253_v24, %v11253_v24  ;;  %v9433_v3 = vld [vmem:[%s11058_s7 + $0x310] ss:$8 sps:$4 sm:$0xff]   ;;  %v9439_v24 = vld [vmem:[%s11058_s7 + $0x320] ss:$8 sps:$4 sm:$0xff]  }
 0x1a4   : > { %7797 = vmatprep.subr.bf16.mxu1 %v9351_v46  ;;  %8125 = vmatprep.subr.bf16.mxu0 %v9354_v47  ;;  %v9435_v46 = vld [vmem:[%s11058_s7 + $0x314] ss:$8 sps:$4 sm:$0xff]  }
 0x1a5   : > { %v9438_v47 = vld [vmem:[%s11058_s7 + $0xb14] ss:$8 sps:$4 sm:$0xff]  }
 0x1a7   : > { %7798 = vmatpush1.bf16.msra.mxu1 %v9349_v48  ;;  %8126 = vmatpush1.bf16.msra.mxu0 %v9352_v49  ;;  %v4969_v48 = vcombine.high %v11250_v40, %v11250_v40  ;;  %v9436_v49 = vld [vmem:[%s11058_s7 + $0xb10] ss:$8 sps:$4 sm:$0xff]   ;;  %v9444_v40 = vld [vmem:[%s11058_s7 + $0xb24] ss:$8 sps:$4 sm:$0xff]  }
 0x1a8   : > { %7799 = vmatprep.subr.bf16.mxu1 %v9357_v50  ;;  %8127 = vmatprep.subr.bf16.mxu0 %v9360_v51  ;;  %v9441_v50 = vld [vmem:[%s11058_s7 + $0x324] ss:$8 sps:$4 sm:$0xff]   ;;  %v9442_v51 = vld [vmem:[%s11058_s7 + $0xb20] ss:$8 sps:$4 sm:$0xff]  }
 0x1ab   : > { %7800 = vmatpush1.bf16.msra.mxu1 %v9355_v52  ;;  %8128 = vmatpush1.bf16.msra.mxu0 %v9358_v53  ;;  %v9447_v52 = vld [vmem:[%s11058_s7 + $0x334] ss:$8 sps:$4 sm:$0xff]  }
 0x1ac   : > { %7801 = vmatprep.subr.bf16.mxu1 %v9363_v54  ;;  %8129 = vmatprep.subr.bf16.mxu0 %v9366_v55  ;;  %v9450_v53 = vld [vmem:[%s11058_s7 + $0xb34] ss:$8 sps:$4 sm:$0xff]   ;;  %v9445_v54 = vld [vmem:[%s11058_s7 + $0x330] ss:$8 sps:$4 sm:$0xff]  }
 0x1ad   : > { %v9448_v55 = vld [vmem:[%s11058_s7 + $0xb30] ss:$8 sps:$4 sm:$0xff]  }
 0x1af   : > { %7802 = vmatpush1.bf16.msra.mxu1 %v9361_v56  ;;  %8130 = vmatpush1.bf16.msra.mxu0 %v9364_v57  ;;  %v9453_v56 = vld [vmem:[%s11058_s7 + $0x344] ss:$8 sps:$4 sm:$0xff]  }
 0x1b0   : > { %7803 = vmatprep.subr.bf16.mxu1 %v9369_v58  ;;  %8131 = vmatprep.subr.bf16.mxu0 %v9372_v59  ;;  %v9456_v57 = vld [vmem:[%s11058_s7 + $0xb44] ss:$8 sps:$4 sm:$0xff]   ;;  %v9451_v58 = vld [vmem:[%s11058_s7 + $0x340] ss:$8 sps:$4 sm:$0xff]  }
 0x1b1   : > { %v9454_v59 = vld [vmem:[%s11058_s7 + $0xb40] ss:$8 sps:$4 sm:$0xff]  }
 0x1b3   : > { %7804 = vmatpush1.bf16.msra.mxu1 %v9367_v60  ;;  %8132 = vmatpush1.bf16.msra.mxu0 %v9370_v61  ;;  %v9459_v60 = vld [vmem:[%s11058_s7 + $0x354] ss:$8 sps:$4 sm:$0xff]  }
 0x1b4   : > { %7805 = vmatprep.subr.bf16.mxu1 %v9375_v62  ;;  %8133 = vmatprep.subr.bf16.mxu0 %v9378_v63  ;;  %v9462_v61 = vld [vmem:[%s11058_s7 + $0xb54] ss:$8 sps:$4 sm:$0xff]   ;;  %v9457_v62 = vld [vmem:[%s11058_s7 + $0x350] ss:$8 sps:$4 sm:$0xff]  }
 0x1b5   : > { %v9460_v63 = vld [vmem:[%s11058_s7 + $0xb50] ss:$8 sps:$4 sm:$0xff]  }
 0x1b7   : > { %7806 = vmatpush1.bf16.msra.mxu1 %v9373_v0  ;;  %8134 = vmatpush1.bf16.msra.mxu0 %v9376_v1  ;;  %v9465_v0 = vld [vmem:[%s11058_s7 + $0x364] ss:$8 sps:$4 sm:$0xff]  }
 0x1b8   : > { %7807 = vmatprep.subr.bf16.mxu1 %v9381_v2  ;;  %8135 = vmatprep.subr.bf16.mxu0 %v9384_v6  ;;  %v9468_v1 = vld [vmem:[%s11058_s7 + $0xb64] ss:$8 sps:$4 sm:$0xff]   ;;  %v9463_v2 = vld [vmem:[%s11058_s7 + $0x360] ss:$8 sps:$4 sm:$0xff]  }
 0x1b9   : > { %v9466_v6 = vld [vmem:[%s11058_s7 + $0xb60] ss:$8 sps:$4 sm:$0xff]  }
 0x1bb   : > { %7808 = vmatpush1.bf16.msra.mxu1 %v9379_v7  ;;  %8136 = vmatpush1.bf16.msra.mxu0 %v9382_v8  ;;  %v9471_v7 = vld [vmem:[%s11058_s7 + $0x374] ss:$8 sps:$4 sm:$0xff]  }
 0x1bc   : > { %7809 = vmatprep.subr.bf16.mxu1 %v9387_v9  ;;  %8137 = vmatprep.subr.bf16.mxu0 %v9390_v10  ;;  %v9474_v8 = vld [vmem:[%s11058_s7 + $0xb74] ss:$8 sps:$4 sm:$0xff]   ;;  %v9469_v9 = vld [vmem:[%s11058_s7 + $0x370] ss:$8 sps:$4 sm:$0xff]  }
 0x1bd   : > { %v9472_v10 = vld [vmem:[%s11058_s7 + $0xb70] ss:$8 sps:$4 sm:$0xff]  }
 0x1bf   : > { %7810 = vmatpush1.bf16.msra.mxu1 %v9385_v12  ;;  %8138 = vmatpush1.bf16.msra.mxu0 %v9388_v13  ;;  %v9477_v12 = vld [vmem:[%s11058_s7 + $0x384] ss:$8 sps:$4 sm:$0xff]  }
 0x1c0   : > { %7811 = vmatprep.subr.bf16.mxu1 %v9393_v14  ;;  %8139 = vmatprep.subr.bf16.mxu0 %v9396_v17  ;;  %v9480_v13 = vld [vmem:[%s11058_s7 + $0xb84] ss:$8 sps:$4 sm:$0xff]   ;;  %v9475_v14 = vld [vmem:[%s11058_s7 + $0x380] ss:$8 sps:$4 sm:$0xff]  }
 0x1c1   : > { %v9478_v17 = vld [vmem:[%s11058_s7 + $0xb80] ss:$8 sps:$4 sm:$0xff]  }
 0x1c3   : > { %7812 = vmatpush1.bf16.msra.mxu1 %v9391_v18  ;;  %8140 = vmatpush1.bf16.msra.mxu0 %v9394_v19  ;;  %v9483_v18 = vld [vmem:[%s11058_s7 + $0x394] ss:$8 sps:$4 sm:$0xff]  }
 0x1c4   : > { %7813 = vmatprep.subr.bf16.mxu1 %v9399_v20  ;;  %8141 = vmatprep.subr.bf16.mxu0 %v9402_v21  ;;  %v9486_v19 = vld [vmem:[%s11058_s7 + $0xb94] ss:$8 sps:$4 sm:$0xff]   ;;  %v9481_v20 = vld [vmem:[%s11058_s7 + $0x390] ss:$8 sps:$4 sm:$0xff]  }
 0x1c5   : > { %v9484_v21 = vld [vmem:[%s11058_s7 + $0xb90] ss:$8 sps:$4 sm:$0xff]  }
 0x1c7   : > { %7814 = vmatpush1.bf16.msra.mxu1 %v9397_v22  ;;  %8142 = vmatpush1.bf16.msra.mxu0 %v9400_v23  ;;  %v9489_v22 = vld [vmem:[%s11058_s7 + $0x3a4] ss:$8 sps:$4 sm:$0xff]  }
 0x1c8   : > { %7815 = vmatprep.subr.bf16.mxu1 %v9405_v28  ;;  %8143 = vmatprep.subr.bf16.mxu0 %v9408_v29  ;;  %v9492_v23 = vld [vmem:[%s11058_s7 + $0xba4] ss:$8 sps:$4 sm:$0xff]   ;;  %v9487_v28 = vld [vmem:[%s11058_s7 + $0x3a0] ss:$8 sps:$4 sm:$0xff]  }
 0x1c9   : > { %v9490_v29 = vld [vmem:[%s11058_s7 + $0xba0] ss:$8 sps:$4 sm:$0xff]  }
 0x1cb   : > { %7816 = vmatpush1.bf16.msra.mxu1 %v9403_v30  ;;  %8144 = vmatpush1.bf16.msra.mxu0 %v9406_v15  ;;  %v9495_v30 = vld [vmem:[%s11058_s7 + $0x3b4] ss:$8 sps:$4 sm:$0xff]  }
 0x1cc   : > { %7817 = vmatprep.subr.bf16.mxu1 %v9411_v31  ;;  %8145 = vmatprep.subr.bf16.mxu0 %v9414_v5  ;;  %v9498_v15 = vld [vmem:[%s11058_s7 + $0xbb4] ss:$8 sps:$4 sm:$0xff]   ;;  %v9493_v31 = vld [vmem:[%s11058_s7 + $0x3b0] ss:$8 sps:$4 sm:$0xff]  }
 0x1cd   : > { %v9496_v5 = vld [vmem:[%s11058_s7 + $0xbb0] ss:$8 sps:$4 sm:$0xff]  }
 0x1cf   : > { %7818 = vmatpush1.bf16.msra.mxu1 %v9409_v32  ;;  %8146 = vmatpush1.bf16.msra.mxu0 %v9412_v25  ;;  %v9501_v32 = vld [vmem:[%s11058_s7 + $0x3c4] ss:$8 sps:$4 sm:$0xff]  }
 0x1d0   : > { %7819 = vmatprep.subr.bf16.mxu1 %v9417_v26  ;;  %8147 = vmatprep.subr.bf16.mxu0 %v9420_v33  ;;  %v9504_v25 = vld [vmem:[%s11058_s7 + $0xbc4] ss:$8 sps:$4 sm:$0xff]   ;;  %v9499_v26 = vld [vmem:[%s11058_s7 + $0x3c0] ss:$8 sps:$4 sm:$0xff]  }
 0x1d1   : > { %v9502_v33 = vld [vmem:[%s11058_s7 + $0xbc0] ss:$8 sps:$4 sm:$0xff]  }
 0x1d3   : > { %7820 = vmatpush1.bf16.msra.mxu1 %v9415_v34  ;;  %8148 = vmatpush1.bf16.msra.mxu0 %v9418_v35  ;;  %v9507_v34 = vld [vmem:[%s11058_s7 + $0x3d4] ss:$8 sps:$4 sm:$0xff]  }
 0x1d4   : > { %7821 = vmatprep.subr.bf16.mxu1 %v9423_v36  ;;  %8149 = vmatprep.subr.bf16.mxu0 %v9426_v37  ;;  %v9510_v35 = vld [vmem:[%s11058_s7 + $0xbd4] ss:$8 sps:$4 sm:$0xff]   ;;  %v9505_v36 = vld [vmem:[%s11058_s7 + $0x3d0] ss:$8 sps:$4 sm:$0xff]  }
 0x1d5   : > { %v9508_v37 = vld [vmem:[%s11058_s7 + $0xbd0] ss:$8 sps:$4 sm:$0xff]  }
 0x1d7   : > { %7822 = vmatpush1.bf16.msra.mxu1 %v9421_v38  ;;  %8150 = vmatpush1.bf16.msra.mxu0 %v9424_v39  ;;  %v9513_v38 = vld [vmem:[%s11058_s7 + $0x3e4] ss:$8 sps:$4 sm:$0xff]  }
 0x1d8   : > { %7832 = vmatprep.subr.bf16.mxu1 %v9429_v27  ;;  %8160 = vmatprep.subr.bf16.mxu0 %v9432_v41  ;;  %v9516_v39 = vld [vmem:[%s11058_s7 + $0xbe4] ss:$8 sps:$4 sm:$0xff]   ;;  %v11395_v41 = vld [vmem:[%s11773_s0 + $0x18] sm:$0xff] }
 0x1d9   : > { %v11390_v27 = vld [vmem:[%s11773_s0 + $0x8] sm:$0xff] }
 0x1da   : > { %7824 = vmatmul.mubr.bf16.vlgmr.msra.gmra.mrb[0].mxu1 %v11321_v44  ;;  %8152 = vmatmul.mubr.bf16.vlgmr.msra.gmra.mrb[0].mxu0 %v11325_v45 }
 0x1db   : > { %7833 = vmatpush1.bf16.msra.mxu1 %v9427_v42  ;;  %8161 = vmatpush1.bf16.msra.mxu0 %v9430_v43  ;;  %v9511_v42 = vld [vmem:[%s11058_s7 + $0x3e0] ss:$8 sps:$4 sm:$0xff]  }
 0x1dc   : > { %7834 = vmatprep.subr.bf16.mxu1 %v9435_v46  ;;  %8162 = vmatprep.subr.bf16.mxu0 %v9438_v47  ;;  %v9514_v43 = vld [vmem:[%s11058_s7 + $0xbe0] ss:$8 sps:$4 sm:$0xff]   ;;  %v9519_v46 = vld [vmem:[%s11058_s7 + $0x3f4] ss:$8 sps:$4 sm:$0xff]  }
 0x1dd   : > { %7864 = vmatprep.mubr.bf16.mxu1 %v4969_v48  ;;  %8192 = vmatprep.mubr.bf16.mxu0 %v5067_v16  ;;  %v9522_v47 = vld [vmem:[%s11058_s7 + $0xbf4] ss:$8 sps:$4 sm:$0xff]   ;;  %v11403_v48 = vrot.slane %v11390_v27, %v11065_v11  ;;  %v11407_v16 = vrot.slane %v11395_v41, %v11065_v11 }
 0x1df   : > { %7835 = vmatpush1.bf16.msra.mxu1 %v9433_v3  ;;  %8163 = vmatpush1.bf16.msra.mxu0 %v9436_v49  ;;  %v9517_v3 = vld [vmem:[%s11058_s7 + $0x3f0] ss:$8 sps:$4 sm:$0xff]  }
 0x1e0   : > { %7836 = vmatprep.subr.bf16.mxu1 %v9441_v50  ;;  %8164 = vmatprep.subr.bf16.mxu0 %v9444_v40  ;;  %v9520_v49 = vld [vmem:[%s11058_s7 + $0xbf0] ss:$8 sps:$4 sm:$0xff]   ;;  %v9525_v50 = vld [vmem:[%s11058_s7 + $0x404] ss:$8 sps:$4 sm:$0xff]  }
 0x1e1   : > { %v9528_v40 = vld [vmem:[%s11058_s7 + $0xc04] ss:$8 sps:$4 sm:$0xff]  }
 0x1e3   : > { %7837 = vmatpush1.bf16.msra.mxu1 %v9439_v24  ;;  %8165 = vmatpush1.bf16.msra.mxu0 %v9442_v51  ;;  %v4985_v24 = vcombine.high %v11403_v48, %v11403_v48  ;;  %v5083_v51 = vcombine.high %v11407_v16, %v11407_v16 }
 0x1e4   : > { %7838 = vmatprep.subr.bf16.mxu1 %v9447_v52  ;;  %8166 = vmatprep.subr.bf16.mxu0 %v9450_v53  ;;  %v4967_v52 = vcombine.high %v11321_v44, %v11321_v44  ;;  %v5065_v53 = vcombine.high %v11325_v45, %v11325_v45  ;;  %v9529_v45 = vld [vmem:[%s11058_s7 + $0x410] ss:$8 sps:$4 sm:$0xff]  }
 0x1e5   : > { %v11429_v44 = vrot.slane %v5083_v51, %v11065_v11  ;;  %v9604_v51 = vld [vmem:[%s11058_s7 + $0xcd0] ss:$8 sps:$4 sm:$0xff]  }
 0x1e7   : > { %7839 = vmatpush1.bf16.msra.mxu1 %v9445_v54  ;;  %8167 = vmatpush1.bf16.msra.mxu0 %v9448_v55  ;;  %v9523_v54 = vld [vmem:[%s11058_s7 + $0x400] ss:$8 sps:$4 sm:$0xff]  }
 0x1e8   : > { %7840 = vmatprep.subr.bf16.mxu1 %v9453_v56  ;;  %8168 = vmatprep.subr.bf16.mxu0 %v9456_v57  ;;  %v9526_v55 = vld [vmem:[%s11058_s7 + $0xc00] ss:$8 sps:$4 sm:$0xff]   ;;  %v9531_v56 = vld [vmem:[%s11058_s7 + $0x414] ss:$8 sps:$4 sm:$0xff]  }
 0x1e9   : > { %v9534_v57 = vld [vmem:[%s11058_s7 + $0xc14] ss:$8 sps:$4 sm:$0xff]  }
 0x1eb   : > { %7841 = vmatpush1.bf16.msra.mxu1 %v9451_v58  ;;  %8169 = vmatpush1.bf16.msra.mxu0 %v9454_v59  ;;  %v11426_v58 = vrot.slane %v4985_v24, %v11065_v11  ;;  %v9532_v59 = vld [vmem:[%s11058_s7 + $0xc10] ss:$8 sps:$4 sm:$0xff]  }
 0x1ec   : > { %7842 = vmatprep.subr.bf16.mxu1 %v9459_v60  ;;  %8170 = vmatprep.subr.bf16.mxu0 %v9462_v61  ;;  %v9537_v60 = vld [vmem:[%s11058_s7 + $0x424] ss:$8 sps:$4 sm:$0xff]   ;;  %v9601_v24 = vld [vmem:[%s11058_s7 + $0x4d0] ss:$8 sps:$4 sm:$0xff]  }
 0x1ed   : > { %v9540_v61 = vld [vmem:[%s11058_s7 + $0xc24] ss:$8 sps:$4 sm:$0xff]  }
 0x1ef   : > { %7843 = vmatpush1.bf16.msra.mxu1 %v9457_v62  ;;  %8171 = vmatpush1.bf16.msra.mxu0 %v9460_v63  ;;  %v9535_v62 = vld [vmem:[%s11058_s7 + $0x420] ss:$8 sps:$4 sm:$0xff]  }
 0x1f0   : > { %7844 = vmatprep.subr.bf16.mxu1 %v9465_v0  ;;  %8172 = vmatprep.subr.bf16.mxu0 %v9468_v1  ;;  %v9538_v63 = vld [vmem:[%s11058_s7 + $0xc20] ss:$8 sps:$4 sm:$0xff]   ;;  %v9543_v0 = vld [vmem:[%s11058_s7 + $0x434] ss:$8 sps:$4 sm:$0xff]  }
 0x1f1   : > { %v9546_v1 = vld [vmem:[%s11058_s7 + $0xc34] ss:$8 sps:$4 sm:$0xff]  }
 0x1f3   : > { %7845 = vmatpush1.bf16.msra.mxu1 %v9463_v2  ;;  %8173 = vmatpush1.bf16.msra.mxu0 %v9466_v6  ;;  %v9541_v2 = vld [vmem:[%s11058_s7 + $0x430] ss:$8 sps:$4 sm:$0xff]  }
 0x1f4   : > { %7846 = vmatprep.subr.bf16.mxu1 %v9471_v7  ;;  %8174 = vmatprep.subr.bf16.mxu0 %v9474_v8  ;;  %v9544_v6 = vld [vmem:[%s11058_s7 + $0xc30] ss:$8 sps:$4 sm:$0xff]   ;;  %v9549_v7 = vld [vmem:[%s11058_s7 + $0x444] ss:$8 sps:$4 sm:$0xff]  }
 0x1f5   : > { %v9552_v8 = vld [vmem:[%s11058_s7 + $0xc44] ss:$8 sps:$4 sm:$0xff]  }
 0x1f7   : > { %7847 = vmatpush1.bf16.msra.mxu1 %v9469_v9  ;;  %8175 = vmatpush1.bf16.msra.mxu0 %v9472_v10  ;;  %v9547_v9 = vld [vmem:[%s11058_s7 + $0x440] ss:$8 sps:$4 sm:$0xff]  }
 0x1f8   : > { %7848 = vmatprep.subr.bf16.mxu1 %v9477_v12  ;;  %8176 = vmatprep.subr.bf16.mxu0 %v9480_v13  ;;  %v9550_v10 = vld [vmem:[%s11058_s7 + $0xc40] ss:$8 sps:$4 sm:$0xff]   ;;  %v9555_v12 = vld [vmem:[%s11058_s7 + $0x454] ss:$8 sps:$4 sm:$0xff]  }
 0x1f9   : > { %v9558_v13 = vld [vmem:[%s11058_s7 + $0xc54] ss:$8 sps:$4 sm:$0xff]  }
 0x1fb   : > { %7849 = vmatpush1.bf16.msra.mxu1 %v9475_v14  ;;  %8177 = vmatpush1.bf16.msra.mxu0 %v9478_v17  ;;  %v9553_v14 = vld [vmem:[%s11058_s7 + $0x450] ss:$8 sps:$4 sm:$0xff]  }
 0x1fc   : > { %7850 = vmatprep.subr.bf16.mxu1 %v9483_v18  ;;  %8178 = vmatprep.subr.bf16.mxu0 %v9486_v19  ;;  %v9556_v17 = vld [vmem:[%s11058_s7 + $0xc50] ss:$8 sps:$4 sm:$0xff]   ;;  %v9561_v18 = vld [vmem:[%s11058_s7 + $0x464] ss:$8 sps:$4 sm:$0xff]  }
 0x1fd   : > { %v9564_v19 = vld [vmem:[%s11058_s7 + $0xc64] ss:$8 sps:$4 sm:$0xff]  }
 0x1ff   : > { %7851 = vmatpush1.bf16.msra.mxu1 %v9481_v20  ;;  %8179 = vmatpush1.bf16.msra.mxu0 %v9484_v21  ;;  %v9559_v20 = vld [vmem:[%s11058_s7 + $0x460] ss:$8 sps:$4 sm:$0xff]  }
 0x200   : > { %7852 = vmatprep.subr.bf16.mxu1 %v9489_v22  ;;  %8180 = vmatprep.subr.bf16.mxu0 %v9492_v23  ;;  %v9562_v21 = vld [vmem:[%s11058_s7 + $0xc60] ss:$8 sps:$4 sm:$0xff]   ;;  %v9567_v22 = vld [vmem:[%s11058_s7 + $0x474] ss:$8 sps:$4 sm:$0xff]  }
 0x201   : > { %v9570_v23 = vld [vmem:[%s11058_s7 + $0xc74] ss:$8 sps:$4 sm:$0xff]  }
 0x203   : > { %7853 = vmatpush1.bf16.msra.mxu1 %v9487_v28  ;;  %8181 = vmatpush1.bf16.msra.mxu0 %v9490_v29  ;;  %v9565_v28 = vld [vmem:[%s11058_s7 + $0x470] ss:$8 sps:$4 sm:$0xff]  }
 0x204   : > { %7854 = vmatprep.subr.bf16.mxu1 %v9495_v30  ;;  %8182 = vmatprep.subr.bf16.mxu0 %v9498_v15  ;;  %v9568_v29 = vld [vmem:[%s11058_s7 + $0xc70] ss:$8 sps:$4 sm:$0xff]   ;;  %v9573_v30 = vld [vmem:[%s11058_s7 + $0x484] ss:$8 sps:$4 sm:$0xff]  }
 0x205   : > { %v9576_v15 = vld [vmem:[%s11058_s7 + $0xc84] ss:$8 sps:$4 sm:$0xff]  }
 0x207   : > { %7855 = vmatpush1.bf16.msra.mxu1 %v9493_v31  ;;  %8183 = vmatpush1.bf16.msra.mxu0 %v9496_v5  ;;  %v9571_v31 = vld [vmem:[%s11058_s7 + $0x480] ss:$8 sps:$4 sm:$0xff]  }
 0x208   : > { %7856 = vmatprep.subr.bf16.mxu1 %v9501_v32  ;;  %8184 = vmatprep.subr.bf16.mxu0 %v9504_v25  ;;  %v9574_v5 = vld [vmem:[%s11058_s7 + $0xc80] ss:$8 sps:$4 sm:$0xff]   ;;  %v9579_v32 = vld [vmem:[%s11058_s7 + $0x494] ss:$8 sps:$4 sm:$0xff]  }
 0x209   : > { %v9582_v25 = vld [vmem:[%s11058_s7 + $0xc94] ss:$8 sps:$4 sm:$0xff]  }
 0x20b   : > { %7857 = vmatpush1.bf16.msra.mxu1 %v9499_v26  ;;  %8185 = vmatpush1.bf16.msra.mxu0 %v9502_v33  ;;  %v9577_v26 = vld [vmem:[%s11058_s7 + $0x490] ss:$8 sps:$4 sm:$0xff]  }
 0x20c   : > { %7858 = vmatprep.subr.bf16.mxu1 %v9507_v34  ;;  %8186 = vmatprep.subr.bf16.mxu0 %v9510_v35  ;;  %v9580_v33 = vld [vmem:[%s11058_s7 + $0xc90] ss:$8 sps:$4 sm:$0xff]   ;;  %v9585_v34 = vld [vmem:[%s11058_s7 + $0x4a4] ss:$8 sps:$4 sm:$0xff]  }
 0x20d   : > { %v9588_v35 = vld [vmem:[%s11058_s7 + $0xca4] ss:$8 sps:$4 sm:$0xff]  }
 0x20f   : > { %7859 = vmatpush1.bf16.msra.mxu1 %v9505_v36  ;;  %8187 = vmatpush1.bf16.msra.mxu0 %v9508_v37  ;;  %v9583_v36 = vld [vmem:[%s11058_s7 + $0x4a0] ss:$8 sps:$4 sm:$0xff]  }
 0x210   : > { %7860 = vmatprep.subr.bf16.mxu1 %v9513_v38  ;;  %8188 = vmatprep.subr.bf16.mxu0 %v9516_v39  ;;  %v9586_v37 = vld [vmem:[%s11058_s7 + $0xca0] ss:$8 sps:$4 sm:$0xff]   ;;  %v9591_v38 = vld [vmem:[%s11058_s7 + $0x4b4] ss:$8 sps:$4 sm:$0xff]  }
 0x211   : > { %v9594_v39 = vld [vmem:[%s11058_s7 + $0xcb4] ss:$8 sps:$4 sm:$0xff]  }
 0x213   : > { %7861 = vmatpush1.bf16.msra.mxu1 %v9511_v42  ;;  %8189 = vmatpush1.bf16.msra.mxu0 %v9514_v43  ;;  %v9589_v42 = vld [vmem:[%s11058_s7 + $0x4b0] ss:$8 sps:$4 sm:$0xff]  }
 0x214   : > { %7862 = vmatprep.subr.bf16.mxu1 %v9519_v46  ;;  %8190 = vmatprep.subr.bf16.mxu0 %v9522_v47  ;;  %v9592_v43 = vld [vmem:[%s11058_s7 + $0xcb0] ss:$8 sps:$4 sm:$0xff]   ;;  %v9597_v46 = vld [vmem:[%s11058_s7 + $0x4c4] ss:$8 sps:$4 sm:$0xff]  }
 0x215   : > { %v9600_v47 = vld [vmem:[%s11058_s7 + $0xcc4] ss:$8 sps:$4 sm:$0xff]  }
 0x217   : > { %7863 = vmatpush1.bf16.msra.mxu1 %v9517_v3  ;;  %8191 = vmatpush1.bf16.msra.mxu0 %v9520_v49  ;;  %v9595_v3 = vld [vmem:[%s11058_s7 + $0x4c0] ss:$8 sps:$4 sm:$0xff]  }
 0x218   : > { %7873 = vmatprep.subr.bf16.mxu1 %v9525_v50  ;;  %8201 = vmatprep.subr.bf16.mxu0 %v9528_v40  ;;  %v9598_v49 = vld [vmem:[%s11058_s7 + $0xcc0] ss:$8 sps:$4 sm:$0xff]   ;;  %v9603_v50 = vld [vmem:[%s11058_s7 + $0x4d4] ss:$8 sps:$4 sm:$0xff]  }
 0x219   : > { %v9606_v40 = vld [vmem:[%s11058_s7 + $0xcd4] ss:$8 sps:$4 sm:$0xff]  }
 0x21a   : > { %7865 = vmatmul.mubr.bf16.vlgmr.msra.gmra.mrb[0].mxu1 %v4967_v52  ;;  %8193 = vmatmul.mubr.bf16.vlgmr.msra.gmra.mrb[0].mxu0 %v5065_v53  ;;  %v9609_v52 = vld [vmem:[%s11058_s7 + $0x4e4] ss:$8 sps:$4 sm:$0xff]  }
 0x21b   : > { %7874 = vmatpush1.bf16.msra.mxu1 %v9523_v54  ;;  %8202 = vmatpush1.bf16.msra.mxu0 %v9526_v55  ;;  %v9612_v53 = vld [vmem:[%s11058_s7 + $0xce4] ss:$8 sps:$4 sm:$0xff]   ;;  %v9607_v54 = vld [vmem:[%s11058_s7 + $0x4e0] ss:$8 sps:$4 sm:$0xff]  }
 0x21c   : > { %7875 = vmatprep.subr.bf16.mxu1 %v9531_v56  ;;  %8203 = vmatprep.subr.bf16.mxu0 %v9534_v57  ;;  %v9610_v55 = vld [vmem:[%s11058_s7 + $0xce0] ss:$8 sps:$4 sm:$0xff]   ;;  %v9615_v56 = vld [vmem:[%s11058_s7 + $0x4f4] ss:$8 sps:$4 sm:$0xff]  }
 0x21d   : > { %7905 = vmatprep.mubr.bf16.mxu1 %v11426_v58  ;;  %8233 = vmatprep.mubr.bf16.mxu0 %v11429_v44  ;;  %v9618_v57 = vld [vmem:[%s11058_s7 + $0xcf4] ss:$8 sps:$4 sm:$0xff]  }
 0x21f   : > { %7876 = vmatpush1.bf16.msra.mxu1 %v9529_v45  ;;  %8204 = vmatpush1.bf16.msra.mxu0 %v9532_v59  ;;  %v9613_v45 = vld [vmem:[%s11058_s7 + $0x4f0] ss:$8 sps:$4 sm:$0xff]  }
 0x220   : > { %7877 = vmatprep.subr.bf16.mxu1 %v9537_v60  ;;  %8205 = vmatprep.subr.bf16.mxu0 %v9540_v61  ;;  %v9616_v59 = vld [vmem:[%s11058_s7 + $0xcf0] ss:$8 sps:$4 sm:$0xff]   ;;  %v9621_v60 = vld [vmem:[%s11058_s7 + $0x504] ss:$8 sps:$4 sm:$0xff]  }
 0x221   : > { %v9624_v61 = vld [vmem:[%s11058_s7 + $0xd04] ss:$8 sps:$4 sm:$0xff]  }
 0x223   : > { %7878 = vmatpush1.bf16.msra.mxu1 %v9535_v62  ;;  %8206 = vmatpush1.bf16.msra.mxu0 %v9538_v63  ;;  %v11495_v62 = vrot.slane %v11403_v48, %v11065_v11  ;;  %v11499_v63 = vrot.slane %v11407_v16, %v11065_v11  ;;  %v5017_v48 = vcombine.high %v11426_v58, %v11426_v58  ;;  %v9625_v16 = vld [vmem:[%s11058_s7 + $0x510] ss:$8 sps:$4 sm:$0xff]   ;;  %v9633_v58 = vld [vmem:[%s11058_s7 + $0x524] ss:$8 sps:$4 sm:$0xff]  }
 0x224   : > { %7879 = vmatprep.subr.bf16.mxu1 %v9543_v0  ;;  %8207 = vmatprep.subr.bf16.mxu0 %v9546_v1  ;;  %v9619_v0 = vld [vmem:[%s11058_s7 + $0x500] ss:$8 sps:$4 sm:$0xff]  }
 0x225   : > { %v9622_v1 = vld [vmem:[%s11058_s7 + $0xd00] ss:$8 sps:$4 sm:$0xff]  }
 0x227   : > { %7880 = vmatpush1.bf16.msra.mxu1 %v9541_v2  ;;  %8208 = vmatpush1.bf16.msra.mxu0 %v9544_v6  ;;  %v9627_v2 = vld [vmem:[%s11058_s7 + $0x514] ss:$8 sps:$4 sm:$0xff]  }
 0x228   : > { %7881 = vmatprep.subr.bf16.mxu1 %v9549_v7  ;;  %8209 = vmatprep.subr.bf16.mxu0 %v9552_v8  ;;  %v9630_v6 = vld [vmem:[%s11058_s7 + $0xd14] ss:$8 sps:$4 sm:$0xff]   ;;  %v5115_v7 = vcombine.high %v11429_v44, %v11429_v44  ;;  %v9628_v8 = vld [vmem:[%s11058_s7 + $0xd10] ss:$8 sps:$4 sm:$0xff]   ;;  %v9631_v44 = vld [vmem:[%s11058_s7 + $0x520] ss:$8 sps:$4 sm:$0xff]  }
 0x22b   : > { %7882 = vmatpush1.bf16.msra.mxu1 %v9547_v9  ;;  %8210 = vmatpush1.bf16.msra.mxu0 %v9550_v10  ;;  %v9636_v9 = vld [vmem:[%s11058_s7 + $0xd24] ss:$8 sps:$4 sm:$0xff]   ;;  %v9634_v10 = vld [vmem:[%s11058_s7 + $0xd20] ss:$8 sps:$4 sm:$0xff]  }
 0x22c   : > { %7883 = vmatprep.subr.bf16.mxu1 %v9555_v12  ;;  %8211 = vmatprep.subr.bf16.mxu0 %v9558_v13  ;;  %v9639_v12 = vld [vmem:[%s11058_s7 + $0x534] ss:$8 sps:$4 sm:$0xff]  }
 0x22d   : > { %v9642_v13 = vld [vmem:[%s11058_s7 + $0xd34] ss:$8 sps:$4 sm:$0xff]  }
 0x22f   : > { %7884 = vmatpush1.bf16.msra.mxu1 %v9553_v14  ;;  %8212 = vmatpush1.bf16.msra.mxu0 %v9556_v17  ;;  %v9637_v14 = vld [vmem:[%s11058_s7 + $0x530] ss:$8 sps:$4 sm:$0xff]  }
 0x230   : > { %7885 = vmatprep.subr.bf16.mxu1 %v9561_v18  ;;  %8213 = vmatprep.subr.bf16.mxu0 %v9564_v19  ;;  %v9640_v17 = vld [vmem:[%s11058_s7 + $0xd30] ss:$8 sps:$4 sm:$0xff]   ;;  %v9645_v18 = vld [vmem:[%s11058_s7 + $0x544] ss:$8 sps:$4 sm:$0xff]  }
 0x231   : > { %v9648_v19 = vld [vmem:[%s11058_s7 + $0xd44] ss:$8 sps:$4 sm:$0xff]  }
 0x233   : > { %7886 = vmatpush1.bf16.msra.mxu1 %v9559_v20  ;;  %8214 = vmatpush1.bf16.msra.mxu0 %v9562_v21  ;;  %v9643_v20 = vld [vmem:[%s11058_s7 + $0x540] ss:$8 sps:$4 sm:$0xff]  }
 0x234   : > { %7887 = vmatprep.subr.bf16.mxu1 %v9567_v22  ;;  %8215 = vmatprep.subr.bf16.mxu0 %v9570_v23  ;;  %v9646_v21 = vld [vmem:[%s11058_s7 + $0xd40] ss:$8 sps:$4 sm:$0xff]   ;;  %v9651_v22 = vld [vmem:[%s11058_s7 + $0x554] ss:$8 sps:$4 sm:$0xff]  }
 0x235   : > { %v9654_v23 = vld [vmem:[%s11058_s7 + $0xd54] ss:$8 sps:$4 sm:$0xff]  }
 0x237   : > { %7888 = vmatpush1.bf16.msra.mxu1 %v9565_v28  ;;  %8216 = vmatpush1.bf16.msra.mxu0 %v9568_v29  ;;  %v9649_v28 = vld [vmem:[%s11058_s7 + $0x550] ss:$8 sps:$4 sm:$0xff]  }
 0x238   : > { %7889 = vmatprep.subr.bf16.mxu1 %v9573_v30  ;;  %8217 = vmatprep.subr.bf16.mxu0 %v9576_v15  ;;  %v9652_v29 = vld [vmem:[%s11058_s7 + $0xd50] ss:$8 sps:$4 sm:$0xff]   ;;  %v9657_v30 = vld [vmem:[%s11058_s7 + $0x564] ss:$8 sps:$4 sm:$0xff]  }
 0x239   : > { %v9660_v15 = vld [vmem:[%s11058_s7 + $0xd64] ss:$8 sps:$4 sm:$0xff]  }
 0x23b   : > { %7890 = vmatpush1.bf16.msra.mxu1 %v9571_v31  ;;  %8218 = vmatpush1.bf16.msra.mxu0 %v9574_v5  ;;  %v9655_v31 = vld [vmem:[%s11058_s7 + $0x560] ss:$8 sps:$4 sm:$0xff]  }
 0x23c   : > { %7891 = vmatprep.subr.bf16.mxu1 %v9579_v32  ;;  %8219 = vmatprep.subr.bf16.mxu0 %v9582_v25  ;;  %v9658_v5 = vld [vmem:[%s11058_s7 + $0xd60] ss:$8 sps:$4 sm:$0xff]   ;;  %v9663_v32 = vld [vmem:[%s11058_s7 + $0x574] ss:$8 sps:$4 sm:$0xff]  }
 0x23d   : > { %v9666_v25 = vld [vmem:[%s11058_s7 + $0xd74] ss:$8 sps:$4 sm:$0xff]  }
 0x23f   : > { %7892 = vmatpush1.bf16.msra.mxu1 %v9577_v26  ;;  %8220 = vmatpush1.bf16.msra.mxu0 %v9580_v33  ;;  %v9661_v26 = vld [vmem:[%s11058_s7 + $0x570] ss:$8 sps:$4 sm:$0xff]  }
 0x240   : > { %7893 = vmatprep.subr.bf16.mxu1 %v9585_v34  ;;  %8221 = vmatprep.subr.bf16.mxu0 %v9588_v35  ;;  %v9664_v33 = vld [vmem:[%s11058_s7 + $0xd70] ss:$8 sps:$4 sm:$0xff]   ;;  %v9669_v34 = vld [vmem:[%s11058_s7 + $0x584] ss:$8 sps:$4 sm:$0xff]  }
 0x241   : > { %v9672_v35 = vld [vmem:[%s11058_s7 + $0xd84] ss:$8 sps:$4 sm:$0xff]  }
 0x243   : > { %7894 = vmatpush1.bf16.msra.mxu1 %v9583_v36  ;;  %8222 = vmatpush1.bf16.msra.mxu0 %v9586_v37  ;;  %v9667_v36 = vld [vmem:[%s11058_s7 + $0x580] ss:$8 sps:$4 sm:$0xff]  }
 0x244   : > { %7895 = vmatprep.subr.bf16.mxu1 %v9591_v38  ;;  %8223 = vmatprep.subr.bf16.mxu0 %v9594_v39  ;;  %v9670_v37 = vld [vmem:[%s11058_s7 + $0xd80] ss:$8 sps:$4 sm:$0xff]   ;;  %v9675_v38 = vld [vmem:[%s11058_s7 + $0x594] ss:$8 sps:$4 sm:$0xff]  }
 0x245   : > { %v9678_v39 = vld [vmem:[%s11058_s7 + $0xd94] ss:$8 sps:$4 sm:$0xff]  }
 0x247   : > { %7896 = vmatpush1.bf16.msra.mxu1 %v9589_v42  ;;  %8224 = vmatpush1.bf16.msra.mxu0 %v9592_v43  ;;  %v9673_v42 = vld [vmem:[%s11058_s7 + $0x590] ss:$8 sps:$4 sm:$0xff]  }
 0x248   : > { %7897 = vmatprep.subr.bf16.mxu1 %v9597_v46  ;;  %8225 = vmatprep.subr.bf16.mxu0 %v9600_v47  ;;  %v9676_v43 = vld [vmem:[%s11058_s7 + $0xd90] ss:$8 sps:$4 sm:$0xff]   ;;  %v9681_v46 = vld [vmem:[%s11058_s7 + $0x5a4] ss:$8 sps:$4 sm:$0xff]  }
 0x249   : > { %v9684_v47 = vld [vmem:[%s11058_s7 + $0xda4] ss:$8 sps:$4 sm:$0xff]  }
 0x24b   : > { %7898 = vmatpush1.bf16.msra.mxu1 %v9595_v3  ;;  %8226 = vmatpush1.bf16.msra.mxu0 %v9598_v49  ;;  %v9679_v3 = vld [vmem:[%s11058_s7 + $0x5a0] ss:$8 sps:$4 sm:$0xff]  }
 0x24c   : > { %7899 = vmatprep.subr.bf16.mxu1 %v9603_v50  ;;  %8227 = vmatprep.subr.bf16.mxu0 %v9606_v40  ;;  %v9682_v49 = vld [vmem:[%s11058_s7 + $0xda0] ss:$8 sps:$4 sm:$0xff]   ;;  %v9687_v50 = vld [vmem:[%s11058_s7 + $0x5b4] ss:$8 sps:$4 sm:$0xff]  }
 0x24d   : > { %v9690_v40 = vld [vmem:[%s11058_s7 + $0xdb4] ss:$8 sps:$4 sm:$0xff]  }
 0x24f   : > { %7900 = vmatpush1.bf16.msra.mxu1 %v9601_v24  ;;  %8228 = vmatpush1.bf16.msra.mxu0 %v9604_v51  ;;  %v9685_v24 = vld [vmem:[%s11058_s7 + $0x5b0] ss:$8 sps:$4 sm:$0xff]  }
 0x250   : > { %7901 = vmatprep.subr.bf16.mxu1 %v9609_v52  ;;  %8229 = vmatprep.subr.bf16.mxu0 %v9612_v53  ;;  %v9688_v51 = vld [vmem:[%s11058_s7 + $0xdb0] ss:$8 sps:$4 sm:$0xff]   ;;  %v9693_v52 = vld [vmem:[%s11058_s7 + $0x5c4] ss:$8 sps:$4 sm:$0xff]  }
 0x251   : > { %v9696_v53 = vld [vmem:[%s11058_s7 + $0xdc4] ss:$8 sps:$4 sm:$0xff]  }
 0x253   : > { %7902 = vmatpush1.bf16.msra.mxu1 %v9607_v54  ;;  %8230 = vmatpush1.bf16.msra.mxu0 %v9610_v55  ;;  %v9691_v54 = vld [vmem:[%s11058_s7 + $0x5c0] ss:$8 sps:$4 sm:$0xff]  }
 0x254   : > { %7903 = vmatprep.subr.bf16.mxu1 %v9615_v56  ;;  %8231 = vmatprep.subr.bf16.mxu0 %v9618_v57  ;;  %v9694_v55 = vld [vmem:[%s11058_s7 + $0xdc0] ss:$8 sps:$4 sm:$0xff]   ;;  %v9699_v56 = vld [vmem:[%s11058_s7 + $0x5d4] ss:$8 sps:$4 sm:$0xff]  }
 0x255   : > { %v9702_v57 = vld [vmem:[%s11058_s7 + $0xdd4] ss:$8 sps:$4 sm:$0xff]  }
 0x257   : > { %7904 = vmatpush1.bf16.msra.mxu1 %v9613_v45  ;;  %8232 = vmatpush1.bf16.msra.mxu0 %v9616_v59  ;;  %v9697_v45 = vld [vmem:[%s11058_s7 + $0x5d0] ss:$8 sps:$4 sm:$0xff]  }
 0x258   : > { %7914 = vmatprep.subr.bf16.mxu1 %v9621_v60  ;;  %8242 = vmatprep.subr.bf16.mxu0 %v9624_v61  ;;  %v9700_v59 = vld [vmem:[%s11058_s7 + $0xdd0] ss:$8 sps:$4 sm:$0xff]   ;;  %v9705_v60 = vld [vmem:[%s11058_s7 + $0x5e4] ss:$8 sps:$4 sm:$0xff]  }
 0x259   : > { %v9708_v61 = vld [vmem:[%s11058_s7 + $0xde4] ss:$8 sps:$4 sm:$0xff]  }
 0x25a   : > { %7906 = vmatmul.mubr.bf16.vlgmr.msra.gmra.mrb[0].mxu1 %v11495_v62  ;;  %8234 = vmatmul.mubr.bf16.vlgmr.msra.gmra.mrb[0].mxu0 %v11499_v63 }
 0x25b   : > { %7915 = vmatpush1.bf16.msra.mxu1 %v9619_v0  ;;  %8243 = vmatpush1.bf16.msra.mxu0 %v9622_v1  ;;  %v4970_v0 = vcombine.high %v11390_v27, %v11390_v27  ;;  %v5068_v1 = vcombine.high %v11395_v41, %v11395_v41  ;;  %v9709_v27 = vld [vmem:[%s11058_s7 + $0x5f0] ss:$8 sps:$4 sm:$0xff]  }
 0x25c   : > { %7916 = vmatprep.subr.bf16.mxu1 %v9627_v2  ;;  %8244 = vmatprep.subr.bf16.mxu0 %v9630_v6  ;;  %v9703_v2 = vld [vmem:[%s11058_s7 + $0x5e0] ss:$8 sps:$4 sm:$0xff]   ;;  %v9712_v41 = vld [vmem:[%s11058_s7 + $0xdf0] ss:$8 sps:$4 sm:$0xff]  }
 0x25d   : > { %7946 = vmatprep.mubr.bf16.mxu1 %v5017_v48  ;;  %8274 = vmatprep.mubr.bf16.mxu0 %v5115_v7  ;;  %v9706_v6 = vld [vmem:[%s11058_s7 + $0xde0] ss:$8 sps:$4 sm:$0xff]   ;;  %v9711_v48 = vld [vmem:[%s11058_s7 + $0x5f4] ss:$8 sps:$4 sm:$0xff]  }
 0x25e   : > { %v9714_v7 = vld [vmem:[%s11058_s7 + $0xdf4] ss:$8 sps:$4 sm:$0xff]  }
 0x25f   : > { %7917 = vmatpush1.bf16.msra.mxu1 %v9625_v16  ;;  %8245 = vmatpush1.bf16.msra.mxu0 %v9628_v8  ;;  %v11572_v16 = vrot.slane %v4970_v0, %v11065_v11  ;;  %v11575_v8 = vrot.slane %v5068_v1, %v11065_v11  ;;  %v9781_v0 = vld [vmem:[%s11058_s7 + $0x6b0] ss:$8 sps:$4 sm:$0xff]  }
 0x260   : > { %7918 = vmatprep.subr.bf16.mxu1 %v9633_v58  ;;  %8246 = vmatprep.subr.bf16.mxu0 %v9636_v9  ;;  %v9717_v58 = vld [vmem:[%s11058_s7 + $0x604] ss:$8 sps:$4 sm:$0xff]   ;;  %v9784_v1 = vld [vmem:[%s11058_s7 + $0xeb0] ss:$8 sps:$4 sm:$0xff]  }
 0x261   : > { %v9720_v9 = vld [vmem:[%s11058_s7 + $0xe04] ss:$8 sps:$4 sm:$0xff]  }
 0x263   : > { %7919 = vmatpush1.bf16.msra.mxu1 %v9631_v44  ;;  %8247 = vmatpush1.bf16.msra.mxu0 %v9634_v10  ;;  %v4986_v44 = vcombine.high %v11572_v16, %v11572_v16  ;;  %v5084_v10 = vcombine.high %v11575_v8, %v11575_v8 }
 0x264   : > { %7920 = vmatprep.subr.bf16.mxu1 %v9639_v12  ;;  %8248 = vmatprep.subr.bf16.mxu0 %v9642_v13  ;;  %v5015_v12 = vcombine.high %v11495_v62, %v11495_v62  ;;  %v5113_v13 = vcombine.high %v11499_v63, %v11499_v63  ;;  %v9721_v63 = vld [vmem:[%s11058_s7 + $0x610] ss:$8 sps:$4 sm:$0xff]  }
 0x265   : > { %v11597_v62 = vrot.slane %v5084_v10, %v11065_v11  ;;  %v9804_v10 = vld [vmem:[%s11058_s7 + $0xee4] ss:$8 sps:$4 sm:$0xff]  }
 0x267   : > { %7921 = vmatpush1.bf16.msra.mxu1 %v9637_v14  ;;  %8249 = vmatpush1.bf16.msra.mxu0 %v9640_v17  ;;  %v9715_v14 = vld [vmem:[%s11058_s7 + $0x600] ss:$8 sps:$4 sm:$0xff]  }
 0x268   : > { %7922 = vmatprep.subr.bf16.mxu1 %v9645_v18  ;;  %8250 = vmatprep.subr.bf16.mxu0 %v9648_v19  ;;  %v9718_v17 = vld [vmem:[%s11058_s7 + $0xe00] ss:$8 sps:$4 sm:$0xff]   ;;  %v9723_v18 = vld [vmem:[%s11058_s7 + $0x614] ss:$8 sps:$4 sm:$0xff]  }
 0x269   : > { %v9726_v19 = vld [vmem:[%s11058_s7 + $0xe14] ss:$8 sps:$4 sm:$0xff]  }
 0x26b   : > { %7923 = vmatpush1.bf16.msra.mxu1 %v9643_v20  ;;  %8251 = vmatpush1.bf16.msra.mxu0 %v9646_v21  ;;  %v11594_v20 = vrot.slane %v4986_v44, %v11065_v11  ;;  %v9724_v21 = vld [vmem:[%s11058_s7 + $0xe10] ss:$8 sps:$4 sm:$0xff]   ;;  %v9801_v44 = vld [vmem:[%s11058_s7 + $0x6e4] ss:$8 sps:$4 sm:$0xff]  }
 0x26c   : > { %7924 = vmatprep.subr.bf16.mxu1 %v9651_v22  ;;  %8252 = vmatprep.subr.bf16.mxu0 %v9654_v23  ;;  %v9729_v22 = vld [vmem:[%s11058_s7 + $0x624] ss:$8 sps:$4 sm:$0xff]  }
 0x26d   : > { %v9732_v23 = vld [vmem:[%s11058_s7 + $0xe24] ss:$8 sps:$4 sm:$0xff]  }
 0x26f   : > { %7925 = vmatpush1.bf16.msra.mxu1 %v9649_v28  ;;  %8253 = vmatpush1.bf16.msra.mxu0 %v9652_v29  ;;  %v9727_v28 = vld [vmem:[%s11058_s7 + $0x620] ss:$8 sps:$4 sm:$0xff]  }
 0x270   : > { %7926 = vmatprep.subr.bf16.mxu1 %v9657_v30  ;;  %8254 = vmatprep.subr.bf16.mxu0 %v9660_v15  ;;  %v9730_v29 = vld [vmem:[%s11058_s7 + $0xe20] ss:$8 sps:$4 sm:$0xff]   ;;  %v9735_v30 = vld [vmem:[%s11058_s7 + $0x634] ss:$8 sps:$4 sm:$0xff]  }
 0x271   : > { %v9738_v15 = vld [vmem:[%s11058_s7 + $0xe34] ss:$8 sps:$4 sm:$0xff]  }
 0x273   : > { %7927 = vmatpush1.bf16.msra.mxu1 %v9655_v31  ;;  %8255 = vmatpush1.bf16.msra.mxu0 %v9658_v5  ;;  %v9733_v31 = vld [vmem:[%s11058_s7 + $0x630] ss:$8 sps:$4 sm:$0xff]  }
 0x274   : > { %7928 = vmatprep.subr.bf16.mxu1 %v9663_v32  ;;  %8256 = vmatprep.subr.bf16.mxu0 %v9666_v25  ;;  %v9736_v5 = vld [vmem:[%s11058_s7 + $0xe30] ss:$8 sps:$4 sm:$0xff]   ;;  %v9741_v32 = vld [vmem:[%s11058_s7 + $0x644] ss:$8 sps:$4 sm:$0xff]  }
 0x275   : > { %v9744_v25 = vld [vmem:[%s11058_s7 + $0xe44] ss:$8 sps:$4 sm:$0xff]  }
 0x277   : > { %7929 = vmatpush1.bf16.msra.mxu1 %v9661_v26  ;;  %8257 = vmatpush1.bf16.msra.mxu0 %v9664_v33  ;;  %v9739_v26 = vld [vmem:[%s11058_s7 + $0x640] ss:$8 sps:$4 sm:$0xff]  }
 0x278   : > { %7930 = vmatprep.subr.bf16.mxu1 %v9669_v34  ;;  %8258 = vmatprep.subr.bf16.mxu0 %v9672_v35  ;;  %v9742_v33 = vld [vmem:[%s11058_s7 + $0xe40] ss:$8 sps:$4 sm:$0xff]   ;;  %v9747_v34 = vld [vmem:[%s11058_s7 + $0x654] ss:$8 sps:$4 sm:$0xff]  }
 0x279   : > { %v9750_v35 = vld [vmem:[%s11058_s7 + $0xe54] ss:$8 sps:$4 sm:$0xff]  }
 0x27b   : > { %7931 = vmatpush1.bf16.msra.mxu1 %v9667_v36  ;;  %8259 = vmatpush1.bf16.msra.mxu0 %v9670_v37  ;;  %v9745_v36 = vld [vmem:[%s11058_s7 + $0x650] ss:$8 sps:$4 sm:$0xff]  }
 0x27c   : > { %7932 = vmatprep.subr.bf16.mxu1 %v9675_v38  ;;  %8260 = vmatprep.subr.bf16.mxu0 %v9678_v39  ;;  %v9748_v37 = vld [vmem:[%s11058_s7 + $0xe50] ss:$8 sps:$4 sm:$0xff]   ;;  %v9753_v38 = vld [vmem:[%s11058_s7 + $0x664] ss:$8 sps:$4 sm:$0xff]  }
 0x27d   : > { %v9756_v39 = vld [vmem:[%s11058_s7 + $0xe64] ss:$8 sps:$4 sm:$0xff]  }
 0x27f   : > { %7933 = vmatpush1.bf16.msra.mxu1 %v9673_v42  ;;  %8261 = vmatpush1.bf16.msra.mxu0 %v9676_v43  ;;  %v9751_v42 = vld [vmem:[%s11058_s7 + $0x660] ss:$8 sps:$4 sm:$0xff]  }
 0x280   : > { %7934 = vmatprep.subr.bf16.mxu1 %v9681_v46  ;;  %8262 = vmatprep.subr.bf16.mxu0 %v9684_v47  ;;  %v9754_v43 = vld [vmem:[%s11058_s7 + $0xe60] ss:$8 sps:$4 sm:$0xff]   ;;  %v9759_v46 = vld [vmem:[%s11058_s7 + $0x674] ss:$8 sps:$4 sm:$0xff]  }
 0x281   : > { %v9762_v47 = vld [vmem:[%s11058_s7 + $0xe74] ss:$8 sps:$4 sm:$0xff]  }
 0x283   : > { %7935 = vmatpush1.bf16.msra.mxu1 %v9679_v3  ;;  %8263 = vmatpush1.bf16.msra.mxu0 %v9682_v49  ;;  %v9757_v3 = vld [vmem:[%s11058_s7 + $0x670] ss:$8 sps:$4 sm:$0xff]  }
 0x284   : > { %7936 = vmatprep.subr.bf16.mxu1 %v9687_v50  ;;  %8264 = vmatprep.subr.bf16.mxu0 %v9690_v40  ;;  %v9760_v49 = vld [vmem:[%s11058_s7 + $0xe70] ss:$8 sps:$4 sm:$0xff]   ;;  %v9765_v50 = vld [vmem:[%s11058_s7 + $0x684] ss:$8 sps:$4 sm:$0xff]  }
 0x285   : > { %v9768_v40 = vld [vmem:[%s11058_s7 + $0xe84] ss:$8 sps:$4 sm:$0xff]  }
 0x287   : > { %7937 = vmatpush1.bf16.msra.mxu1 %v9685_v24  ;;  %8265 = vmatpush1.bf16.msra.mxu0 %v9688_v51  ;;  %v9763_v24 = vld [vmem:[%s11058_s7 + $0x680] ss:$8 sps:$4 sm:$0xff]  }
 0x288   : > { %7938 = vmatprep.subr.bf16.mxu1 %v9693_v52  ;;  %8266 = vmatprep.subr.bf16.mxu0 %v9696_v53  ;;  %v9766_v51 = vld [vmem:[%s11058_s7 + $0xe80] ss:$8 sps:$4 sm:$0xff]   ;;  %v9771_v52 = vld [vmem:[%s11058_s7 + $0x694] ss:$8 sps:$4 sm:$0xff]  }
 0x289   : > { %v9774_v53 = vld [vmem:[%s11058_s7 + $0xe94] ss:$8 sps:$4 sm:$0xff]  }
 0x28b   : > { %7939 = vmatpush1.bf16.msra.mxu1 %v9691_v54  ;;  %8267 = vmatpush1.bf16.msra.mxu0 %v9694_v55  ;;  %v9769_v54 = vld [vmem:[%s11058_s7 + $0x690] ss:$8 sps:$4 sm:$0xff]  }
 0x28c   : > { %7940 = vmatprep.subr.bf16.mxu1 %v9699_v56  ;;  %8268 = vmatprep.subr.bf16.mxu0 %v9702_v57  ;;  %v9772_v55 = vld [vmem:[%s11058_s7 + $0xe90] ss:$8 sps:$4 sm:$0xff]   ;;  %v9777_v56 = vld [vmem:[%s11058_s7 + $0x6a4] ss:$8 sps:$4 sm:$0xff]  }
 0x28d   : > { %v9780_v57 = vld [vmem:[%s11058_s7 + $0xea4] ss:$8 sps:$4 sm:$0xff]  }
 0x28f   : > { %7941 = vmatpush1.bf16.msra.mxu1 %v9697_v45  ;;  %8269 = vmatpush1.bf16.msra.mxu0 %v9700_v59  ;;  %v9775_v45 = vld [vmem:[%s11058_s7 + $0x6a0] ss:$8 sps:$4 sm:$0xff]  }
 0x290   : > { %7942 = vmatprep.subr.bf16.mxu1 %v9705_v60  ;;  %8270 = vmatprep.subr.bf16.mxu0 %v9708_v61  ;;  %v9778_v59 = vld [vmem:[%s11058_s7 + $0xea0] ss:$8 sps:$4 sm:$0xff]   ;;  %v9783_v60 = vld [vmem:[%s11058_s7 + $0x6b4] ss:$8 sps:$4 sm:$0xff]  }
 0x291   : > { %v9786_v61 = vld [vmem:[%s11058_s7 + $0xeb4] ss:$8 sps:$4 sm:$0xff]  }
 0x293   : > { %7943 = vmatpush1.bf16.msra.mxu1 %v9703_v2  ;;  %8271 = vmatpush1.bf16.msra.mxu0 %v9706_v6  ;;  %v9789_v2 = vld [vmem:[%s11058_s7 + $0x6c4] ss:$8 sps:$4 sm:$0xff]  }
 0x294   : > { %7944 = vmatprep.subr.bf16.mxu1 %v9711_v48  ;;  %8272 = vmatprep.subr.bf16.mxu0 %v9714_v7  ;;  %v9792_v6 = vld [vmem:[%s11058_s7 + $0xec4] ss:$8 sps:$4 sm:$0xff]   ;;  %v9787_v48 = vld [vmem:[%s11058_s7 + $0x6c0] ss:$8 sps:$4 sm:$0xff]  }
 0x295   : > { %v9790_v7 = vld [vmem:[%s11058_s7 + $0xec0] ss:$8 sps:$4 sm:$0xff]  }
 0x297   : > { %7945 = vmatpush1.bf16.msra.mxu1 %v9709_v27  ;;  %8273 = vmatpush1.bf16.msra.mxu0 %v9712_v41  ;;  %v9795_v27 = vld [vmem:[%s11058_s7 + $0x6d4] ss:$8 sps:$4 sm:$0xff]  }
 0x298   : > { %7955 = vmatprep.subr.bf16.mxu1 %v9717_v58  ;;  %8283 = vmatprep.subr.bf16.mxu0 %v9720_v9  ;;  %v9798_v41 = vld [vmem:[%s11058_s7 + $0xed4] ss:$8 sps:$4 sm:$0xff]   ;;  %v9793_v58 = vld [vmem:[%s11058_s7 + $0x6d0] ss:$8 sps:$4 sm:$0xff]  }
 0x299   : > { %v9796_v9 = vld [vmem:[%s11058_s7 + $0xed0] ss:$8 sps:$4 sm:$0xff]  }
 0x29a   : > { %7947 = vmatmul.mubr.bf16.vlgmr.msra.gmra.mrb[0].mxu1 %v5015_v12  ;;  %8275 = vmatmul.mubr.bf16.vlgmr.msra.gmra.mrb[0].mxu0 %v5113_v13  ;;  %v9799_v12 = vld [vmem:[%s11058_s7 + $0x6e0] ss:$8 sps:$4 sm:$0xff]  }
 0x29b   : > { %7956 = vmatpush1.bf16.msra.mxu1 %v9715_v14  ;;  %8284 = vmatpush1.bf16.msra.mxu0 %v9718_v17  ;;  %v9802_v13 = vld [vmem:[%s11058_s7 + $0xee0] ss:$8 sps:$4 sm:$0xff]   ;;  %v9807_v14 = vld [vmem:[%s11058_s7 + $0x6f4] ss:$8 sps:$4 sm:$0xff]  }
 0x29c   : > { %7957 = vmatprep.subr.bf16.mxu1 %v9723_v18  ;;  %8285 = vmatprep.subr.bf16.mxu0 %v9726_v19  ;;  %v9810_v17 = vld [vmem:[%s11058_s7 + $0xef4] ss:$8 sps:$4 sm:$0xff]   ;;  %v9805_v18 = vld [vmem:[%s11058_s7 + $0x6f0] ss:$8 sps:$4 sm:$0xff]  }
 0x29d   : > { %7987 = vmatprep.mubr.bf16.mxu1 %v11594_v20  ;;  %8315 = vmatprep.mubr.bf16.mxu0 %v11597_v62  ;;  %v9808_v19 = vld [vmem:[%s11058_s7 + $0xef0] ss:$8 sps:$4 sm:$0xff]  }
 0x29f   : > { %7958 = vmatpush1.bf16.msra.mxu1 %v9721_v63  ;;  %8286 = vmatpush1.bf16.msra.mxu0 %v9724_v21  ;;  %v9814_v63 = vld [vmem:[%s11058_s7 + $0x704] ss:$8 sps:$4 sm:$0xff]  }
 0x2a0   : > { %7959 = vmatprep.subr.bf16.mxu1 %v9729_v22  ;;  %8287 = vmatprep.subr.bf16.mxu0 %v9732_v23  ;;  %v9818_v21 = vld [vmem:[%s11058_s7 + $0xf04] ss:$8 sps:$4 sm:$0xff]   ;;  %v11663_v22 = vrot.slane %v11572_v16, %v11065_v11  ;;  %v11667_v23 = vrot.slane %v11575_v8, %v11065_v11  ;;  %v5018_v16 = vcombine.high %v11594_v20, %v11594_v20  ;;  %v9819_v11 = vld [vmem:[%s11058_s7 + $0x710] ss:$8 sps:$4 sm:$0xff]  }
 0x2a1   : > { %v9822_v8 = vld [vmem:[%s11058_s7 + $0xf10] ss:$8 sps:$4 sm:$0xff]   ;;  %v9827_v20 = vld [vmem:[%s11058_s7 + $0x724] ss:$8 sps:$4 sm:$0xff]  }
 0x2a3   : > { %7960 = vmatpush1.bf16.msra.mxu1 %v9727_v28  ;;  %8288 = vmatpush1.bf16.msra.mxu0 %v9730_v29  ;;  %v9812_v28 = vld [vmem:[%s11058_s7 + $0x700] ss:$8 sps:$4 sm:$0xff]  }
 0x2a4   : > { %7961 = vmatprep.subr.bf16.mxu1 %v9735_v30  ;;  %8289 = vmatprep.subr.bf16.mxu0 %v9738_v15  ;;  %v9816_v29 = vld [vmem:[%s11058_s7 + $0xf00] ss:$8 sps:$4 sm:$0xff]   ;;  %v9821_v30 = vld [vmem:[%s11058_s7 + $0x714] ss:$8 sps:$4 sm:$0xff]  }
 0x2a5   : > { %v9824_v15 = vld [vmem:[%s11058_s7 + $0xf14] ss:$8 sps:$4 sm:$0xff]  }
 0x2a7   : > { %7962 = vmatpush1.bf16.msra.mxu1 %v9733_v31  ;;  %8290 = vmatpush1.bf16.msra.mxu0 %v9736_v5  ;;  %v5116_v31 = vcombine.high %v11597_v62, %v11597_v62  ;;  %v9830_v5 = vld [vmem:[%s11058_s7 + $0xf24] ss:$8 sps:$4 sm:$0xff]   ;;  %v9825_v62 = vld [vmem:[%s11058_s7 + $0x720] ss:$8 sps:$4 sm:$0xff]  }
 0x2a8   : > { %7963 = vmatprep.subr.bf16.mxu1 %v9741_v32  ;;  %8291 = vmatprep.subr.bf16.mxu0 %v9744_v25  ;;  %v9828_v32 = vld [vmem:[%s11058_s7 + $0xf20] ss:$8 sps:$4 sm:$0xff]   ;;  %v9833_v25 = vld [vmem:[%s11058_s7 + $0x734] ss:$8 sps:$4 sm:$0xff]  }
 0x2ab   : > { %7964 = vmatpush1.bf16.msra.mxu1 %v9739_v26  ;;  %8292 = vmatpush1.bf16.msra.mxu0 %v9742_v33  ;;  %v9836_v26 = vld [vmem:[%s11058_s7 + $0xf34] ss:$8 sps:$4 sm:$0xff]   ;;  %v9831_v33 = vld [vmem:[%s11058_s7 + $0x730] ss:$8 sps:$4 sm:$0xff]  }
 0x2ac   : > { %7965 = vmatprep.subr.bf16.mxu1 %v9747_v34  ;;  %8293 = vmatprep.subr.bf16.mxu0 %v9750_v35  ;;  %v9834_v34 = vld [vmem:[%s11058_s7 + $0xf30] ss:$8 sps:$4 sm:$0xff]   ;;  %v9839_v35 = vld [vmem:[%s11058_s7 + $0x744] ss:$8 sps:$4 sm:$0xff]  }
 0x2af   : > { %7966 = vmatpush1.bf16.msra.mxu1 %v9745_v36  ;;  %8294 = vmatpush1.bf16.msra.mxu0 %v9748_v37  ;;  %v9842_v36 = vld [vmem:[%s11058_s7 + $0xf44] ss:$8 sps:$4 sm:$0xff]   ;;  %v9837_v37 = vld [vmem:[%s11058_s7 + $0x740] ss:$8 sps:$4 sm:$0xff]  }
 0x2b0   : > { %7967 = vmatprep.subr.bf16.mxu1 %v9753_v38  ;;  %8295 = vmatprep.subr.bf16.mxu0 %v9756_v39  ;;  %v9840_v38 = vld [vmem:[%s11058_s7 + $0xf40] ss:$8 sps:$4 sm:$0xff]   ;;  %v9845_v39 = vld [vmem:[%s11058_s7 + $0x754] ss:$8 sps:$4 sm:$0xff]  }
 0x2b3   : > { %7968 = vmatpush1.bf16.msra.mxu1 %v9751_v42  ;;  %8296 = vmatpush1.bf16.msra.mxu0 %v9754_v43  ;;  %v9848_v42 = vld [vmem:[%s11058_s7 + $0xf54] ss:$8 sps:$4 sm:$0xff]   ;;  %v9843_v43 = vld [vmem:[%s11058_s7 + $0x750] ss:$8 sps:$4 sm:$0xff]  }
 0x2b4   : > { %7969 = vmatprep.subr.bf16.mxu1 %v9759_v46  ;;  %8297 = vmatprep.subr.bf16.mxu0 %v9762_v47  ;;  %v9846_v46 = vld [vmem:[%s11058_s7 + $0xf50] ss:$8 sps:$4 sm:$0xff]   ;;  %v9851_v47 = vld [vmem:[%s11058_s7 + $0x764] ss:$8 sps:$4 sm:$0xff]  }
 0x2b7   : > { %7970 = vmatpush1.bf16.msra.mxu1 %v9757_v3  ;;  %8298 = vmatpush1.bf16.msra.mxu0 %v9760_v49  ;;  %v9854_v3 = vld [vmem:[%s11058_s7 + $0xf64] ss:$8 sps:$4 sm:$0xff]   ;;  %v9849_v49 = vld [vmem:[%s11058_s7 + $0x760] ss:$8 sps:$4 sm:$0xff]  }
 0x2b8   : > { %7971 = vmatprep.subr.bf16.mxu1 %v9765_v50  ;;  %8299 = vmatprep.subr.bf16.mxu0 %v9768_v40  ;;  %v9852_v50 = vld [vmem:[%s11058_s7 + $0xf60] ss:$8 sps:$4 sm:$0xff]   ;;  %v9857_v40 = vld [vmem:[%s11058_s7 + $0x774] ss:$8 sps:$4 sm:$0xff]  }
 0x2bb   : > { %7972 = vmatpush1.bf16.msra.mxu1 %v9763_v24  ;;  %8300 = vmatpush1.bf16.msra.mxu0 %v9766_v51  ;;  %v9860_v24 = vld [vmem:[%s11058_s7 + $0xf74] ss:$8 sps:$4 sm:$0xff]   ;;  %v9855_v51 = vld [vmem:[%s11058_s7 + $0x770] ss:$8 sps:$4 sm:$0xff]  }
 0x2bc   : > { %7973 = vmatprep.subr.bf16.mxu1 %v9771_v52  ;;  %8301 = vmatprep.subr.bf16.mxu0 %v9774_v53  ;;  %v9858_v52 = vld [vmem:[%s11058_s7 + $0xf70] ss:$8 sps:$4 sm:$0xff]   ;;  %v9863_v53 = vld [vmem:[%s11058_s7 + $0x784] ss:$8 sps:$4 sm:$0xff]  }
 0x2bf   : > { %7974 = vmatpush1.bf16.msra.mxu1 %v9769_v54  ;;  %8302 = vmatpush1.bf16.msra.mxu0 %v9772_v55  ;;  %v9866_v54 = vld [vmem:[%s11058_s7 + $0xf84] ss:$8 sps:$4 sm:$0xff]   ;;  %v9861_v55 = vld [vmem:[%s11058_s7 + $0x780] ss:$8 sps:$4 sm:$0xff]  }
 0x2c0   : > { %7975 = vmatprep.subr.bf16.mxu1 %v9777_v56  ;;  %8303 = vmatprep.subr.bf16.mxu0 %v9780_v57  ;;  %v9864_v56 = vld [vmem:[%s11058_s7 + $0xf80] ss:$8 sps:$4 sm:$0xff]   ;;  %v9869_v57 = vld [vmem:[%s11058_s7 + $0x794] ss:$8 sps:$4 sm:$0xff]  }
 0x2c3   : > { %7976 = vmatpush1.bf16.msra.mxu1 %v9775_v45  ;;  %8304 = vmatpush1.bf16.msra.mxu0 %v9778_v59  ;;  %v9872_v45 = vld [vmem:[%s11058_s7 + $0xf94] ss:$8 sps:$4 sm:$0xff]   ;;  %v9867_v59 = vld [vmem:[%s11058_s7 + $0x790] ss:$8 sps:$4 sm:$0xff]  }
 0x2c4   : > { %7977 = vmatprep.subr.bf16.mxu1 %v9783_v60  ;;  %8305 = vmatprep.subr.bf16.mxu0 %v9786_v61  ;;  %v9870_v60 = vld [vmem:[%s11058_s7 + $0xf90] ss:$8 sps:$4 sm:$0xff]   ;;  %v9875_v61 = vld [vmem:[%s11058_s7 + $0x7a4] ss:$8 sps:$4 sm:$0xff]  }
 0x2c7   : > { %7978 = vmatpush1.bf16.msra.mxu1 %v9781_v0  ;;  %8306 = vmatpush1.bf16.msra.mxu0 %v9784_v1  ;;  %v9878_v0 = vld [vmem:[%s11058_s7 + $0xfa4] ss:$8 sps:$4 sm:$0xff]   ;;  %v9873_v1 = vld [vmem:[%s11058_s7 + $0x7a0] ss:$8 sps:$4 sm:$0xff]  }
 0x2c8   : > { %7979 = vmatprep.subr.bf16.mxu1 %v9789_v2  ;;  %8307 = vmatprep.subr.bf16.mxu0 %v9792_v6  ;;  %v9876_v2 = vld [vmem:[%s11058_s7 + $0xfa0] ss:$8 sps:$4 sm:$0xff]   ;;  %v9881_v6 = vld [vmem:[%s11058_s7 + $0x7b4] ss:$8 sps:$4 sm:$0xff]  }
 0x2cb   : > { %7980 = vmatpush1.bf16.msra.mxu1 %v9787_v48  ;;  %8308 = vmatpush1.bf16.msra.mxu0 %v9790_v7  ;;  %v9884_v48 = vld [vmem:[%s11058_s7 + $0xfb4] ss:$8 sps:$4 sm:$0xff]   ;;  %v9879_v7 = vld [vmem:[%s11058_s7 + $0x7b0] ss:$8 sps:$4 sm:$0xff]  }
 0x2cc   : > { %7981 = vmatprep.subr.bf16.mxu1 %v9795_v27  ;;  %8309 = vmatprep.subr.bf16.mxu0 %v9798_v41  ;;  %v9882_v27 = vld [vmem:[%s11058_s7 + $0xfb0] ss:$8 sps:$4 sm:$0xff]   ;;  %v9887_v41 = vld [vmem:[%s11058_s7 + $0x7c4] ss:$8 sps:$4 sm:$0xff]  }
 0x2cf   : > { %7982 = vmatpush1.bf16.msra.mxu1 %v9793_v58  ;;  %8310 = vmatpush1.bf16.msra.mxu0 %v9796_v9  ;;  %v9890_v58 = vld [vmem:[%s11058_s7 + $0xfc4] ss:$8 sps:$4 sm:$0xff]   ;;  %v9885_v9 = vld [vmem:[%s11058_s7 + $0x7c0] ss:$8 sps:$4 sm:$0xff]  }
 0x2d0   : > { %7983 = vmatprep.subr.bf16.mxu1 %v9801_v44  ;;  %8311 = vmatprep.subr.bf16.mxu0 %v9804_v10  ;;  %v9888_v44 = vld [vmem:[%s11058_s7 + $0xfc0] ss:$8 sps:$4 sm:$0xff]   ;;  %v9893_v10 = vld [vmem:[%s11058_s7 + $0x7d4] ss:$8 sps:$4 sm:$0xff]  }
 0x2d3   : > { %7984 = vmatpush1.bf16.msra.mxu1 %v9799_v12  ;;  %8312 = vmatpush1.bf16.msra.mxu0 %v9802_v13  ;;  %v9896_v12 = vld [vmem:[%s11058_s7 + $0xfd4] ss:$8 sps:$4 sm:$0xff]   ;;  %v9891_v13 = vld [vmem:[%s11058_s7 + $0x7d0] ss:$8 sps:$4 sm:$0xff]  }
 0x2d4   : > { %7985 = vmatprep.subr.bf16.mxu1 %v9807_v14  ;;  %8313 = vmatprep.subr.bf16.mxu0 %v9810_v17  ;;  %v9894_v14 = vld [vmem:[%s11058_s7 + $0xfd0] ss:$8 sps:$4 sm:$0xff]   ;;  %v9899_v17 = vld [vmem:[%s11058_s7 + $0x7e4] ss:$8 sps:$4 sm:$0xff]  }
 0x2d7   : > { %7986 = vmatpush1.bf16.msra.mxu1 %v9805_v18  ;;  %8314 = vmatpush1.bf16.msra.mxu0 %v9808_v19  ;;  %v9902_v18 = vld [vmem:[%s11058_s7 + $0xfe4] ss:$8 sps:$4 sm:$0xff]   ;;  %v9897_v19 = vld [vmem:[%s11058_s7 + $0x7e0] ss:$8 sps:$4 sm:$0xff]  }
 0x2d8   : > { %7996 = vmatprep.subr.bf16.mxu1 %v9814_v63  ;;  %8324 = vmatprep.subr.bf16.mxu0 %v9818_v21  ;;  %v9900_v63 = vld [vmem:[%s11058_s7 + $0xfe0] ss:$8 sps:$4 sm:$0xff]   ;;  %v9905_v21 = vld [vmem:[%s11058_s7 + $0x7f4] ss:$8 sps:$4 sm:$0xff]  }
 0x2da   : > { %7988 = vmatmul.mubr.bf16.vlgmr.msra.gmra.mrb[0].mxu1 %v11663_v22  ;;  %8316 = vmatmul.mubr.bf16.vlgmr.msra.gmra.mrb[0].mxu0 %v11667_v23 }
 0x2db   : > { %7997 = vmatpush1.bf16.msra.mxu1 %v9812_v28  ;;  %8325 = vmatpush1.bf16.msra.mxu0 %v9816_v29  ;;  %v9908_v28 = vld [vmem:[%s11058_s7 + $0xff4] ss:$8 sps:$4 sm:$0xff]   ;;  %v9903_v29 = vld [vmem:[%s11058_s7 + $0x7f0] ss:$8 sps:$4 sm:$0xff]  }
 0x2dc   : > { %7998 = vmatprep.subr.bf16.mxu1 %v9821_v30  ;;  %8326 = vmatprep.subr.bf16.mxu0 %v9824_v15  ;;  %v9906_v30 = vld [vmem:[%s11058_s7 + $0xff0] ss:$8 sps:$4 sm:$0xff]   ;;  %v5016_v15 = vcombine.high %v11663_v22, %v11663_v22  ;;  %v9951_v22 = vmov 1983009808  }
 0x2dd   : > { %8028 = vmatprep.mubr.bf16.mxu1 %v5018_v16  ;;  %8356 = vmatprep.mubr.bf16.mxu0 %v5116_v31  ;;  %v5114_v16 = vcombine.high %v11667_v23, %v11667_v23  ;;  %v9950_v31 = vmov 0.0  }
 0x2de   : > { %4399 = vst [vmem:[%s11745_s22] sm:$0xf] %v9950_v31 }
 0x2df   : > { %7999 = vmatpush1.bf16.msra.mxu1 %v9819_v11  ;;  %8327 = vmatpush1.bf16.msra.mxu0 %v9822_v8  ;;  %v8369_v11 = vunpack.c.l.s4 %v9951_v22 }
 0x2e0   : > { %8000 = vmatprep.subr.bf16.mxu1 %v9827_v20  ;;  %8328 = vmatprep.subr.bf16.mxu0 %v9830_v5 }
 0x2e1   : > { %v8370_v8 = vunpack.c.0.s8 %v8369_v11 }
 0x2e3   : > { %8001 = vmatpush1.bf16.msra.mxu1 %v9825_v62  ;;  %8329 = vmatpush1.bf16.msra.mxu0 %v9828_v32 }
 0x2e4   : > { %8002 = vmatprep.subr.bf16.mxu1 %v9833_v25  ;;  %8330 = vmatprep.subr.bf16.mxu0 %v9836_v26  ;;  %v8373_v26 = vsub.s32 %v8370_v8, %v11051_v4 }
 0x2e7   : > { %8003 = vmatpush1.bf16.msra.mxu1 %v9831_v33  ;;  %8331 = vmatpush1.bf16.msra.mxu0 %v9834_v34  ;;  %v8386_v33 = vsub.s32 0, %v11051_v4  ;;  %v8390_v34 = vsub.s32 1, %v11051_v4 }
 0x2e8   : > { %8004 = vmatprep.subr.bf16.mxu1 %v9839_v35  ;;  %8332 = vmatprep.subr.bf16.mxu0 %v9842_v36 }
 0x2eb   : > { %8005 = vmatpush1.bf16.msra.mxu1 %v9837_v37  ;;  %8333 = vmatpush1.bf16.msra.mxu0 %v9840_v38  ;;  %v8382_v37 = vld [vmem:[%s4387_s14] sm:$0x3] }
 0x2ec   : > { %8006 = vmatprep.subr.bf16.mxu1 %v9845_v39  ;;  %8334 = vmatprep.subr.bf16.mxu0 %v9848_v42 }
 0x2ef   : > { %8007 = vmatpush1.bf16.msra.mxu1 %v9843_v43  ;;  %8335 = vmatpush1.bf16.msra.mxu0 %v9846_v46  ;;  %v4400_v43 = vld [vmem:[%s11745_s22] sm:$0xf] }
 0x2f0   : > { %8008 = vmatprep.subr.bf16.mxu1 %v9851_v47  ;;  %8336 = vmatprep.subr.bf16.mxu0 %v9854_v3  ;;  %v8387_v47 = vrot.slane %v8382_v37, %v8386_v33  ;;  %v8391_v3 = vrot.slane %v8382_v37, %v8390_v34 }
 0x2f3   : > { %8009 = vmatpush1.bf16.msra.mxu1 %v9849_v49  ;;  %8337 = vmatpush1.bf16.msra.mxu0 %v9852_v50  ;;  %v8392_v50 = vcombine.low %v8387_v47, %v8391_v3 }
 0x2f4   : > { %8010 = vmatprep.subr.bf16.mxu1 %v9857_v40  ;;  %8338 = vmatprep.subr.bf16.mxu0 %v9860_v24 }
 0x2f5   : > { %v8399_v40 = vrot.slane %v8392_v50, %v8373_v26 }
 0x2f7   : > { %8011 = vmatpush1.bf16.msra.mxu1 %v9855_v51  ;;  %8339 = vmatpush1.bf16.msra.mxu0 %v9858_v52 }
 0x2f8   : > { %8012 = vmatprep.subr.bf16.mxu1 %v9863_v53  ;;  %8340 = vmatprep.subr.bf16.mxu0 %v9866_v54 }
 0x2fb   : > { %8013 = vmatpush1.bf16.msra.mxu1 %v9861_v55  ;;  %8341 = vmatpush1.bf16.msra.mxu0 %v9864_v56 }
 0x2fc   : > { %8014 = vmatprep.subr.bf16.mxu1 %v9869_v57  ;;  %8342 = vmatprep.subr.bf16.mxu0 %v9872_v45 }
 0x2ff   : > { %8015 = vmatpush1.bf16.msra.mxu1 %v9867_v59  ;;  %8343 = vmatpush1.bf16.msra.mxu0 %v9870_v60 }
 0x300   : > { %8016 = vmatprep.subr.bf16.mxu1 %v9875_v61  ;;  %8344 = vmatprep.subr.bf16.mxu0 %v9878_v0 }
 0x303   : > { %8017 = vmatpush1.bf16.msra.mxu1 %v9873_v1  ;;  %8345 = vmatpush1.bf16.msra.mxu0 %v9876_v2 }
 0x304   : > { %8018 = vmatprep.subr.bf16.mxu1 %v9881_v6  ;;  %8346 = vmatprep.subr.bf16.mxu0 %v9884_v48 }
 0x307   : > { %8019 = vmatpush1.bf16.msra.mxu1 %v9879_v7  ;;  %8347 = vmatpush1.bf16.msra.mxu0 %v9882_v27 }
 0x308   : > { %8020 = vmatprep.subr.bf16.mxu1 %v9887_v41  ;;  %8348 = vmatprep.subr.bf16.mxu0 %v9890_v58 }
 0x30b   : > { %8021 = vmatpush1.bf16.msra.mxu1 %v9885_v9  ;;  %8349 = vmatpush1.bf16.msra.mxu0 %v9888_v44 }
 0x30c   : > { %8022 = vmatprep.subr.bf16.mxu1 %v9893_v10  ;;  %8350 = vmatprep.subr.bf16.mxu0 %v9896_v12 }
 0x30f   : > { %8023 = vmatpush1.bf16.msra.mxu1 %v9891_v13  ;;  %8351 = vmatpush1.bf16.msra.mxu0 %v9894_v14 }
 0x310   : > { %8024 = vmatprep.subr.bf16.mxu1 %v9899_v17  ;;  %8352 = vmatprep.subr.bf16.mxu0 %v9902_v18 }
 0x313   : > { %8025 = vmatpush1.bf16.msra.mxu1 %v9897_v19  ;;  %8353 = vmatpush1.bf16.msra.mxu0 %v9900_v63 }
 0x314   : > { %8026 = vmatprep.subr.bf16.mxu1 %v9905_v21  ;;  %8354 = vmatprep.subr.bf16.mxu0 %v9908_v28 }
 0x317   : > { %8027 = vmatpush1.bf16.msra.mxu1 %v9903_v29  ;;  %8355 = vmatpush1.bf16.msra.mxu0 %v9906_v30 }
 0x31a   : > { %8029 = vmatmul.mubr.bf16.vlgmr.msra.gmra.mrb[0].mxu1 %v5016_v15  ;;  %8357 = vmatmul.mubr.bf16.vlgmr.msra.gmra.mrb[0].mxu0 %v5114_v16 }
 0x3ed   : > { %v8030_v23 = vpop.f32.mrb[0].mxu1  ;;  %v8358_v20 = vpop.f32.mrb[0].mxu0 }
 0x3ee   : > { %v9036_v5 = vadd.f32 %v8358_v20, %v8030_v23  ;;  %v8032_v62 = vpop.f32.mrb[1].mxu1  ;;  %v8360_v32 = vpop.f32.mrb[1].mxu0 }
 0x3ef   : > { %v9037_v25 = vadd.f32 %v8360_v32, %v8032_v62  ;;  %v8034_v35 = vpop.f32.mrb[2].mxu1  ;;  %v8362_v36 = vpop.f32.mrb[2].mxu0 }
 0x3f0   : > { %v8035_v38 = vpop.f32.mrb[3].mxu1  ;;  %v8363_v39 = vpop.f32.mrb[3].mxu0 }
 0x3f1   : > { %v8367_v42 = vcombine.low %v9036_v5, %v9037_v25 }
 0x3f3   : > { %v8374_v46 = vrot.slane %v8367_v42, %v8373_v26 }
 0x3f5   : > { %v8376_v49 = vadd.f32 %v8374_v46, %v4400_v43 }
 0x3f7   : > { %8377 = vst [vmem:[%s11745_s22] sm:$0xf] %v8376_v49 }
 0x3fe   : > { %v8381_v24 = vld [vmem:[%s11745_s22] sm:$0xf] }
 0x3ff   : > { %v8401_v51 = vadd.f32 %v8399_v40, %v8381_v24 }
 0x401   : > { %v8402_v52 = vmax.f32 %v8401_v51, 0.0 }
 0x403   : > { %8403 = vst [vmem:[%s11745_s22] sm:$0xf] %v8402_v52 }
 0x404 PF: > { %s13_s16 = sadd.s32 1, %s9947_s16   ;;  %s11777_s12 = smov %s9935_s13 }
 0x405   : > { %p10_p10 = scmp.ge.s32.totalorder %s13_s16, 4   ;;  %s11778_s13 = smov %s10007_s20 }
 0x406   : > { %s11779_s14 = smov %s9943_s15  ;;  %s11780_s15 = smov %s11782_s17 }
 0x407   :  { %12 = sbr.rel (!%p10_p10) target bundleno = 3 (0x3), region = 139 }

</bundles_post_ra>
